<compile_context>
chip_gen: v6e
topology: v6e:2x2x1
jax: 0.10.0
libtpu: 0.0.40
codegen_flags: <defaults>
</compile_context>

<pallas_src>
import functools

import jax
import jax.numpy as jnp
from jax.experimental import pallas as pl
from jax.experimental.pallas import tpu as pltpu

EPS = 1e-5


# ---------------------------------------------------------------------------
# Per-generation VMEM budget & tile-height selection
# ---------------------------------------------------------------------------
def _default_vmem_limit():
    """~3/4 of physical VMEM (96 MiB on v5e/v6e, 48 MiB on v7x), safe fallback."""
    try:
        cap = int(pltpu.get_tpu_info().vmem_capacity_bytes)
    except Exception:
        cap = 64 * 1024 * 1024
    return max(32 * 1024 * 1024, min(cap * 3 // 4, 100 * 1024 * 1024))


_VMEM_LIMIT = _default_vmem_limit()


def _pick_tile_h(h, w, cin, cout, vmem_budget, max_rows=4096):
    """Largest divisor of `h` whose per-step VMEM footprint fits the budget."""
    best = 1
    for th in range(1, h + 1):
        if h % th:
            continue
        rows = th * w
        est = (2 * (th + 2) * (w + 2) * cin * 2   # input blocks (x2 buffers), bf16
               + 2 * 9 * cin * cout * 2           # weights (worst case x2), bf16
               + 2 * rows * cout * 2              # output blocks (x2 buffers), bf16
               + 2 * 2 * cout * 4                 # stats blocks
               + rows * cout * 4                  # f32 accumulator
               + (th + 2) * (w + 2) * cin * 2)    # relayout slack
        if rows <= max_rows and est <= vmem_budget:
            best = th
    return best


# ---------------------------------------------------------------------------
# Conv3x3 (in-kernel im2col) + bias + per-tile centered BN partial sums
# ---------------------------------------------------------------------------
def _conv_stats_kernel(x_ref, w_ref, b_ref, y_ref, stats_ref, *, th, wo, cin, cout):
    """x_ref: (1, TH+2, W+2, Cin) bf16 halo'd & zero-padded post-activation input
       w_ref: (9, Cin, Cout) bf16      b_ref: (1, Cout) f32
       y_ref: (1, TH, W, Cout) bf16 (pre-BN conv output)
       stats_ref: (1, 2, Cout) f32 -> [per-tile sum, per-tile centered sum-of-squares]"""
    rows = th * wo
    acc = jnp.zeros((rows, cout), jnp.float32)
    # In-kernel im2col: 9 shifted taps, each one MXU matmul, f32 accumulation.
    for dy in range(3):
        for dx in range(3):
            tap = x_ref[0, dy:dy + th, dx:dx + wo, :].reshape(rows, cin)
            acc = acc + jnp.dot(tap, w_ref[dy * 3 + dx],
                                preferred_element_type=jnp.float32)
    acc = acc + b_ref[...]
    y_ref[...] = acc.reshape(1, th, wo, cout).astype(y_ref.dtype)

    # Mean-centered per-tile BN partial sums (robust combine happens in wrapper).
    s = jnp.sum(acc, axis=0, keepdims=True)               # (1, Cout)
    d = acc - s * (1.0 / rows)
    ss = jnp.sum(d * d, axis=0, keepdims=True)             # (1, Cout)
    stats_ref[...] = jnp.concatenate([s, ss], axis=0).reshape(1, 2, cout)


def _conv_bn_pass(a_nhwc, w_oihw, bias, *, vmem_limit, single_buffer_weights):
    """One Conv2d(3x3, pad=1) pass: returns (pre-BN y in bf16, per-tile stats, rows/tile)."""
    n, h, w, cin = a_nhwc.shape
    cout = w_oihw.shape[0]
    th = _pick_tile_h(h, w, cin, cout, vmem_limit // 2)
    n_rb = h // th

    # --- glue: zero-pad + halo-duplicated row blocks, bf16 (~(1+2/TH)x bytes) --
    a = a_nhwc.astype(jnp.bfloat16)
    ap = jnp.pad(a, ((0, 0), (1, 1), (1, 1), (0, 0)))       # (N, H+2, W+2, Cin)
    if n_rb == 1:
        xh = ap[:, None]                                     # (N, 1, H+2, W+2, Cin)
    else:
        rows_idx = (jnp.arange(n_rb)[:, None] * th
                    + jnp.arange(th + 2)[None, :])           # (n_rb, TH+2)
        xh = ap[:, rows_idx]                                 # (N, n_rb, TH+2, W+2, Cin)
    xh = xh.reshape(n * n_rb, th + 2, w + 2, cin)

    # Weights (Cout, Cin, 3, 3) -> (9, Cin, Cout) bf16, tap order = dy*3+dx.
    w_mat = jnp.transpose(w_oihw, (2, 3, 1, 0)).reshape(9, cin, cout)
    w_mat = w_mat.astype(jnp.bfloat16)
    b_row = bias.astype(jnp.float32).reshape(1, cout)

    w_spec_kwargs = {}
    if single_buffer_weights:
        # Constant-index block: single buffer saves VMEM at deep stages (v7x).
        w_spec_kwargs["pipeline_mode"] = pl.Buffered(1)
    w_spec = pl.BlockSpec((9, cin, cout), lambda i: (0, 0, 0), **w_spec_kwargs)

    y, stats = pl.pallas_call(
        functools.partial(_conv_stats_kernel, th=th, wo=w, cin=cin, cout=cout),
        out_shape=(jax.ShapeDtypeStruct((n * n_rb, th, w, cout), jnp.bfloat16),
                   jax.ShapeDtypeStruct((n * n_rb, 2, cout), jnp.float32)),
        grid=(n * n_rb,),
        in_specs=[pl.BlockSpec((1, th + 2, w + 2, cin), lambda i: (i, 0, 0, 0)),
                  w_spec,
                  pl.BlockSpec((1, cout), lambda i: (0, 0))],
        out_specs=(pl.BlockSpec((1, th, w, cout), lambda i: (i, 0, 0, 0)),
                   pl.BlockSpec((1, 2, cout), lambda i: (i, 0, 0))),
        compiler_params=pltpu.CompilerParams(
            dimension_semantics=("parallel",),
            vmem_limit_bytes=int(vmem_limit)),
    )(xh, w_mat, b_row)

    return y.reshape(n, h, w, cout), stats, th * w


def _bn_fold(stats, rows_per_tile, gamma, beta):
    """Combine per-tile centered partial sums -> folded BN scale/shift (f32)."""
    t = stats.shape[0]
    m = t * rows_per_tile
    sums = stats[:, 0, :]                                    # (T, C)
    ssqs = stats[:, 1, :]                                    # (T, C)
    mean = jnp.sum(sums, axis=0) / m
    mu_t = sums / rows_per_tile
    var = (jnp.sum(ssqs, axis=0)
           + rows_per_tile * jnp.sum(jnp.square(mu_t - mean), axis=0)) / m
    var = jnp.maximum(var, 0.0)                              # biased, like PyTorch BN
    inv = jax.lax.rsqrt(var + EPS)
    scale = gamma.astype(jnp.float32) * inv
    shift = beta.astype(jnp.float32) - mean * scale
    return scale, shift


# ---------------------------------------------------------------------------
# Down.forward : MaxPool2d(2) -> DoubleConv
# ---------------------------------------------------------------------------
@functools.partial(jax.jit, static_argnames=("single_buffer_weights",))
def down_forward(x_nchw, params, single_buffer_weights=True):
    vmem_limit = _VMEM_LIMIT
    x = jnp.transpose(x_nchw, (0, 2, 3, 1))                  # NCHW -> NHWC
    n, h, w, c = x.shape
    h2, w2 = h // 2, w // 2

    # MaxPool2d(2): fused into conv-1's input glue (free reshape view + max).
    xp = x[:, :2 * h2, :2 * w2, :].reshape(n, h2, 2, w2, 2, c).max(axis=(2, 4))

    # --- conv block 1: conv + bias + stats (Pallas), BN fold in wrapper ------
    y1, st1, rows1 = _conv_bn_pass(
        xp, params["w1"], params["b1"],
        vmem_limit=vmem_limit, single_buffer_weights=single_buffer_weights)
    s1, sh1 = _bn_fold(st1, rows1, params["g1"], params["be1"])

    # Folded BN1 + ReLU applied as XLA glue fused into conv-2's halo gather.
    a1 = jnp.maximum(y1.astype(jnp.float32) * s1 + sh1, 0.0)

    # --- conv block 2 ---------------------------------------------------------
    y2, st2, rows2 = _conv_bn_pass(
        a1, params["w2"], params["b2"],
        vmem_limit=vmem_limit, single_buffer_weights=single_buffer_weights)
    s2, sh2 = _bn_fold(st2, rows2, params["g2"], params["be2"])

    # Tiny epilogue for the final block (fused with the output transpose).
    out = jnp.maximum(y2.astype(jnp.float32) * s2 + sh2, 0.0)
    return jnp.transpose(out, (0, 3, 1, 2))                  # NHWC -> NCHW


# ---------------- pure-JAX references (correctness check only) --------------
def _ref_block(x, w, b, g, be, mimic):
    if mimic:  # mimic the kernel's bf16 matmul inputs / bf16 pre-BN storage
        x = x.astype(jnp.bfloat16).astype(jnp.float32)
        w = w.astype(jnp.bfloat16).astype(jnp.float32)
    y = jax.lax.conv_general_dilated(
        x, w, window_strides=(1, 1), padding=((1, 1), (1, 1)),
        dimension_numbers=("NCHW", "OIHW", "NCHW"),
        precision=jax.lax.Precision.HIGHEST)
    y = y + b[None, :, None, None]
    mean = y.mean(axis=(0, 2, 3), keepdims=True)
    var = jnp.square(y - mean).mean(axis=(0, 2, 3), keepdims=True)
    if mimic:
        y = y.astype(jnp.bfloat16).astype(jnp.float32)       # kernel stores pre-BN y bf16
    y = (y - mean) * jax.lax.rsqrt(var + EPS)
    y = y * g[None, :, None, None] + be[None, :, None, None]
    return jnp.maximum(y, 0.0)


def _ref_down(x, p, mimic=False):
    n, c, h, w = x.shape
    xp = x[:, :, :h // 2 * 2, :w // 2 * 2].reshape(
        n, c, h // 2, 2, w // 2, 2).max(axis=(3, 5))          # MaxPool2d(2)
    y = _ref_block(xp, p["w1"], p["b1"], p["g1"], p["be1"], mimic)
    return _ref_block(y, p["w2"], p["b2"], p["g2"], p["be2"], mimic)


# ---------------------------------------------------------------------------
if __name__ == "__main__":
    N, IN_CH, OUT_CH, H, W = 2, 4, 8, 16, 16

    key = jax.random.PRNGKey(0)
    kx, kw1, kb1, kw2, kb2 = jax.random.split(key, 5)

    x = jax.random.normal(kx, (N, IN_CH, H, W), jnp.float32)

    # Deterministic synthetic parameters (shapes from Down.__init__).
    params = {
        "w1": 0.1 * jax.random.normal(kw1, (OUT_CH, IN_CH, 3, 3), jnp.float32),
        "b1": 0.1 * jax.random.normal(kb1, (OUT_CH,), jnp.float32),
        "g1": jnp.ones((OUT_CH,), jnp.float32),    # BatchNorm weight init
        "be1": jnp.zeros((OUT_CH,), jnp.float32),  # BatchNorm bias init
        "w2": 0.1 * jax.random.normal(kw2, (OUT_CH, OUT_CH, 3, 3), jnp.float32),
        "b2": 0.1 * jax.random.normal(kb2, (OUT_CH,), jnp.float32),
        "g2": jnp.ones((OUT_CH,), jnp.float32),
        "be2": jnp.zeros((OUT_CH,), jnp.float32),
    }

    try:
        out = jax.block_until_ready(
            down_forward(x, params, single_buffer_weights=True))
    except Exception:
        # Fallback if this JAX version rejects pl.Buffered(1) on the weight block.
        out = jax.block_until_ready(
            down_forward(x, params, single_buffer_weights=False))

    assert out.shape == (N, OUT_CH, H // 2, W // 2), out.shape

    # Tight check vs a reference that mimics the bf16 matmul inputs / bf16 y storage.
    ref16 = jax.block_until_ready(_ref_down(x, params, mimic=True))
    assert jnp.allclose(out, ref16, atol=1e-2, rtol=1e-2), (
        float(jnp.max(jnp.abs(out - ref16))))
    # Loose sanity check vs the full-f32 module semantics.
    ref32 = jax.block_until_ready(_ref_down(x, params, mimic=False))
    assert jnp.allclose(out, ref32, atol=1e-1, rtol=1e-1), (
        float(jnp.max(jnp.abs(out - ref32))))

    print("KERNEL_OK")
</pallas_src>

<mosaic_0001>
module attributes {stable_mosaic.version = 11 : i64} {
  func.func @_conv_stats_kernel(%arg0: i32, %arg1: memref<1x10x10x4xbf16, #tpu.memory_space<vmem>>, %arg2: memref<9x4x8xbf16, #tpu.memory_space<vmem>>, %arg3: memref<1x8xf32, #tpu.memory_space<vmem>>, %arg4: memref<1x8x8x8xbf16, #tpu.memory_space<vmem>>, %arg5: memref<1x2x8xf32, #tpu.memory_space<vmem>>) attributes {dimension_semantics = [#tpu.dimension_semantics<parallel>], iteration_bounds = array<i64: 2>, scalar_prefetch = 0 : i64, scratch_operands = 0 : i64, tpu.core_type = #tpu.core_type<tc>, window_params = [{transform_indices = @transform_0, window_bounds = array<i64: 1, 10, 10, 4>}, {pipeline_mode = #tpu.pipeline_mode<synchronous>, transform_indices = @transform_1, window_bounds = array<i64: 9, 4, 8>}, {pipeline_mode = #tpu.pipeline_mode<synchronous>, transform_indices = @transform_2, window_bounds = array<i64: 1, 8>}, {transform_indices = @transform_3, window_bounds = array<i64: 1, 8, 8, 8>}, {transform_indices = @transform_4, window_bounds = array<i64: 1, 2, 8>}]} {
    %cst = arith.constant 0.000000e+00 : f32
    %0 = vector.broadcast %cst : f32 to vector<64x8xf32>
    %c0 = arith.constant 0 : index
    %c0_0 = arith.constant 0 : index
    %c0_1 = arith.constant 0 : index
    %c0_2 = arith.constant 0 : index
    %1 = vector.load %arg1[%c0, %c0_0, %c0_1, %c0_2] : memref<1x10x10x4xbf16, #tpu.memory_space<vmem>>, vector<1x8x8x4xbf16>
    %2 = vector.shape_cast %1 : vector<1x8x8x4xbf16> to vector<8x8x4xbf16>
    %3 = vector.shape_cast %2 : vector<8x8x4xbf16> to vector<64x4xbf16>
    %c0_3 = arith.constant 0 : index
    %c0_4 = arith.constant 0 : index
    %c0_5 = arith.constant 0 : index
    %4 = vector.load %arg2[%c0_3, %c0_4, %c0_5] : memref<9x4x8xbf16, #tpu.memory_space<vmem>>, vector<1x4x8xbf16>
    %5 = vector.shape_cast %4 : vector<1x4x8xbf16> to vector<4x8xbf16>
    %cst_6 = arith.constant dense<0.000000e+00> : vector<64x8xf32>
    %6 = tpu.matmul %3, %5, %cst_6 {dimension_numbers = #tpu.dot_dimension_numbers<[1], [0], [0], [1], [0, 0, 1, 1], [], []>} : vector<64x4xbf16>, vector<4x8xbf16>, vector<64x8xf32> -> vector<64x8xf32>
    %7 = arith.addf %0, %6 : vector<64x8xf32>
    %c0_7 = arith.constant 0 : index
    %c0_8 = arith.constant 0 : index
    %c1 = arith.constant 1 : index
    %c0_9 = arith.constant 0 : index
    %8 = vector.load %arg1[%c0_7, %c0_8, %c1, %c0_9] : memref<1x10x10x4xbf16, #tpu.memory_space<vmem>>, vector<1x8x8x4xbf16>
    %9 = vector.shape_cast %8 : vector<1x8x8x4xbf16> to vector<8x8x4xbf16>
    %10 = vector.shape_cast %9 : vector<8x8x4xbf16> to vector<64x4xbf16>
    %c1_10 = arith.constant 1 : index
    %c0_11 = arith.constant 0 : index
    %c0_12 = arith.constant 0 : index
    %11 = vector.load %arg2[%c1_10, %c0_11, %c0_12] : memref<9x4x8xbf16, #tpu.memory_space<vmem>>, vector<1x4x8xbf16>
    %12 = vector.shape_cast %11 : vector<1x4x8xbf16> to vector<4x8xbf16>
    %cst_13 = arith.constant dense<0.000000e+00> : vector<64x8xf32>
    %13 = tpu.matmul %10, %12, %cst_13 {dimension_numbers = #tpu.dot_dimension_numbers<[1], [0], [0], [1], [0, 0, 1, 1], [], []>} : vector<64x4xbf16>, vector<4x8xbf16>, vector<64x8xf32> -> vector<64x8xf32>
    %14 = arith.addf %7, %13 : vector<64x8xf32>
    %c0_14 = arith.constant 0 : index
    %c0_15 = arith.constant 0 : index
    %c2 = arith.constant 2 : index
    %c0_16 = arith.constant 0 : index
    %15 = vector.load %arg1[%c0_14, %c0_15, %c2, %c0_16] : memref<1x10x10x4xbf16, #tpu.memory_space<vmem>>, vector<1x8x8x4xbf16>
    %16 = vector.shape_cast %15 : vector<1x8x8x4xbf16> to vector<8x8x4xbf16>
    %17 = vector.shape_cast %16 : vector<8x8x4xbf16> to vector<64x4xbf16>
    %c2_17 = arith.constant 2 : index
    %c0_18 = arith.constant 0 : index
    %c0_19 = arith.constant 0 : index
    %18 = vector.load %arg2[%c2_17, %c0_18, %c0_19] : memref<9x4x8xbf16, #tpu.memory_space<vmem>>, vector<1x4x8xbf16>
    %19 = vector.shape_cast %18 : vector<1x4x8xbf16> to vector<4x8xbf16>
    %cst_20 = arith.constant dense<0.000000e+00> : vector<64x8xf32>
    %20 = tpu.matmul %17, %19, %cst_20 {dimension_numbers = #tpu.dot_dimension_numbers<[1], [0], [0], [1], [0, 0, 1, 1], [], []>} : vector<64x4xbf16>, vector<4x8xbf16>, vector<64x8xf32> -> vector<64x8xf32>
    %21 = arith.addf %14, %20 : vector<64x8xf32>
    %c0_21 = arith.constant 0 : index
    %c1_22 = arith.constant 1 : index
    %c0_23 = arith.constant 0 : index
    %c0_24 = arith.constant 0 : index
    %22 = vector.load %arg1[%c0_21, %c1_22, %c0_23, %c0_24] : memref<1x10x10x4xbf16, #tpu.memory_space<vmem>>, vector<1x8x8x4xbf16>
    %23 = vector.shape_cast %22 : vector<1x8x8x4xbf16> to vector<8x8x4xbf16>
    %24 = vector.shape_cast %23 : vector<8x8x4xbf16> to vector<64x4xbf16>
    %c3 = arith.constant 3 : index
    %c0_25 = arith.constant 0 : index
    %c0_26 = arith.constant 0 : index
    %25 = vector.load %arg2[%c3, %c0_25, %c0_26] : memref<9x4x8xbf16, #tpu.memory_space<vmem>>, vector<1x4x8xbf16>
    %26 = vector.shape_cast %25 : vector<1x4x8xbf16> to vector<4x8xbf16>
    %cst_27 = arith.constant dense<0.000000e+00> : vector<64x8xf32>
    %27 = tpu.matmul %24, %26, %cst_27 {dimension_numbers = #tpu.dot_dimension_numbers<[1], [0], [0], [1], [0, 0, 1, 1], [], []>} : vector<64x4xbf16>, vector<4x8xbf16>, vector<64x8xf32> -> vector<64x8xf32>
    %28 = arith.addf %21, %27 : vector<64x8xf32>
    %c0_28 = arith.constant 0 : index
    %c1_29 = arith.constant 1 : index
    %c1_30 = arith.constant 1 : index
    %c0_31 = arith.constant 0 : index
    %29 = vector.load %arg1[%c0_28, %c1_29, %c1_30, %c0_31] : memref<1x10x10x4xbf16, #tpu.memory_space<vmem>>, vector<1x8x8x4xbf16>
    %30 = vector.shape_cast %29 : vector<1x8x8x4xbf16> to vector<8x8x4xbf16>
    %31 = vector.shape_cast %30 : vector<8x8x4xbf16> to vector<64x4xbf16>
    %c4 = arith.constant 4 : index
    %c0_32 = arith.constant 0 : index
    %c0_33 = arith.constant 0 : index
    %32 = vector.load %arg2[%c4, %c0_32, %c0_33] : memref<9x4x8xbf16, #tpu.memory_space<vmem>>, vector<1x4x8xbf16>
    %33 = vector.shape_cast %32 : vector<1x4x8xbf16> to vector<4x8xbf16>
    %cst_34 = arith.constant dense<0.000000e+00> : vector<64x8xf32>
    %34 = tpu.matmul %31, %33, %cst_34 {dimension_numbers = #tpu.dot_dimension_numbers<[1], [0], [0], [1], [0, 0, 1, 1], [], []>} : vector<64x4xbf16>, vector<4x8xbf16>, vector<64x8xf32> -> vector<64x8xf32>
    %35 = arith.addf %28, %34 : vector<64x8xf32>
    %c0_35 = arith.constant 0 : index
    %c1_36 = arith.constant 1 : index
    %c2_37 = arith.constant 2 : index
    %c0_38 = arith.constant 0 : index
    %36 = vector.load %arg1[%c0_35, %c1_36, %c2_37, %c0_38] : memref<1x10x10x4xbf16, #tpu.memory_space<vmem>>, vector<1x8x8x4xbf16>
    %37 = vector.shape_cast %36 : vector<1x8x8x4xbf16> to vector<8x8x4xbf16>
    %38 = vector.shape_cast %37 : vector<8x8x4xbf16> to vector<64x4xbf16>
    %c5 = arith.constant 5 : index
    %c0_39 = arith.constant 0 : index
    %c0_40 = arith.constant 0 : index
    %39 = vector.load %arg2[%c5, %c0_39, %c0_40] : memref<9x4x8xbf16, #tpu.memory_space<vmem>>, vector<1x4x8xbf16>
    %40 = vector.shape_cast %39 : vector<1x4x8xbf16> to vector<4x8xbf16>
    %cst_41 = arith.constant dense<0.000000e+00> : vector<64x8xf32>
    %41 = tpu.matmul %38, %40, %cst_41 {dimension_numbers = #tpu.dot_dimension_numbers<[1], [0], [0], [1], [0, 0, 1, 1], [], []>} : vector<64x4xbf16>, vector<4x8xbf16>, vector<64x8xf32> -> vector<64x8xf32>
    %42 = arith.addf %35, %41 : vector<64x8xf32>
    %c0_42 = arith.constant 0 : index
    %c2_43 = arith.constant 2 : index
    %c0_44 = arith.constant 0 : index
    %c0_45 = arith.constant 0 : index
    %43 = vector.load %arg1[%c0_42, %c2_43, %c0_44, %c0_45] : memref<1x10x10x4xbf16, #tpu.memory_space<vmem>>, vector<1x8x8x4xbf16>
    %44 = vector.shape_cast %43 : vector<1x8x8x4xbf16> to vector<8x8x4xbf16>
    %45 = vector.shape_cast %44 : vector<8x8x4xbf16> to vector<64x4xbf16>
    %c6 = arith.constant 6 : index
    %c0_46 = arith.constant 0 : index
    %c0_47 = arith.constant 0 : index
    %46 = vector.load %arg2[%c6, %c0_46, %c0_47] : memref<9x4x8xbf16, #tpu.memory_space<vmem>>, vector<1x4x8xbf16>
    %47 = vector.shape_cast %46 : vector<1x4x8xbf16> to vector<4x8xbf16>
    %cst_48 = arith.constant dense<0.000000e+00> : vector<64x8xf32>
    %48 = tpu.matmul %45, %47, %cst_48 {dimension_numbers = #tpu.dot_dimension_numbers<[1], [0], [0], [1], [0, 0, 1, 1], [], []>} : vector<64x4xbf16>, vector<4x8xbf16>, vector<64x8xf32> -> vector<64x8xf32>
    %49 = arith.addf %42, %48 : vector<64x8xf32>
    %c0_49 = arith.constant 0 : index
    %c2_50 = arith.constant 2 : index
    %c1_51 = arith.constant 1 : index
    %c0_52 = arith.constant 0 : index
    %50 = vector.load %arg1[%c0_49, %c2_50, %c1_51, %c0_52] : memref<1x10x10x4xbf16, #tpu.memory_space<vmem>>, vector<1x8x8x4xbf16>
    %51 = vector.shape_cast %50 : vector<1x8x8x4xbf16> to vector<8x8x4xbf16>
    %52 = vector.shape_cast %51 : vector<8x8x4xbf16> to vector<64x4xbf16>
    %c7 = arith.constant 7 : index
    %c0_53 = arith.constant 0 : index
    %c0_54 = arith.constant 0 : index
    %53 = vector.load %arg2[%c7, %c0_53, %c0_54] : memref<9x4x8xbf16, #tpu.memory_space<vmem>>, vector<1x4x8xbf16>
    %54 = vector.shape_cast %53 : vector<1x4x8xbf16> to vector<4x8xbf16>
    %cst_55 = arith.constant dense<0.000000e+00> : vector<64x8xf32>
    %55 = tpu.matmul %52, %54, %cst_55 {dimension_numbers = #tpu.dot_dimension_numbers<[1], [0], [0], [1], [0, 0, 1, 1], [], []>} : vector<64x4xbf16>, vector<4x8xbf16>, vector<64x8xf32> -> vector<64x8xf32>
    %56 = arith.addf %49, %55 : vector<64x8xf32>
    %c0_56 = arith.constant 0 : index
    %c2_57 = arith.constant 2 : index
    %c2_58 = arith.constant 2 : index
    %c0_59 = arith.constant 0 : index
    %57 = vector.load %arg1[%c0_56, %c2_57, %c2_58, %c0_59] : memref<1x10x10x4xbf16, #tpu.memory_space<vmem>>, vector<1x8x8x4xbf16>
    %58 = vector.shape_cast %57 : vector<1x8x8x4xbf16> to vector<8x8x4xbf16>
    %59 = vector.shape_cast %58 : vector<8x8x4xbf16> to vector<64x4xbf16>
    %c8 = arith.constant 8 : index
    %c0_60 = arith.constant 0 : index
    %c0_61 = arith.constant 0 : index
    %60 = vector.load %arg2[%c8, %c0_60, %c0_61] : memref<9x4x8xbf16, #tpu.memory_space<vmem>>, vector<1x4x8xbf16>
    %61 = vector.shape_cast %60 : vector<1x4x8xbf16> to vector<4x8xbf16>
    %cst_62 = arith.constant dense<0.000000e+00> : vector<64x8xf32>
    %62 = tpu.matmul %59, %61, %cst_62 {dimension_numbers = #tpu.dot_dimension_numbers<[1], [0], [0], [1], [0, 0, 1, 1], [], []>} : vector<64x4xbf16>, vector<4x8xbf16>, vector<64x8xf32> -> vector<64x8xf32>
    %63 = arith.addf %56, %62 : vector<64x8xf32>
    %c0_63 = arith.constant 0 : index
    %c0_64 = arith.constant 0 : index
    %64 = vector.load %arg3[%c0_63, %c0_64] : memref<1x8xf32, #tpu.memory_space<vmem>>, vector<1x8xf32>
    %65 = vector.broadcast %64 : vector<1x8xf32> to vector<64x8xf32>
    %66 = arith.addf %63, %65 : vector<64x8xf32>
    %67 = vector.shape_cast %66 : vector<64x8xf32> to vector<1x8x8x8xf32>
    %68 = arith.truncf %67 : vector<1x8x8x8xf32> to vector<1x8x8x8xbf16>
    %c0_65 = arith.constant 0 : index
    %c0_66 = arith.constant 0 : index
    %c0_67 = arith.constant 0 : index
    %c0_68 = arith.constant 0 : index
    %69 = vector.load %arg4[%c0_65, %c0_66, %c0_67, %c0_68] : memref<1x8x8x8xbf16, #tpu.memory_space<vmem>>, vector<1x8x8x8xbf16>
    tpu.vector_store %arg4[%c0_65, %c0_66, %c0_67, %c0_68], %68 {strides = array<i32>} : memref<1x8x8x8xbf16, #tpu.memory_space<vmem>>, vector<1x8x8x8xbf16>,
    %cst_69 = arith.constant dense<0.000000e+00> : vector<8xf32>
    %70 = vector.multi_reduction <add>, %66, %cst_69 [0] : vector<64x8xf32> to vector<8xf32>
    %71 = vector.shape_cast %70 : vector<8xf32> to vector<1x8xf32>
    %cst_70 = arith.constant 1.562500e-02 : f32
    %72 = vector.broadcast %cst_70 : f32 to vector<1x8xf32>
    %73 = arith.mulf %71, %72 : vector<1x8xf32>
    %74 = vector.broadcast %73 : vector<1x8xf32> to vector<64x8xf32>
    %75 = arith.subf %66, %74 : vector<64x8xf32>
    %76 = arith.mulf %75, %75 : vector<64x8xf32>
    %cst_71 = arith.constant dense<0.000000e+00> : vector<8xf32>
    %77 = vector.multi_reduction <add>, %76, %cst_71 [0] : vector<64x8xf32> to vector<8xf32>
    %78 = vector.shape_cast %77 : vector<8xf32> to vector<1x8xf32>
    %79 = tpu.concatenate %71, %78 in 0 : vector<1x8xf32>, vector<1x8xf32> -> vector<2x8xf32>
    %80 = vector.shape_cast %79 : vector<2x8xf32> to vector<1x2x8xf32>
    %c0_72 = arith.constant 0 : index
    %c0_73 = arith.constant 0 : index
    %c0_74 = arith.constant 0 : index
    %81 = vector.load %arg5[%c0_72, %c0_73, %c0_74] : memref<1x2x8xf32, #tpu.memory_space<vmem>>, vector<1x2x8xf32>
    tpu.vector_store %arg5[%c0_72, %c0_73, %c0_74], %80 {strides = array<i32>} : memref<1x2x8xf32, #tpu.memory_space<vmem>>, vector<1x2x8xf32>,
    return
  }
  func.func @transform_0(%arg0: i32) -> (i32, i32, i32, i32) {
    %c0_i32 = arith.constant 0 : i32
    %c0_i32_0 = arith.constant 0 : i32
    %c0_i32_1 = arith.constant 0 : i32
    %c0_i32_2 = arith.constant 0 : i32
    return %arg0, %c0_i32, %c0_i32_0, %c0_i32_1 : i32, i32, i32, i32
  }
  func.func @transform_1(%arg0: i32) -> (i32, i32, i32) {
    %c0_i32 = arith.constant 0 : i32
    %c0_i32_0 = arith.constant 0 : i32
    %c0_i32_1 = arith.constant 0 : i32
    %c0_i32_2 = arith.constant 0 : i32
    return %c0_i32, %c0_i32_0, %c0_i32_1 : i32, i32, i32
  }
  func.func @transform_2(%arg0: i32) -> (i32, i32) {
    %c0_i32 = arith.constant 0 : i32
    %c0_i32_0 = arith.constant 0 : i32
    %c0_i32_1 = arith.constant 0 : i32
    return %c0_i32, %c0_i32_0 : i32, i32
  }
  func.func @transform_3(%arg0: i32) -> (i32, i32, i32, i32) {
    %c0_i32 = arith.constant 0 : i32
    %c0_i32_0 = arith.constant 0 : i32
    %c0_i32_1 = arith.constant 0 : i32
    %c0_i32_2 = arith.constant 0 : i32
    return %arg0, %c0_i32, %c0_i32_0, %c0_i32_1 : i32, i32, i32, i32
  }
  func.func @transform_4(%arg0: i32) -> (i32, i32, i32) {
    %c0_i32 = arith.constant 0 : i32
    %c0_i32_0 = arith.constant 0 : i32
    %c0_i32_1 = arith.constant 0 : i32
    return %arg0, %c0_i32, %c0_i32_0 : i32, i32, i32
  }
}

module attributes {stable_mosaic.version = 11 : i64} {
  func.func @_conv_stats_kernel(%arg0: i32, %arg1: memref<1x10x10x8xbf16, #tpu.memory_space<vmem>>, %arg2: memref<9x8x8xbf16, #tpu.memory_space<vmem>>, %arg3: memref<1x8xf32, #tpu.memory_space<vmem>>, %arg4: memref<1x8x8x8xbf16, #tpu.memory_space<vmem>>, %arg5: memref<1x2x8xf32, #tpu.memory_space<vmem>>) attributes {dimension_semantics = [#tpu.dimension_semantics<parallel>], iteration_bounds = array<i64: 2>, scalar_prefetch = 0 : i64, scratch_operands = 0 : i64, tpu.core_type = #tpu.core_type<tc>, window_params = [{transform_indices = @transform_0, window_bounds = array<i64: 1, 10, 10, 8>}, {pipeline_mode = #tpu.pipeline_mode<synchronous>, transform_indices = @transform_1, window_bounds = array<i64: 9, 8, 8>}, {pipeline_mode = #tpu.pipeline_mode<synchronous>, transform_indices = @transform_2, window_bounds = array<i64: 1, 8>}, {transform_indices = @transform_3, window_bounds = array<i64: 1, 8, 8, 8>}, {transform_indices = @transform_4, window_bounds = array<i64: 1, 2, 8>}]} {
    %cst = arith.constant 0.000000e+00 : f32
    %0 = vector.broadcast %cst : f32 to vector<64x8xf32>
    %c0 = arith.constant 0 : index
    %c0_0 = arith.constant 0 : index
    %c0_1 = arith.constant 0 : index
    %c0_2 = arith.constant 0 : index
    %1 = vector.load %arg1[%c0, %c0_0, %c0_1, %c0_2] : memref<1x10x10x8xbf16, #tpu.memory_space<vmem>>, vector<1x8x8x8xbf16>
    %2 = vector.shape_cast %1 : vector<1x8x8x8xbf16> to vector<8x8x8xbf16>
    %3 = vector.shape_cast %2 : vector<8x8x8xbf16> to vector<64x8xbf16>
    %c0_3 = arith.constant 0 : index
    %c0_4 = arith.constant 0 : index
    %c0_5 = arith.constant 0 : index
    %4 = vector.load %arg2[%c0_3, %c0_4, %c0_5] : memref<9x8x8xbf16, #tpu.memory_space<vmem>>, vector<1x8x8xbf16>
    %5 = vector.shape_cast %4 : vector<1x8x8xbf16> to vector<8x8xbf16>
    %cst_6 = arith.constant dense<0.000000e+00> : vector<64x8xf32>
    %6 = tpu.matmul %3, %5, %cst_6 {dimension_numbers = #tpu.dot_dimension_numbers<[1], [0], [0], [1], [0, 0, 1, 1], [], []>} : vector<64x8xbf16>, vector<8x8xbf16>, vector<64x8xf32> -> vector<64x8xf32>
    %7 = arith.addf %0, %6 : vector<64x8xf32>
    %c0_7 = arith.constant 0 : index
    %c0_8 = arith.constant 0 : index
    %c1 = arith.constant 1 : index
    %c0_9 = arith.constant 0 : index
    %8 = vector.load %arg1[%c0_7, %c0_8, %c1, %c0_9] : memref<1x10x10x8xbf16, #tpu.memory_space<vmem>>, vector<1x8x8x8xbf16>
    %9 = vector.shape_cast %8 : vector<1x8x8x8xbf16> to vector<8x8x8xbf16>
    %10 = vector.shape_cast %9 : vector<8x8x8xbf16> to vector<64x8xbf16>
    %c1_10 = arith.constant 1 : index
    %c0_11 = arith.constant 0 : index
    %c0_12 = arith.constant 0 : index
    %11 = vector.load %arg2[%c1_10, %c0_11, %c0_12] : memref<9x8x8xbf16, #tpu.memory_space<vmem>>, vector<1x8x8xbf16>
    %12 = vector.shape_cast %11 : vector<1x8x8xbf16> to vector<8x8xbf16>
    %cst_13 = arith.constant dense<0.000000e+00> : vector<64x8xf32>
    %13 = tpu.matmul %10, %12, %cst_13 {dimension_numbers = #tpu.dot_dimension_numbers<[1], [0], [0], [1], [0, 0, 1, 1], [], []>} : vector<64x8xbf16>, vector<8x8xbf16>, vector<64x8xf32> -> vector<64x8xf32>
    %14 = arith.addf %7, %13 : vector<64x8xf32>
    %c0_14 = arith.constant 0 : index
    %c0_15 = arith.constant 0 : index
    %c2 = arith.constant 2 : index
    %c0_16 = arith.constant 0 : index
    %15 = vector.load %arg1[%c0_14, %c0_15, %c2, %c0_16] : memref<1x10x10x8xbf16, #tpu.memory_space<vmem>>, vector<1x8x8x8xbf16>
    %16 = vector.shape_cast %15 : vector<1x8x8x8xbf16> to vector<8x8x8xbf16>
    %17 = vector.shape_cast %16 : vector<8x8x8xbf16> to vector<64x8xbf16>
    %c2_17 = arith.constant 2 : index
    %c0_18 = arith.constant 0 : index
    %c0_19 = arith.constant 0 : index
    %18 = vector.load %arg2[%c2_17, %c0_18, %c0_19] : memref<9x8x8xbf16, #tpu.memory_space<vmem>>, vector<1x8x8xbf16>
    %19 = vector.shape_cast %18 : vector<1x8x8xbf16> to vector<8x8xbf16>
    %cst_20 = arith.constant dense<0.000000e+00> : vector<64x8xf32>
    %20 = tpu.matmul %17, %19, %cst_20 {dimension_numbers = #tpu.dot_dimension_numbers<[1], [0], [0], [1], [0, 0, 1, 1], [], []>} : vector<64x8xbf16>, vector<8x8xbf16>, vector<64x8xf32> -> vector<64x8xf32>
    %21 = arith.addf %14, %20 : vector<64x8xf32>
    %c0_21 = arith.constant 0 : index
    %c1_22 = arith.constant 1 : index
    %c0_23 = arith.constant 0 : index
    %c0_24 = arith.constant 0 : index
    %22 = vector.load %arg1[%c0_21, %c1_22, %c0_23, %c0_24] : memref<1x10x10x8xbf16, #tpu.memory_space<vmem>>, vector<1x8x8x8xbf16>
    %23 = vector.shape_cast %22 : vector<1x8x8x8xbf16> to vector<8x8x8xbf16>
    %24 = vector.shape_cast %23 : vector<8x8x8xbf16> to vector<64x8xbf16>
    %c3 = arith.constant 3 : index
    %c0_25 = arith.constant 0 : index
    %c0_26 = arith.constant 0 : index
    %25 = vector.load %arg2[%c3, %c0_25, %c0_26] : memref<9x8x8xbf16, #tpu.memory_space<vmem>>, vector<1x8x8xbf16>
    %26 = vector.shape_cast %25 : vector<1x8x8xbf16> to vector<8x8xbf16>
    %cst_27 = arith.constant dense<0.000000e+00> : vector<64x8xf32>
    %27 = tpu.matmul %24, %26, %cst_27 {dimension_numbers = #tpu.dot_dimension_numbers<[1], [0], [0], [1], [0, 0, 1, 1], [], []>} : vector<64x8xbf16>, vector<8x8xbf16>, vector<64x8xf32> -> vector<64x8xf32>
    %28 = arith.addf %21, %27 : vector<64x8xf32>
    %c0_28 = arith.constant 0 : index
    %c1_29 = arith.constant 1 : index
    %c1_30 = arith.constant 1 : index
    %c0_31 = arith.constant 0 : index
    %29 = vector.load %arg1[%c0_28, %c1_29, %c1_30, %c0_31] : memref<1x10x10x8xbf16, #tpu.memory_space<vmem>>, vector<1x8x8x8xbf16>
    %30 = vector.shape_cast %29 : vector<1x8x8x8xbf16> to vector<8x8x8xbf16>
    %31 = vector.shape_cast %30 : vector<8x8x8xbf16> to vector<64x8xbf16>
    %c4 = arith.constant 4 : index
    %c0_32 = arith.constant 0 : index
    %c0_33 = arith.constant 0 : index
    %32 = vector.load %arg2[%c4, %c0_32, %c0_33] : memref<9x8x8xbf16, #tpu.memory_space<vmem>>, vector<1x8x8xbf16>
    %33 = vector.shape_cast %32 : vector<1x8x8xbf16> to vector<8x8xbf16>
    %cst_34 = arith.constant dense<0.000000e+00> : vector<64x8xf32>
    %34 = tpu.matmul %31, %33, %cst_34 {dimension_numbers = #tpu.dot_dimension_numbers<[1], [0], [0], [1], [0, 0, 1, 1], [], []>} : vector<64x8xbf16>, vector<8x8xbf16>, vector<64x8xf32> -> vector<64x8xf32>
    %35 = arith.addf %28, %34 : vector<64x8xf32>
    %c0_35 = arith.constant 0 : index
    %c1_36 = arith.constant 1 : index
    %c2_37 = arith.constant 2 : index
    %c0_38 = arith.constant 0 : index
    %36 = vector.load %arg1[%c0_35, %c1_36, %c2_37, %c0_38] : memref<1x10x10x8xbf16, #tpu.memory_space<vmem>>, vector<1x8x8x8xbf16>
    %37 = vector.shape_cast %36 : vector<1x8x8x8xbf16> to vector<8x8x8xbf16>
    %38 = vector.shape_cast %37 : vector<8x8x8xbf16> to vector<64x8xbf16>
    %c5 = arith.constant 5 : index
    %c0_39 = arith.constant 0 : index
    %c0_40 = arith.constant 0 : index
    %39 = vector.load %arg2[%c5, %c0_39, %c0_40] : memref<9x8x8xbf16, #tpu.memory_space<vmem>>, vector<1x8x8xbf16>
    %40 = vector.shape_cast %39 : vector<1x8x8xbf16> to vector<8x8xbf16>
    %cst_41 = arith.constant dense<0.000000e+00> : vector<64x8xf32>
    %41 = tpu.matmul %38, %40, %cst_41 {dimension_numbers = #tpu.dot_dimension_numbers<[1], [0], [0], [1], [0, 0, 1, 1], [], []>} : vector<64x8xbf16>, vector<8x8xbf16>, vector<64x8xf32> -> vector<64x8xf32>
    %42 = arith.addf %35, %41 : vector<64x8xf32>
    %c0_42 = arith.constant 0 : index
    %c2_43 = arith.constant 2 : index
    %c0_44 = arith.constant 0 : index
    %c0_45 = arith.constant 0 : index
    %43 = vector.load %arg1[%c0_42, %c2_43, %c0_44, %c0_45] : memref<1x10x10x8xbf16, #tpu.memory_space<vmem>>, vector<1x8x8x8xbf16>
    %44 = vector.shape_cast %43 : vector<1x8x8x8xbf16> to vector<8x8x8xbf16>
    %45 = vector.shape_cast %44 : vector<8x8x8xbf16> to vector<64x8xbf16>
    %c6 = arith.constant 6 : index
    %c0_46 = arith.constant 0 : index
    %c0_47 = arith.constant 0 : index
    %46 = vector.load %arg2[%c6, %c0_46, %c0_47] : memref<9x8x8xbf16, #tpu.memory_space<vmem>>, vector<1x8x8xbf16>
    %47 = vector.shape_cast %46 : vector<1x8x8xbf16> to vector<8x8xbf16>
    %cst_48 = arith.constant dense<0.000000e+00> : vector<64x8xf32>
    %48 = tpu.matmul %45, %47, %cst_48 {dimension_numbers = #tpu.dot_dimension_numbers<[1], [0], [0], [1], [0, 0, 1, 1], [], []>} : vector<64x8xbf16>, vector<8x8xbf16>, vector<64x8xf32> -> vector<64x8xf32>
    %49 = arith.addf %42, %48 : vector<64x8xf32>
    %c0_49 = arith.constant 0 : index
    %c2_50 = arith.constant 2 : index
    %c1_51 = arith.constant 1 : index
    %c0_52 = arith.constant 0 : index
    %50 = vector.load %arg1[%c0_49, %c2_50, %c1_51, %c0_52] : memref<1x10x10x8xbf16, #tpu.memory_space<vmem>>, vector<1x8x8x8xbf16>
    %51 = vector.shape_cast %50 : vector<1x8x8x8xbf16> to vector<8x8x8xbf16>
    %52 = vector.shape_cast %51 : vector<8x8x8xbf16> to vector<64x8xbf16>
    %c7 = arith.constant 7 : index
    %c0_53 = arith.constant 0 : index
    %c0_54 = arith.constant 0 : index
    %53 = vector.load %arg2[%c7, %c0_53, %c0_54] : memref<9x8x8xbf16, #tpu.memory_space<vmem>>, vector<1x8x8xbf16>
    %54 = vector.shape_cast %53 : vector<1x8x8xbf16> to vector<8x8xbf16>
    %cst_55 = arith.constant dense<0.000000e+00> : vector<64x8xf32>
    %55 = tpu.matmul %52, %54, %cst_55 {dimension_numbers = #tpu.dot_dimension_numbers<[1], [0], [0], [1], [0, 0, 1, 1], [], []>} : vector<64x8xbf16>, vector<8x8xbf16>, vector<64x8xf32> -> vector<64x8xf32>
    %56 = arith.addf %49, %55 : vector<64x8xf32>
    %c0_56 = arith.constant 0 : index
    %c2_57 = arith.constant 2 : index
    %c2_58 = arith.constant 2 : index
    %c0_59 = arith.constant 0 : index
    %57 = vector.load %arg1[%c0_56, %c2_57, %c2_58, %c0_59] : memref<1x10x10x8xbf16, #tpu.memory_space<vmem>>, vector<1x8x8x8xbf16>
    %58 = vector.shape_cast %57 : vector<1x8x8x8xbf16> to vector<8x8x8xbf16>
    %59 = vector.shape_cast %58 : vector<8x8x8xbf16> to vector<64x8xbf16>
    %c8 = arith.constant 8 : index
    %c0_60 = arith.constant 0 : index
    %c0_61 = arith.constant 0 : index
    %60 = vector.load %arg2[%c8, %c0_60, %c0_61] : memref<9x8x8xbf16, #tpu.memory_space<vmem>>, vector<1x8x8xbf16>
    %61 = vector.shape_cast %60 : vector<1x8x8xbf16> to vector<8x8xbf16>
    %cst_62 = arith.constant dense<0.000000e+00> : vector<64x8xf32>
    %62 = tpu.matmul %59, %61, %cst_62 {dimension_numbers = #tpu.dot_dimension_numbers<[1], [0], [0], [1], [0, 0, 1, 1], [], []>} : vector<64x8xbf16>, vector<8x8xbf16>, vector<64x8xf32> -> vector<64x8xf32>
    %63 = arith.addf %56, %62 : vector<64x8xf32>
    %c0_63 = arith.constant 0 : index
    %c0_64 = arith.constant 0 : index
    %64 = vector.load %arg3[%c0_63, %c0_64] : memref<1x8xf32, #tpu.memory_space<vmem>>, vector<1x8xf32>
    %65 = vector.broadcast %64 : vector<1x8xf32> to vector<64x8xf32>
    %66 = arith.addf %63, %65 : vector<64x8xf32>
    %67 = vector.shape_cast %66 : vector<64x8xf32> to vector<1x8x8x8xf32>
    %68 = arith.truncf %67 : vector<1x8x8x8xf32> to vector<1x8x8x8xbf16>
    %c0_65 = arith.constant 0 : index
    %c0_66 = arith.constant 0 : index
    %c0_67 = arith.constant 0 : index
    %c0_68 = arith.constant 0 : index
    %69 = vector.load %arg4[%c0_65, %c0_66, %c0_67, %c0_68] : memref<1x8x8x8xbf16, #tpu.memory_space<vmem>>, vector<1x8x8x8xbf16>
    tpu.vector_store %arg4[%c0_65, %c0_66, %c0_67, %c0_68], %68 {strides = array<i32>} : memref<1x8x8x8xbf16, #tpu.memory_space<vmem>>, vector<1x8x8x8xbf16>,
    %cst_69 = arith.constant dense<0.000000e+00> : vector<8xf32>
    %70 = vector.multi_reduction <add>, %66, %cst_69 [0] : vector<64x8xf32> to vector<8xf32>
    %71 = vector.shape_cast %70 : vector<8xf32> to vector<1x8xf32>
    %cst_70 = arith.constant 1.562500e-02 : f32
    %72 = vector.broadcast %cst_70 : f32 to vector<1x8xf32>
    %73 = arith.mulf %71, %72 : vector<1x8xf32>
    %74 = vector.broadcast %73 : vector<1x8xf32> to vector<64x8xf32>
    %75 = arith.subf %66, %74 : vector<64x8xf32>
    %76 = arith.mulf %75, %75 : vector<64x8xf32>
    %cst_71 = arith.constant dense<0.000000e+00> : vector<8xf32>
    %77 = vector.multi_reduction <add>, %76, %cst_71 [0] : vector<64x8xf32> to vector<8xf32>
    %78 = vector.shape_cast %77 : vector<8xf32> to vector<1x8xf32>
    %79 = tpu.concatenate %71, %78 in 0 : vector<1x8xf32>, vector<1x8xf32> -> vector<2x8xf32>
    %80 = vector.shape_cast %79 : vector<2x8xf32> to vector<1x2x8xf32>
    %c0_72 = arith.constant 0 : index
    %c0_73 = arith.constant 0 : index
    %c0_74 = arith.constant 0 : index
    %81 = vector.load %arg5[%c0_72, %c0_73, %c0_74] : memref<1x2x8xf32, #tpu.memory_space<vmem>>, vector<1x2x8xf32>
    tpu.vector_store %arg5[%c0_72, %c0_73, %c0_74], %80 {strides = array<i32>} : memref<1x2x8xf32, #tpu.memory_space<vmem>>, vector<1x2x8xf32>,
    return
  }
  func.func @transform_0(%arg0: i32) -> (i32, i32, i32, i32) {
    %c0_i32 = arith.constant 0 : i32
    %c0_i32_0 = arith.constant 0 : i32
    %c0_i32_1 = arith.constant 0 : i32
    %c0_i32_2 = arith.constant 0 : i32
    return %arg0, %c0_i32, %c0_i32_0, %c0_i32_1 : i32, i32, i32, i32
  }
  func.func @transform_1(%arg0: i32) -> (i32, i32, i32) {
    %c0_i32 = arith.constant 0 : i32
    %c0_i32_0 = arith.constant 0 : i32
    %c0_i32_1 = arith.constant 0 : i32
    %c0_i32_2 = arith.constant 0 : i32
    return %c0_i32, %c0_i32_0, %c0_i32_1 : i32, i32, i32
  }
  func.func @transform_2(%arg0: i32) -> (i32, i32) {
    %c0_i32 = arith.constant 0 : i32
    %c0_i32_0 = arith.constant 0 : i32
    %c0_i32_1 = arith.constant 0 : i32
    return %c0_i32, %c0_i32_0 : i32, i32
  }
  func.func @transform_3(%arg0: i32) -> (i32, i32, i32, i32) {
    %c0_i32 = arith.constant 0 : i32
    %c0_i32_0 = arith.constant 0 : i32
    %c0_i32_1 = arith.constant 0 : i32
    %c0_i32_2 = arith.constant 0 : i32
    return %arg0, %c0_i32, %c0_i32_0, %c0_i32_1 : i32, i32, i32, i32
  }
  func.func @transform_4(%arg0: i32) -> (i32, i32, i32) {
    %c0_i32 = arith.constant 0 : i32
    %c0_i32_0 = arith.constant 0 : i32
    %c0_i32_1 = arith.constant 0 : i32
    return %arg0, %c0_i32, %c0_i32_0 : i32, i32, i32
  }
}

module attributes {stable_mosaic.version = 11 : i64} {
  func.func @_conv_stats_kernel(%arg0: i32, %arg1: memref<1x10x10x4xbf16, #tpu.memory_space<vmem>>, %arg2: memref<9x4x8xbf16, #tpu.memory_space<vmem>>, %arg3: memref<1x8xf32, #tpu.memory_space<vmem>>, %arg4: memref<1x8x8x8xbf16, #tpu.memory_space<vmem>>, %arg5: memref<1x2x8xf32, #tpu.memory_space<vmem>>) attributes {dimension_semantics = [#tpu.dimension_semantics<parallel>], iteration_bounds = array<i64: 2>, scalar_prefetch = 0 : i64, scratch_operands = 0 : i64, tpu.core_type = #tpu.core_type<tc>, window_params = [{transform_indices = @transform_0, window_bounds = array<i64: 1, 10, 10, 4>}, {pipeline_mode = #tpu.pipeline_mode<synchronous>, transform_indices = @transform_1, window_bounds = array<i64: 9, 4, 8>}, {pipeline_mode = #tpu.pipeline_mode<synchronous>, transform_indices = @transform_2, window_bounds = array<i64: 1, 8>}, {transform_indices = @transform_3, window_bounds = array<i64: 1, 8, 8, 8>}, {transform_indices = @transform_4, window_bounds = array<i64: 1, 2, 8>}]} {
    %cst = arith.constant 0.000000e+00 : f32
    %0 = vector.broadcast %cst : f32 to vector<64x8xf32>
    %c0 = arith.constant 0 : index
    %c0_0 = arith.constant 0 : index
    %c0_1 = arith.constant 0 : index
    %c0_2 = arith.constant 0 : index
    %1 = vector.load %arg1[%c0, %c0_0, %c0_1, %c0_2] : memref<1x10x10x4xbf16, #tpu.memory_space<vmem>>, vector<1x8x8x4xbf16>
    %2 = vector.shape_cast %1 : vector<1x8x8x4xbf16> to vector<8x8x4xbf16>
    %3 = vector.shape_cast %2 : vector<8x8x4xbf16> to vector<64x4xbf16>
    %c0_3 = arith.constant 0 : index
    %c0_4 = arith.constant 0 : index
    %c0_5 = arith.constant 0 : index
    %4 = vector.load %arg2[%c0_3, %c0_4, %c0_5] : memref<9x4x8xbf16, #tpu.memory_space<vmem>>, vector<1x4x8xbf16>
    %5 = vector.shape_cast %4 : vector<1x4x8xbf16> to vector<4x8xbf16>
    %cst_6 = arith.constant dense<0.000000e+00> : vector<64x8xf32>
    %6 = tpu.matmul %3, %5, %cst_6 {dimension_numbers = #tpu.dot_dimension_numbers<[1], [0], [0], [1], [0, 0, 1, 1], [], []>} : vector<64x4xbf16>, vector<4x8xbf16>, vector<64x8xf32> -> vector<64x8xf32>
    %7 = arith.addf %0, %6 : vector<64x8xf32>
    %c0_7 = arith.constant 0 : index
    %c0_8 = arith.constant 0 : index
    %c1 = arith.constant 1 : index
    %c0_9 = arith.constant 0 : index
    %8 = vector.load %arg1[%c0_7, %c0_8, %c1, %c0_9] : memref<1x10x10x4xbf16, #tpu.memory_space<vmem>>, vector<1x8x8x4xbf16>
    %9 = vector.shape_cast %8 : vector<1x8x8x4xbf16> to vector<8x8x4xbf16>
    %10 = vector.shape_cast %9 : vector<8x8x4xbf16> to vector<64x4xbf16>
    %c1_10 = arith.constant 1 : index
    %c0_11 = arith.constant 0 : index
    %c0_12 = arith.constant 0 : index
    %11 = vector.load %arg2[%c1_10, %c0_11, %c0_12] : memref<9x4x8xbf16, #tpu.memory_space<vmem>>, vector<1x4x8xbf16>
    %12 = vector.shape_cast %11 : vector<1x4x8xbf16> to vector<4x8xbf16>
    %cst_13 = arith.constant dense<0.000000e+00> : vector<64x8xf32>
    %13 = tpu.matmul %10, %12, %cst_13 {dimension_numbers = #tpu.dot_dimension_numbers<[1], [0], [0], [1], [0, 0, 1, 1], [], []>} : vector<64x4xbf16>, vector<4x8xbf16>, vector<64x8xf32> -> vector<64x8xf32>
    %14 = arith.addf %7, %13 : vector<64x8xf32>
    %c0_14 = arith.constant 0 : index
    %c0_15 = arith.constant 0 : index
    %c2 = arith.constant 2 : index
    %c0_16 = arith.constant 0 : index
    %15 = vector.load %arg1[%c0_14, %c0_15, %c2, %c0_16] : memref<1x10x10x4xbf16, #tpu.memory_space<vmem>>, vector<1x8x8x4xbf16>
    %16 = vector.shape_cast %15 : vector<1x8x8x4xbf16> to vector<8x8x4xbf16>
    %17 = vector.shape_cast %16 : vector<8x8x4xbf16> to vector<64x4xbf16>
    %c2_17 = arith.constant 2 : index
    %c0_18 = arith.constant 0 : index
    %c0_19 = arith.constant 0 : index
    %18 = vector.load %arg2[%c2_17, %c0_18, %c0_19] : memref<9x4x8xbf16, #tpu.memory_space<vmem>>, vector<1x4x8xbf16>
    %19 = vector.shape_cast %18 : vector<1x4x8xbf16> to vector<4x8xbf16>
    %cst_20 = arith.constant dense<0.000000e+00> : vector<64x8xf32>
    %20 = tpu.matmul %17, %19, %cst_20 {dimension_numbers = #tpu.dot_dimension_numbers<[1], [0], [0], [1], [0, 0, 1, 1], [], []>} : vector<64x4xbf16>, vector<4x8xbf16>, vector<64x8xf32> -> vector<64x8xf32>
    %21 = arith.addf %14, %20 : vector<64x8xf32>
    %c0_21 = arith.constant 0 : index
    %c1_22 = arith.constant 1 : index
    %c0_23 = arith.constant 0 : index
    %c0_24 = arith.constant 0 : index
    %22 = vector.load %arg1[%c0_21, %c1_22, %c0_23, %c0_24] : memref<1x10x10x4xbf16, #tpu.memory_space<vmem>>, vector<1x8x8x4xbf16>
    %23 = vector.shape_cast %22 : vector<1x8x8x4xbf16> to vector<8x8x4xbf16>
    %24 = vector.shape_cast %23 : vector<8x8x4xbf16> to vector<64x4xbf16>
    %c3 = arith.constant 3 : index
    %c0_25 = arith.constant 0 : index
    %c0_26 = arith.constant 0 : index
    %25 = vector.load %arg2[%c3, %c0_25, %c0_26] : memref<9x4x8xbf16, #tpu.memory_space<vmem>>, vector<1x4x8xbf16>
    %26 = vector.shape_cast %25 : vector<1x4x8xbf16> to vector<4x8xbf16>
    %cst_27 = arith.constant dense<0.000000e+00> : vector<64x8xf32>
    %27 = tpu.matmul %24, %26, %cst_27 {dimension_numbers = #tpu.dot_dimension_numbers<[1], [0], [0], [1], [0, 0, 1, 1], [], []>} : vector<64x4xbf16>, vector<4x8xbf16>, vector<64x8xf32> -> vector<64x8xf32>
    %28 = arith.addf %21, %27 : vector<64x8xf32>
    %c0_28 = arith.constant 0 : index
    %c1_29 = arith.constant 1 : index
    %c1_30 = arith.constant 1 : index
    %c0_31 = arith.constant 0 : index
    %29 = vector.load %arg1[%c0_28, %c1_29, %c1_30, %c0_31] : memref<1x10x10x4xbf16, #tpu.memory_space<vmem>>, vector<1x8x8x4xbf16>
    %30 = vector.shape_cast %29 : vector<1x8x8x4xbf16> to vector<8x8x4xbf16>
    %31 = vector.shape_cast %30 : vector<8x8x4xbf16> to vector<64x4xbf16>
    %c4 = arith.constant 4 : index
    %c0_32 = arith.constant 0 : index
    %c0_33 = arith.constant 0 : index
    %32 = vector.load %arg2[%c4, %c0_32, %c0_33] : memref<9x4x8xbf16, #tpu.memory_space<vmem>>, vector<1x4x8xbf16>
    %33 = vector.shape_cast %32 : vector<1x4x8xbf16> to vector<4x8xbf16>
    %cst_34 = arith.constant dense<0.000000e+00> : vector<64x8xf32>
    %34 = tpu.matmul %31, %33, %cst_34 {dimension_numbers = #tpu.dot_dimension_numbers<[1], [0], [0], [1], [0, 0, 1, 1], [], []>} : vector<64x4xbf16>, vector<4x8xbf16>, vector<64x8xf32> -> vector<64x8xf32>
    %35 = arith.addf %28, %34 : vector<64x8xf32>
    %c0_35 = arith.constant 0 : index
    %c1_36 = arith.constant 1 : index
    %c2_37 = arith.constant 2 : index
    %c0_38 = arith.constant 0 : index
    %36 = vector.load %arg1[%c0_35, %c1_36, %c2_37, %c0_38] : memref<1x10x10x4xbf16, #tpu.memory_space<vmem>>, vector<1x8x8x4xbf16>
    %37 = vector.shape_cast %36 : vector<1x8x8x4xbf16> to vector<8x8x4xbf16>
    %38 = vector.shape_cast %37 : vector<8x8x4xbf16> to vector<64x4xbf16>
    %c5 = arith.constant 5 : index
    %c0_39 = arith.constant 0 : index
    %c0_40 = arith.constant 0 : index
    %39 = vector.load %arg2[%c5, %c0_39, %c0_40] : memref<9x4x8xbf16, #tpu.memory_space<vmem>>, vector<1x4x8xbf16>
    %40 = vector.shape_cast %39 : vector<1x4x8xbf16> to vector<4x8xbf16>
    %cst_41 = arith.constant dense<0.000000e+00> : vector<64x8xf32>
    %41 = tpu.matmul %38, %40, %cst_41 {dimension_numbers = #tpu.dot_dimension_numbers<[1], [0], [0], [1], [0, 0, 1, 1], [], []>} : vector<64x4xbf16>, vector<4x8xbf16>, vector<64x8xf32> -> vector<64x8xf32>
    %42 = arith.addf %35, %41 : vector<64x8xf32>
    %c0_42 = arith.constant 0 : index
    %c2_43 = arith.constant 2 : index
    %c0_44 = arith.constant 0 : index
    %c0_45 = arith.constant 0 : index
    %43 = vector.load %arg1[%c0_42, %c2_43, %c0_44, %c0_45] : memref<1x10x10x4xbf16, #tpu.memory_space<vmem>>, vector<1x8x8x4xbf16>
    %44 = vector.shape_cast %43 : vector<1x8x8x4xbf16> to vector<8x8x4xbf16>
    %45 = vector.shape_cast %44 : vector<8x8x4xbf16> to vector<64x4xbf16>
    %c6 = arith.constant 6 : index
    %c0_46 = arith.constant 0 : index
    %c0_47 = arith.constant 0 : index
    %46 = vector.load %arg2[%c6, %c0_46, %c0_47] : memref<9x4x8xbf16, #tpu.memory_space<vmem>>, vector<1x4x8xbf16>
    %47 = vector.shape_cast %46 : vector<1x4x8xbf16> to vector<4x8xbf16>
    %cst_48 = arith.constant dense<0.000000e+00> : vector<64x8xf32>
    %48 = tpu.matmul %45, %47, %cst_48 {dimension_numbers = #tpu.dot_dimension_numbers<[1], [0], [0], [1], [0, 0, 1, 1], [], []>} : vector<64x4xbf16>, vector<4x8xbf16>, vector<64x8xf32> -> vector<64x8xf32>
    %49 = arith.addf %42, %48 : vector<64x8xf32>
    %c0_49 = arith.constant 0 : index
    %c2_50 = arith.constant 2 : index
    %c1_51 = arith.constant 1 : index
    %c0_52 = arith.constant 0 : index
    %50 = vector.load %arg1[%c0_49, %c2_50, %c1_51, %c0_52] : memref<1x10x10x4xbf16, #tpu.memory_space<vmem>>, vector<1x8x8x4xbf16>
    %51 = vector.shape_cast %50 : vector<1x8x8x4xbf16> to vector<8x8x4xbf16>
    %52 = vector.shape_cast %51 : vector<8x8x4xbf16> to vector<64x4xbf16>
    %c7 = arith.constant 7 : index
    %c0_53 = arith.constant 0 : index
    %c0_54 = arith.constant 0 : index
    %53 = vector.load %arg2[%c7, %c0_53, %c0_54] : memref<9x4x8xbf16, #tpu.memory_space<vmem>>, vector<1x4x8xbf16>
    %54 = vector.shape_cast %53 : vector<1x4x8xbf16> to vector<4x8xbf16>
    %cst_55 = arith.constant dense<0.000000e+00> : vector<64x8xf32>
    %55 = tpu.matmul %52, %54, %cst_55 {dimension_numbers = #tpu.dot_dimension_numbers<[1], [0], [0], [1], [0, 0, 1, 1], [], []>} : vector<64x4xbf16>, vector<4x8xbf16>, vector<64x8xf32> -> vector<64x8xf32>
    %56 = arith.addf %49, %55 : vector<64x8xf32>
    %c0_56 = arith.constant 0 : index
    %c2_57 = arith.constant 2 : index
    %c2_58 = arith.constant 2 : index
    %c0_59 = arith.constant 0 : index
    %57 = vector.load %arg1[%c0_56, %c2_57, %c2_58, %c0_59] : memref<1x10x10x4xbf16, #tpu.memory_space<vmem>>, vector<1x8x8x4xbf16>
    %58 = vector.shape_cast %57 : vector<1x8x8x4xbf16> to vector<8x8x4xbf16>
    %59 = vector.shape_cast %58 : vector<8x8x4xbf16> to vector<64x4xbf16>
    %c8 = arith.constant 8 : index
    %c0_60 = arith.constant 0 : index
    %c0_61 = arith.constant 0 : index
    %60 = vector.load %arg2[%c8, %c0_60, %c0_61] : memref<9x4x8xbf16, #tpu.memory_space<vmem>>, vector<1x4x8xbf16>
    %61 = vector.shape_cast %60 : vector<1x4x8xbf16> to vector<4x8xbf16>
    %cst_62 = arith.constant dense<0.000000e+00> : vector<64x8xf32>
    %62 = tpu.matmul %59, %61, %cst_62 {dimension_numbers = #tpu.dot_dimension_numbers<[1], [0], [0], [1], [0, 0, 1, 1], [], []>} : vector<64x4xbf16>, vector<4x8xbf16>, vector<64x8xf32> -> vector<64x8xf32>
    %63 = arith.addf %56, %62 : vector<64x8xf32>
    %c0_63 = arith.constant 0 : index
    %c0_64 = arith.constant 0 : index
    %64 = vector.load %arg3[%c0_63, %c0_64] : memref<1x8xf32, #tpu.memory_space<vmem>>, vector<1x8xf32>
    %65 = vector.broadcast %64 : vector<1x8xf32> to vector<64x8xf32>
    %66 = arith.addf %63, %65 : vector<64x8xf32>
    %67 = vector.shape_cast %66 : vector<64x8xf32> to vector<1x8x8x8xf32>
    %68 = arith.truncf %67 : vector<1x8x8x8xf32> to vector<1x8x8x8xbf16>
    %c0_65 = arith.constant 0 : index
    %c0_66 = arith.constant 0 : index
    %c0_67 = arith.constant 0 : index
    %c0_68 = arith.constant 0 : index
    %69 = vector.load %arg4[%c0_65, %c0_66, %c0_67, %c0_68] : memref<1x8x8x8xbf16, #tpu.memory_space<vmem>>, vector<1x8x8x8xbf16>
    tpu.vector_store %arg4[%c0_65, %c0_66, %c0_67, %c0_68], %68 {strides = array<i32>} : memref<1x8x8x8xbf16, #tpu.memory_space<vmem>>, vector<1x8x8x8xbf16>,
    %cst_69 = arith.constant dense<0.000000e+00> : vector<8xf32>
    %70 = vector.multi_reduction <add>, %66, %cst_69 [0] : vector<64x8xf32> to vector<8xf32>
    %71 = vector.shape_cast %70 : vector<8xf32> to vector<1x8xf32>
    %cst_70 = arith.constant 1.562500e-02 : f32
    %72 = vector.broadcast %cst_70 : f32 to vector<1x8xf32>
    %73 = arith.mulf %71, %72 : vector<1x8xf32>
    %74 = vector.broadcast %73 : vector<1x8xf32> to vector<64x8xf32>
    %75 = arith.subf %66, %74 : vector<64x8xf32>
    %76 = arith.mulf %75, %75 : vector<64x8xf32>
    %cst_71 = arith.constant dense<0.000000e+00> : vector<8xf32>
    %77 = vector.multi_reduction <add>, %76, %cst_71 [0] : vector<64x8xf32> to vector<8xf32>
    %78 = vector.shape_cast %77 : vector<8xf32> to vector<1x8xf32>
    %79 = tpu.concatenate %71, %78 in 0 : vector<1x8xf32>, vector<1x8xf32> -> vector<2x8xf32>
    %80 = vector.shape_cast %79 : vector<2x8xf32> to vector<1x2x8xf32>
    %c0_72 = arith.constant 0 : index
    %c0_73 = arith.constant 0 : index
    %c0_74 = arith.constant 0 : index
    %81 = vector.load %arg5[%c0_72, %c0_73, %c0_74] : memref<1x2x8xf32, #tpu.memory_space<vmem>>, vector<1x2x8xf32>
    tpu.vector_store %arg5[%c0_72, %c0_73, %c0_74], %80 {strides = array<i32>} : memref<1x2x8xf32, #tpu.memory_space<vmem>>, vector<1x2x8xf32>,
    return
  }
  func.func @transform_0(%arg0: i32) -> (i32, i32, i32, i32) {
    %c0_i32 = arith.constant 0 : i32
    %c0_i32_0 = arith.constant 0 : i32
    %c0_i32_1 = arith.constant 0 : i32
    %c0_i32_2 = arith.constant 0 : i32
    return %arg0, %c0_i32, %c0_i32_0, %c0_i32_1 : i32, i32, i32, i32
  }
  func.func @transform_1(%arg0: i32) -> (i32, i32, i32) {
    %c0_i32 = arith.constant 0 : i32
    %c0_i32_0 = arith.constant 0 : i32
    %c0_i32_1 = arith.constant 0 : i32
    %c0_i32_2 = arith.constant 0 : i32
    return %c0_i32, %c0_i32_0, %c0_i32_1 : i32, i32, i32
  }
  func.func @transform_2(%arg0: i32) -> (i32, i32) {
    %c0_i32 = arith.constant 0 : i32
    %c0_i32_0 = arith.constant 0 : i32
    %c0_i32_1 = arith.constant 0 : i32
    return %c0_i32, %c0_i32_0 : i32, i32
  }
  func.func @transform_3(%arg0: i32) -> (i32, i32, i32, i32) {
    %c0_i32 = arith.constant 0 : i32
    %c0_i32_0 = arith.constant 0 : i32
    %c0_i32_1 = arith.constant 0 : i32
    %c0_i32_2 = arith.constant 0 : i32
    return %arg0, %c0_i32, %c0_i32_0, %c0_i32_1 : i32, i32, i32, i32
  }
  func.func @transform_4(%arg0: i32) -> (i32, i32, i32) {
    %c0_i32 = arith.constant 0 : i32
    %c0_i32_0 = arith.constant 0 : i32
    %c0_i32_1 = arith.constant 0 : i32
    return %arg0, %c0_i32, %c0_i32_0 : i32, i32, i32
  }
}

module attributes {stable_mosaic.version = 11 : i64} {
  func.func @_conv_stats_kernel(%arg0: i32, %arg1: memref<1x10x10x8xbf16, #tpu.memory_space<vmem>>, %arg2: memref<9x8x8xbf16, #tpu.memory_space<vmem>>, %arg3: memref<1x8xf32, #tpu.memory_space<vmem>>, %arg4: memref<1x8x8x8xbf16, #tpu.memory_space<vmem>>, %arg5: memref<1x2x8xf32, #tpu.memory_space<vmem>>) attributes {dimension_semantics = [#tpu.dimension_semantics<parallel>], iteration_bounds = array<i64: 2>, scalar_prefetch = 0 : i64, scratch_operands = 0 : i64, tpu.core_type = #tpu.core_type<tc>, window_params = [{transform_indices = @transform_0, window_bounds = array<i64: 1, 10, 10, 8>}, {pipeline_mode = #tpu.pipeline_mode<synchronous>, transform_indices = @transform_1, window_bounds = array<i64: 9, 8, 8>}, {pipeline_mode = #tpu.pipeline_mode<synchronous>, transform_indices = @transform_2, window_bounds = array<i64: 1, 8>}, {transform_indices = @transform_3, window_bounds = array<i64: 1, 8, 8, 8>}, {transform_indices = @transform_4, window_bounds = array<i64: 1, 2, 8>}]} {
    %cst = arith.constant 0.000000e+00 : f32
    %0 = vector.broadcast %cst : f32 to vector<64x8xf32>
    %c0 = arith.constant 0 : index
    %c0_0 = arith.constant 0 : index
    %c0_1 = arith.constant 0 : index
    %c0_2 = arith.constant 0 : index
    %1 = vector.load %arg1[%c0, %c0_0, %c0_1, %c0_2] : memref<1x10x10x8xbf16, #tpu.memory_space<vmem>>, vector<1x8x8x8xbf16>
    %2 = vector.shape_cast %1 : vector<1x8x8x8xbf16> to vector<8x8x8xbf16>
    %3 = vector.shape_cast %2 : vector<8x8x8xbf16> to vector<64x8xbf16>
    %c0_3 = arith.constant 0 : index
    %c0_4 = arith.constant 0 : index
    %c0_5 = arith.constant 0 : index
    %4 = vector.load %arg2[%c0_3, %c0_4, %c0_5] : memref<9x8x8xbf16, #tpu.memory_space<vmem>>, vector<1x8x8xbf16>
    %5 = vector.shape_cast %4 : vector<1x8x8xbf16> to vector<8x8xbf16>
    %cst_6 = arith.constant dense<0.000000e+00> : vector<64x8xf32>
    %6 = tpu.matmul %3, %5, %cst_6 {dimension_numbers = #tpu.dot_dimension_numbers<[1], [0], [0], [1], [0, 0, 1, 1], [], []>} : vector<64x8xbf16>, vector<8x8xbf16>, vector<64x8xf32> -> vector<64x8xf32>
    %7 = arith.addf %0, %6 : vector<64x8xf32>
    %c0_7 = arith.constant 0 : index
    %c0_8 = arith.constant 0 : index
    %c1 = arith.constant 1 : index
    %c0_9 = arith.constant 0 : index
    %8 = vector.load %arg1[%c0_7, %c0_8, %c1, %c0_9] : memref<1x10x10x8xbf16, #tpu.memory_space<vmem>>, vector<1x8x8x8xbf16>
    %9 = vector.shape_cast %8 : vector<1x8x8x8xbf16> to vector<8x8x8xbf16>
    %10 = vector.shape_cast %9 : vector<8x8x8xbf16> to vector<64x8xbf16>
    %c1_10 = arith.constant 1 : index
    %c0_11 = arith.constant 0 : index
    %c0_12 = arith.constant 0 : index
    %11 = vector.load %arg2[%c1_10, %c0_11, %c0_12] : memref<9x8x8xbf16, #tpu.memory_space<vmem>>, vector<1x8x8xbf16>
    %12 = vector.shape_cast %11 : vector<1x8x8xbf16> to vector<8x8xbf16>
    %cst_13 = arith.constant dense<0.000000e+00> : vector<64x8xf32>
    %13 = tpu.matmul %10, %12, %cst_13 {dimension_numbers = #tpu.dot_dimension_numbers<[1], [0], [0], [1], [0, 0, 1, 1], [], []>} : vector<64x8xbf16>, vector<8x8xbf16>, vector<64x8xf32> -> vector<64x8xf32>
    %14 = arith.addf %7, %13 : vector<64x8xf32>
    %c0_14 = arith.constant 0 : index
    %c0_15 = arith.constant 0 : index
    %c2 = arith.constant 2 : index
    %c0_16 = arith.constant 0 : index
    %15 = vector.load %arg1[%c0_14, %c0_15, %c2, %c0_16] : memref<1x10x10x8xbf16, #tpu.memory_space<vmem>>, vector<1x8x8x8xbf16>
    %16 = vector.shape_cast %15 : vector<1x8x8x8xbf16> to vector<8x8x8xbf16>
    %17 = vector.shape_cast %16 : vector<8x8x8xbf16> to vector<64x8xbf16>
    %c2_17 = arith.constant 2 : index
    %c0_18 = arith.constant 0 : index
    %c0_19 = arith.constant 0 : index
    %18 = vector.load %arg2[%c2_17, %c0_18, %c0_19] : memref<9x8x8xbf16, #tpu.memory_space<vmem>>, vector<1x8x8xbf16>
    %19 = vector.shape_cast %18 : vector<1x8x8xbf16> to vector<8x8xbf16>
    %cst_20 = arith.constant dense<0.000000e+00> : vector<64x8xf32>
    %20 = tpu.matmul %17, %19, %cst_20 {dimension_numbers = #tpu.dot_dimension_numbers<[1], [0], [0], [1], [0, 0, 1, 1], [], []>} : vector<64x8xbf16>, vector<8x8xbf16>, vector<64x8xf32> -> vector<64x8xf32>
    %21 = arith.addf %14, %20 : vector<64x8xf32>
    %c0_21 = arith.constant 0 : index
    %c1_22 = arith.constant 1 : index
    %c0_23 = arith.constant 0 : index
    %c0_24 = arith.constant 0 : index
    %22 = vector.load %arg1[%c0_21, %c1_22, %c0_23, %c0_24] : memref<1x10x10x8xbf16, #tpu.memory_space<vmem>>, vector<1x8x8x8xbf16>
    %23 = vector.shape_cast %22 : vector<1x8x8x8xbf16> to vector<8x8x8xbf16>
    %24 = vector.shape_cast %23 : vector<8x8x8xbf16> to vector<64x8xbf16>
    %c3 = arith.constant 3 : index
    %c0_25 = arith.constant 0 : index
    %c0_26 = arith.constant 0 : index
    %25 = vector.load %arg2[%c3, %c0_25, %c0_26] : memref<9x8x8xbf16, #tpu.memory_space<vmem>>, vector<1x8x8xbf16>
    %26 = vector.shape_cast %25 : vector<1x8x8xbf16> to vector<8x8xbf16>
    %cst_27 = arith.constant dense<0.000000e+00> : vector<64x8xf32>
    %27 = tpu.matmul %24, %26, %cst_27 {dimension_numbers = #tpu.dot_dimension_numbers<[1], [0], [0], [1], [0, 0, 1, 1], [], []>} : vector<64x8xbf16>, vector<8x8xbf16>, vector<64x8xf32> -> vector<64x8xf32>
    %28 = arith.addf %21, %27 : vector<64x8xf32>
    %c0_28 = arith.constant 0 : index
    %c1_29 = arith.constant 1 : index
    %c1_30 = arith.constant 1 : index
    %c0_31 = arith.constant 0 : index
    %29 = vector.load %arg1[%c0_28, %c1_29, %c1_30, %c0_31] : memref<1x10x10x8xbf16, #tpu.memory_space<vmem>>, vector<1x8x8x8xbf16>
    %30 = vector.shape_cast %29 : vector<1x8x8x8xbf16> to vector<8x8x8xbf16>
    %31 = vector.shape_cast %30 : vector<8x8x8xbf16> to vector<64x8xbf16>
    %c4 = arith.constant 4 : index
    %c0_32 = arith.constant 0 : index
    %c0_33 = arith.constant 0 : index
    %32 = vector.load %arg2[%c4, %c0_32, %c0_33] : memref<9x8x8xbf16, #tpu.memory_space<vmem>>, vector<1x8x8xbf16>
    %33 = vector.shape_cast %32 : vector<1x8x8xbf16> to vector<8x8xbf16>
    %cst_34 = arith.constant dense<0.000000e+00> : vector<64x8xf32>
    %34 = tpu.matmul %31, %33, %cst_34 {dimension_numbers = #tpu.dot_dimension_numbers<[1], [0], [0], [1], [0, 0, 1, 1], [], []>} : vector<64x8xbf16>, vector<8x8xbf16>, vector<64x8xf32> -> vector<64x8xf32>
    %35 = arith.addf %28, %34 : vector<64x8xf32>
    %c0_35 = arith.constant 0 : index
    %c1_36 = arith.constant 1 : index
    %c2_37 = arith.constant 2 : index
    %c0_38 = arith.constant 0 : index
    %36 = vector.load %arg1[%c0_35, %c1_36, %c2_37, %c0_38] : memref<1x10x10x8xbf16, #tpu.memory_space<vmem>>, vector<1x8x8x8xbf16>
    %37 = vector.shape_cast %36 : vector<1x8x8x8xbf16> to vector<8x8x8xbf16>
    %38 = vector.shape_cast %37 : vector<8x8x8xbf16> to vector<64x8xbf16>
    %c5 = arith.constant 5 : index
    %c0_39 = arith.constant 0 : index
    %c0_40 = arith.constant 0 : index
    %39 = vector.load %arg2[%c5, %c0_39, %c0_40] : memref<9x8x8xbf16, #tpu.memory_space<vmem>>, vector<1x8x8xbf16>
    %40 = vector.shape_cast %39 : vector<1x8x8xbf16> to vector<8x8xbf16>
    %cst_41 = arith.constant dense<0.000000e+00> : vector<64x8xf32>
    %41 = tpu.matmul %38, %40, %cst_41 {dimension_numbers = #tpu.dot_dimension_numbers<[1], [0], [0], [1], [0, 0, 1, 1], [], []>} : vector<64x8xbf16>, vector<8x8xbf16>, vector<64x8xf32> -> vector<64x8xf32>
    %42 = arith.addf %35, %41 : vector<64x8xf32>
    %c0_42 = arith.constant 0 : index
    %c2_43 = arith.constant 2 : index
    %c0_44 = arith.constant 0 : index
    %c0_45 = arith.constant 0 : index
    %43 = vector.load %arg1[%c0_42, %c2_43, %c0_44, %c0_45] : memref<1x10x10x8xbf16, #tpu.memory_space<vmem>>, vector<1x8x8x8xbf16>
    %44 = vector.shape_cast %43 : vector<1x8x8x8xbf16> to vector<8x8x8xbf16>
    %45 = vector.shape_cast %44 : vector<8x8x8xbf16> to vector<64x8xbf16>
    %c6 = arith.constant 6 : index
    %c0_46 = arith.constant 0 : index
    %c0_47 = arith.constant 0 : index
    %46 = vector.load %arg2[%c6, %c0_46, %c0_47] : memref<9x8x8xbf16, #tpu.memory_space<vmem>>, vector<1x8x8xbf16>
    %47 = vector.shape_cast %46 : vector<1x8x8xbf16> to vector<8x8xbf16>
    %cst_48 = arith.constant dense<0.000000e+00> : vector<64x8xf32>
    %48 = tpu.matmul %45, %47, %cst_48 {dimension_numbers = #tpu.dot_dimension_numbers<[1], [0], [0], [1], [0, 0, 1, 1], [], []>} : vector<64x8xbf16>, vector<8x8xbf16>, vector<64x8xf32> -> vector<64x8xf32>
    %49 = arith.addf %42, %48 : vector<64x8xf32>
    %c0_49 = arith.constant 0 : index
    %c2_50 = arith.constant 2 : index
    %c1_51 = arith.constant 1 : index
    %c0_52 = arith.constant 0 : index
    %50 = vector.load %arg1[%c0_49, %c2_50, %c1_51, %c0_52] : memref<1x10x10x8xbf16, #tpu.memory_space<vmem>>, vector<1x8x8x8xbf16>
    %51 = vector.shape_cast %50 : vector<1x8x8x8xbf16> to vector<8x8x8xbf16>
    %52 = vector.shape_cast %51 : vector<8x8x8xbf16> to vector<64x8xbf16>
    %c7 = arith.constant 7 : index
    %c0_53 = arith.constant 0 : index
    %c0_54 = arith.constant 0 : index
    %53 = vector.load %arg2[%c7, %c0_53, %c0_54] : memref<9x8x8xbf16, #tpu.memory_space<vmem>>, vector<1x8x8xbf16>
    %54 = vector.shape_cast %53 : vector<1x8x8xbf16> to vector<8x8xbf16>
    %cst_55 = arith.constant dense<0.000000e+00> : vector<64x8xf32>
    %55 = tpu.matmul %52, %54, %cst_55 {dimension_numbers = #tpu.dot_dimension_numbers<[1], [0], [0], [1], [0, 0, 1, 1], [], []>} : vector<64x8xbf16>, vector<8x8xbf16>, vector<64x8xf32> -> vector<64x8xf32>
    %56 = arith.addf %49, %55 : vector<64x8xf32>
    %c0_56 = arith.constant 0 : index
    %c2_57 = arith.constant 2 : index
    %c2_58 = arith.constant 2 : index
    %c0_59 = arith.constant 0 : index
    %57 = vector.load %arg1[%c0_56, %c2_57, %c2_58, %c0_59] : memref<1x10x10x8xbf16, #tpu.memory_space<vmem>>, vector<1x8x8x8xbf16>
    %58 = vector.shape_cast %57 : vector<1x8x8x8xbf16> to vector<8x8x8xbf16>
    %59 = vector.shape_cast %58 : vector<8x8x8xbf16> to vector<64x8xbf16>
    %c8 = arith.constant 8 : index
    %c0_60 = arith.constant 0 : index
    %c0_61 = arith.constant 0 : index
    %60 = vector.load %arg2[%c8, %c0_60, %c0_61] : memref<9x8x8xbf16, #tpu.memory_space<vmem>>, vector<1x8x8xbf16>
    %61 = vector.shape_cast %60 : vector<1x8x8xbf16> to vector<8x8xbf16>
    %cst_62 = arith.constant dense<0.000000e+00> : vector<64x8xf32>
    %62 = tpu.matmul %59, %61, %cst_62 {dimension_numbers = #tpu.dot_dimension_numbers<[1], [0], [0], [1], [0, 0, 1, 1], [], []>} : vector<64x8xbf16>, vector<8x8xbf16>, vector<64x8xf32> -> vector<64x8xf32>
    %63 = arith.addf %56, %62 : vector<64x8xf32>
    %c0_63 = arith.constant 0 : index
    %c0_64 = arith.constant 0 : index
    %64 = vector.load %arg3[%c0_63, %c0_64] : memref<1x8xf32, #tpu.memory_space<vmem>>, vector<1x8xf32>
    %65 = vector.broadcast %64 : vector<1x8xf32> to vector<64x8xf32>
    %66 = arith.addf %63, %65 : vector<64x8xf32>
    %67 = vector.shape_cast %66 : vector<64x8xf32> to vector<1x8x8x8xf32>
    %68 = arith.truncf %67 : vector<1x8x8x8xf32> to vector<1x8x8x8xbf16>
    %c0_65 = arith.constant 0 : index
    %c0_66 = arith.constant 0 : index
    %c0_67 = arith.constant 0 : index
    %c0_68 = arith.constant 0 : index
    %69 = vector.load %arg4[%c0_65, %c0_66, %c0_67, %c0_68] : memref<1x8x8x8xbf16, #tpu.memory_space<vmem>>, vector<1x8x8x8xbf16>
    tpu.vector_store %arg4[%c0_65, %c0_66, %c0_67, %c0_68], %68 {strides = array<i32>} : memref<1x8x8x8xbf16, #tpu.memory_space<vmem>>, vector<1x8x8x8xbf16>,
    %cst_69 = arith.constant dense<0.000000e+00> : vector<8xf32>
    %70 = vector.multi_reduction <add>, %66, %cst_69 [0] : vector<64x8xf32> to vector<8xf32>
    %71 = vector.shape_cast %70 : vector<8xf32> to vector<1x8xf32>
    %cst_70 = arith.constant 1.562500e-02 : f32
    %72 = vector.broadcast %cst_70 : f32 to vector<1x8xf32>
    %73 = arith.mulf %71, %72 : vector<1x8xf32>
    %74 = vector.broadcast %73 : vector<1x8xf32> to vector<64x8xf32>
    %75 = arith.subf %66, %74 : vector<64x8xf32>
    %76 = arith.mulf %75, %75 : vector<64x8xf32>
    %cst_71 = arith.constant dense<0.000000e+00> : vector<8xf32>
    %77 = vector.multi_reduction <add>, %76, %cst_71 [0] : vector<64x8xf32> to vector<8xf32>
    %78 = vector.shape_cast %77 : vector<8xf32> to vector<1x8xf32>
    %79 = tpu.concatenate %71, %78 in 0 : vector<1x8xf32>, vector<1x8xf32> -> vector<2x8xf32>
    %80 = vector.shape_cast %79 : vector<2x8xf32> to vector<1x2x8xf32>
    %c0_72 = arith.constant 0 : index
    %c0_73 = arith.constant 0 : index
    %c0_74 = arith.constant 0 : index
    %81 = vector.load %arg5[%c0_72, %c0_73, %c0_74] : memref<1x2x8xf32, #tpu.memory_space<vmem>>, vector<1x2x8xf32>
    tpu.vector_store %arg5[%c0_72, %c0_73, %c0_74], %80 {strides = array<i32>} : memref<1x2x8xf32, #tpu.memory_space<vmem>>, vector<1x2x8xf32>,
    return
  }
  func.func @transform_0(%arg0: i32) -> (i32, i32, i32, i32) {
    %c0_i32 = arith.constant 0 : i32
    %c0_i32_0 = arith.constant 0 : i32
    %c0_i32_1 = arith.constant 0 : i32
    %c0_i32_2 = arith.constant 0 : i32
    return %arg0, %c0_i32, %c0_i32_0, %c0_i32_1 : i32, i32, i32, i32
  }
  func.func @transform_1(%arg0: i32) -> (i32, i32, i32) {
    %c0_i32 = arith.constant 0 : i32
    %c0_i32_0 = arith.constant 0 : i32
    %c0_i32_1 = arith.constant 0 : i32
    %c0_i32_2 = arith.constant 0 : i32
    return %c0_i32, %c0_i32_0, %c0_i32_1 : i32, i32, i32
  }
  func.func @transform_2(%arg0: i32) -> (i32, i32) {
    %c0_i32 = arith.constant 0 : i32
    %c0_i32_0 = arith.constant 0 : i32
    %c0_i32_1 = arith.constant 0 : i32
    return %c0_i32, %c0_i32_0 : i32, i32
  }
  func.func @transform_3(%arg0: i32) -> (i32, i32, i32, i32) {
    %c0_i32 = arith.constant 0 : i32
    %c0_i32_0 = arith.constant 0 : i32
    %c0_i32_1 = arith.constant 0 : i32
    %c0_i32_2 = arith.constant 0 : i32
    return %arg0, %c0_i32, %c0_i32_0, %c0_i32_1 : i32, i32, i32, i32
  }
  func.func @transform_4(%arg0: i32) -> (i32, i32, i32) {
    %c0_i32 = arith.constant 0 : i32
    %c0_i32_0 = arith.constant 0 : i32
    %c0_i32_1 = arith.constant 0 : i32
    return %arg0, %c0_i32, %c0_i32_0 : i32, i32, i32
  }
}

</mosaic_0001>

<bundles_post_ra>
// kernel: down_forward.2
= control target key start
LH: loop header
LB: loop body
LE: loop exit
PB: predicated region body
PF: predicated region fallthrough
CT: control target
= control target key end

     0   :  { %s2277_s15 = smov 0   ;;  %s2869_s0 = inlined_call_operand.vmem [shape: bf16[2,10,10,4], index: 0, kind: input, shape index: {}]   ;;  %s2870_s1 = inlined_call_operand.vmem [shape: bf16[9,4,8], index: 1, kind: input, shape index: {}]   ;;  %s2871_s2 = inlined_call_operand.vmem [shape: f32[1,8], index: 2, kind: input, shape index: {}]   ;;  %s2872_s3 = inlined_call_operand.vmem [shape: bf16[2,8,8,8], index: 3, kind: output, shape index: {0}]   ;;  %s2873_s4 = inlined_call_operand.vmem [shape: f32[2,2,8], index: 4, kind: output, shape index: {1}]  }
   0x1 LB: > { %s1895_s16 = sadd.s32 4294967295, %s2250_s15   ;;  %p1899_p0 = scmp.ge.s32.totalorder %s2250_s15, 1  ;;  %s2250_s15 = sphi %s2277_s15, %s15_s15  }
   0x2   : > { %p165_p1 = scmp.lt.s32.totalorder %s2250_s15, 3 }
   0x4   : > { %p166_p2 = pnand %p1899_p0, %p165_p1 }
   0x5   : > { %p195_p3 = scmp.lt.s32.totalorder (!%p166_p2), %s1895_s16, 1 }
   0x6   : > { %169 = sbr.rel (%p166_p2) target bundleno = 369 (0x171), region = 32 }
   0xb   : > { %v1904_v0 = vld [vmem:[%s2870_s1 + $0x2] sm:$0x3]  ;;  %vm369_vm0 = vcmask 1041408   ;;  %v218_v2 = vld [vmem:[%s2870_s1] sm:$0x3]  ;;  %s2879_s16 = smov (!%p195_p3, %s1895_s16), 1 }
   0xc   : > { %2214 = vmatprep.subr.msk.bf16.mxu1 %vm369_vm0, %v1904_v0  ;;  %2213 = vmatprep.subr.msk.bf16.mxu0 %vm369_vm0, %v1904_v0  ;;  %v371_v1 = vsel %vm369_vm0, %v1904_v0, 0  ;;  %v1929_v3 = vld [vmem:[%s2870_s1 + $0x4] sm:$0x3]  ;;  %v2304_v4 = vld [vmem:[%s2870_s1 + $0x6] sm:$0x3]  ;;  %s2223_s27 = smul.u32 80, %s2879_s16 }
   0xd   : > { %2212 = vmatpush3.bf16.msra.mxu1 %v371_v1  ;;  %2122 = vmatpush3.bf16.msra.mxu0 %v371_v1  ;;  %v2309_v5 = vld [vmem:[%s2870_s1 + $0x8] sm:$0x3]  ;;  %vm227_vm1 = vsmask.f32 3328  ;;  %v2315_v6 = vld [vmem:[%s2870_s1 + $0xa] sm:$0x3] }
   0xe   : > { %2215 = vmatprep.subr.msk.bf16.mxu1 %vm369_vm0, %v218_v2  ;;  %2216 = vmatprep.subr.msk.bf16.mxu0 %vm369_vm0, %v1929_v3  ;;  %vm228_vm2 = vsmask.f32 7440  ;;  %v2318_v7 = vsel %vm369_vm0, %v218_v2, 0  ;;  %v2321_v8 = vsel %vm369_vm0, %v1929_v3, 0  ;;  %v2326_v9 = vld [vmem:[%s2870_s1 + $0xc] sm:$0x3]  ;;  %s2331_s8 = scalar_lea.vmem %s2869_s0, %s2223_s27 }
   0xf   : > { %v2335_v10 = vsel %vm369_vm0, %v2304_v4, 0  ;;  %v2339_v11 = vsel %vm369_vm0, %v2309_v5, 0  ;;  %v2343_v12 = vsel %vm369_vm0, %v2315_v6, 0  ;;  %v2347_v13 = vsel %vm369_vm0, %v2326_v9, 0  ;;  %v2350_v14 = vld [vmem:[%s2331_s8] sm:$0xf]  ;;  %vm2388_vm4 = vmor %vm227_vm1, %vm228_vm2 }
  0x10   : > { %v2353_v15 = vld [vmem:[%s2331_s8 + $0x8] sm:$0xf]  ;;  %v2356_v16 = vld [vmem:[%s2331_s8 + $0x4] sm:$0x1]  ;;  %v2359_v17 = vld [vmem:[%s2331_s8 + $0xc] sm:$0x1] }
  0x11   : > { %v231_v18 = vshrl.u32 %v2350_v14, 16  ;;  %v234_v19 = vshll.u32 %v2350_v14, 16  ;;  %v240_v20 = vshll.u32 %v2356_v16, 16  ;;  %v245_v21 = vshrl.u32 %v2353_v15, 16  ;;  %v2370_v26 = vld [vmem:[%s2331_s8 + $0x20] sm:$0xf] }
  0x12   : > { %v248_v22 = vshll.u32 %v2353_v15, 16  ;;  %v254_v23 = vshll.u32 %v2359_v17, 16  ;;  %vm356_vm3 = vcmask 31744   ;;  %v567_v24 = vrot.slane %v2356_v16, 5  ;;  %v2373_v31 = vld [vmem:[%s2331_s8 + $0x28] sm:$0xf] }
  0x13   : > { %v571_v25 = vrot.slane %v2359_v17, 5  ;;  %v233_v27 = vrot.slane %v231_v18, 4  ;;  %v236_v28 = vrot.slane %v234_v19, 5  ;;  %v242_v29 = vrot.slane %v240_v20, 5  ;;  %v2376_v34 = vld [vmem:[%s2331_s8 + $0x24] sm:$0x1] }
  0x14   : > { %v247_v30 = vrot.slane %v245_v21, 4  ;;  %v250_v32 = vrot.slane %v248_v22, 5  ;;  %v256_v33 = vrot.slane %v254_v23, 5  ;;  %v2379_v35 = vld [vmem:[%s2331_s8 + $0x2c] sm:$0x1]  ;;  %v1913_v36 = vcombine.low %v2350_v14, %v2353_v15  ;;  %s2075_s17 = sshll.u32 %s2879_s16, 5 }
  0x15   : > { %v237_v37 = vor.u32 %v236_v28, %v233_v27  ;;  %v287_v38 = vshrl.u32 %v2370_v26, 16  ;;  %v290_v39 = vshll.u32 %v2370_v26, 16  ;;  %v296_v40 = vshll.u32 %v2376_v34, 16  ;;  %v2396_v46 = vld [vmem:[%s2331_s8 + $0x10] sm:$0xf]  ;;  %s2801_s20 = scalar_lea.vmem %s2872_s3, %s2075_s17  ;;  %s1903_s21 = sshll.u32 %s2879_s16, 1 }
  0x16   : > { %v251_v42 = vor.u32 %v250_v32, %v247_v30  ;;  %v301_v43 = vshrl.u32 %v2373_v31, 16  ;;  %v304_v44 = vshll.u32 %v2373_v31, 16  ;;  %v310_v45 = vshll.u32 %v2379_v35, 16  ;;  %v2399_v51 = vld [vmem:[%s2331_s8 + $0x18] sm:$0xf]  ;;  %s208_s24 = scalar_lea.vmem %s2873_s4, %s1903_s21 }
  0x17   : > { %v238_v47 = vrot.slane %v237_v37, 4  ;;  %v289_v48 = vrot.slane %v287_v38, 4  ;;  %v292_v49 = vrot.slane %v290_v39, 5  ;;  %v298_v50 = vrot.slane %v296_v40, 5  ;;  %v2402_v56 = vld [vmem:[%s2331_s8 + $0x14] sm:$0x1] }
  0x18   : > { %vm562_vm5 = vcmask 1042432   ;;  %vm563_vm6 = vcmask 1046532   ;;  %v252_v52 = vrot.slane %v251_v42, 4  ;;  %v303_v53 = vrot.slane %v301_v43, 4  ;;  %v2411_v63 = vld [vmem:[%s2331_s8 + $0x1c] sm:$0x1] }
  0x19   : > { %v306_v54 = vrot.slane %v304_v44, 5  ;;  %v312_v55 = vrot.slane %v310_v45, 5  ;;  %v243_v57 = vsel %vm2388_vm4, %v238_v47, %v242_v29  ;;  %v293_v58 = vor.u32 %v292_v49, %v289_v48  ;;  %v2419_v27 = vld [vmem:[%s2331_s8 + $0x30] sm:$0xf]  ;;  %v2426_v32 = vld [vmem:[%s2331_s8 + $0x38] sm:$0xf]  ;;  %vm2456_vm7 = vmor %vm562_vm5, %vm563_vm6 }
  0x1a   : > { %v583_v59 = vrot.slane %v2376_v34, 5  ;;  %v587_v60 = vrot.slane %v2379_v35, 5  ;;  %v257_v61 = vsel %vm2388_vm4, %v252_v52, %v256_v33  ;;  %v259_v0 = vshrl.u32 %v2396_v46, 16  ;;  %v2429_v33 = vld [vmem:[%s2331_s8 + $0x34] sm:$0x1] }
  0x1b   : > { %v307_v62 = vor.u32 %v306_v54, %v303_v53  ;;  %v262_v1 = vshll.u32 %v2396_v46, 16  ;;  %v1905_v2 = vcombine.low %v243_v57, %v257_v61  ;;  %v294_v3 = vrot.slane %v293_v58, 4  ;;  %v2436_v43 = vld [vmem:[%s2331_s8 + $0x3c] sm:$0x1]  ;;  %v538_v44 = vld [vmem:[%s2331_s8] sm:$0xe] }
  0x1c   : > { %v268_v18 = vshll.u32 %v2402_v56, 16  ;;  %v273_v19 = vshrl.u32 %v2399_v51, 16  ;;  %v261_v21 = vrot.slane %v259_v0, 4  ;;  %v276_v23 = vshll.u32 %v2399_v51, 16  ;;  %v540_v57 = vld [vmem:[%s2331_s8 + $0x10] sm:$0xe] }
  0x1d   : > { %v308_v20 = vrot.slane %v307_v62, 4  ;;  %v264_v22 = vrot.slane %v262_v1, 5  ;;  %2123 = vmatprep.mubr.msk.bf16.mxu0 %vm356_vm3, %v1905_v2  ;;  %v299_v28 = vsel %vm2388_vm4, %v294_v3, %v298_v50  ;;  %v282_v30 = vshll.u32 %v2411_v63, 16  ;;  %v539_v50 = vld [vmem:[%s2331_s8 + $0x8] sm:$0xe] }
  0x1e   : > { %v275_v29 = vrot.slane %v273_v19, 4  ;;  %v1915_v37 = vcombine.low %v2370_v26, %v2373_v31  ;;  %v270_v40 = vrot.slane %v268_v18, 5  ;;  %v278_v42 = vrot.slane %v276_v23, 5  ;;  %v542_v1 = vld [vmem:[%s2331_s8 + $0x20] sm:$0xe] }
  0x1f   : > { %v313_v38 = vsel %vm2388_vm4, %v308_v20, %v312_v55  ;;  %v265_v39 = vor.u32 %v264_v22, %v261_v21  ;;  %v284_v47 = vrot.slane %v282_v30, 5  ;;  %v575_v48 = vrot.slane %v2402_v56, 5  ;;  %v541_v56 = vld [vmem:[%s2331_s8 + $0x18] sm:$0xe]  ;;  %v1963_v15 = vld [vmem:[%s2331_s8 + $0x28] sm:$0xf] }
  0x20   : > { %v1907_v45 = vcombine.low %v299_v28, %v313_v38  ;;  %v315_v49 = vshrl.u32 %v2419_v27, 16  ;;  %v279_v53 = vor.u32 %v278_v42, %v275_v29  ;;  %v318_v54 = vshll.u32 %v2419_v27, 16 }
  0x21   : > { %v266_v52 = vrot.slane %v265_v39, 4  ;;  %v324_v55 = vshll.u32 %v2429_v33, 16  ;;  %v329_v61 = vshrl.u32 %v2426_v32, 16  ;;  %v332_v62 = vshll.u32 %v2426_v32, 16 }
  0x22   : > { %2127 = vmatprep.mubr.msk.bf16.mxu1 %vm356_vm3, %v1907_v45  ;;  %v317_v58 = vrot.slane %v315_v49, 4  ;;  %v338_v0 = vshll.u32 %v2436_v43, 16  ;;  %v280_v3 = vrot.slane %v279_v53, 4  ;;  %v579_v18 = vrot.slane %v2411_v63, 5  ;;  %v543_v63 = vld [vmem:[%s2331_s8 + $0x28] sm:$0xe] }
  0x23   : > { %v271_v2 = vsel %vm2388_vm4, %v266_v52, %v270_v40  ;;  %v320_v19 = vrot.slane %v318_v54, 5  ;;  %v326_v21 = vrot.slane %v324_v55, 5  ;;  %v331_v22 = vrot.slane %v329_v61, 4  ;;  %v544_v52 = vld [vmem:[%s2331_s8 + $0x30] sm:$0xe] }
  0x24   : > { %v334_v23 = vrot.slane %v332_v62, 5  ;;  %v1921_v28 = vrot.slane %v538_v44, 9  ;;  %v285_v29 = vsel %vm2388_vm4, %v280_v3, %v284_v47  ;;  %v340_v38 = vrot.slane %v338_v0, 5  ;;  %v545_v54 = vld [vmem:[%s2331_s8 + $0x38] sm:$0xe] }
  0x25   : > { %v321_v30 = vor.u32 %v320_v19, %v317_v58  ;;  %v1922_v39 = vrot.slane %v539_v50, 9  ;;  %v1906_v40 = vcombine.low %v271_v2, %v285_v29  ;;  %v1923_v49 = vrot.slane %v540_v57, 9  ;;  %v2489_v62 = vld [vmem:[%s2331_s8 + $0xc] sm:$0x1] }
  0x26   : > { %v335_v42 = vor.u32 %v334_v23, %v331_v22  ;;  %v568_v45 = vsel %vm2456_vm7, %v1921_v28, %v567_v24  ;;  %v1924_v47 = vrot.slane %v541_v56, 9  ;;  %v1925_v50 = vrot.slane %v542_v1, 9  ;;  %v2502_v1 = vld [vmem:[%s2331_s8 + $0x14] sm:$0x1]  ;;  %v2509_v28 = vld [vmem:[%s2331_s8 + $0x1c] sm:$0x1] }
  0x27   : > { %v322_v53 = vrot.slane %v321_v30, 4  ;;  %v572_v44 = vsel %vm2456_vm7, %v1922_v39, %v571_v25  ;;  %2124 = vmatmul.mubr.msk.bf16.vlgmr.msra.gmra.mxu0 %vm356_vm3, %v1906_v40  ;;  %v576_v24 = vsel %vm2456_vm7, %v1923_v49, %v575_v48  ;;  %v1926_v57 = vrot.slane %v543_v63, 9  ;;  %v1955_v48 = vld [vmem:[%s2331_s8 + $0x8] sm:$0xf] }
  0x28   : > { %v336_v55 = vrot.slane %v335_v42, 4  ;;  %v1930_v16 = vcombine.low %v568_v45, %v572_v44  ;;  %2142 = vmatpush3.bf16.msra.mxu0 %v2321_v8  ;;  %v1914_v25 = vcombine.low %v2396_v46, %v2399_v51  ;;  %v580_v58 = vsel %vm2456_vm7, %v1924_v47, %v579_v18  ;;  %v2526_v42 = vld [vmem:[%s2331_s8 + $0x24] sm:$0x1]  ;;  %v2535_v47 = vld [vmem:[%s2331_s8 + $0x2c] sm:$0x1] }
  0x29   : > { %v327_v17 = vsel %vm2388_vm4, %v322_v53, %v326_v21  ;;  %v584_v61 = vsel %vm2456_vm7, %v1925_v50, %v583_v59  ;;  %v1931_v8 = vcombine.low %v576_v24, %v580_v58  ;;  %2218 = vmatprep.subr.msk.bf16.mxu0 %vm369_vm0, %v2309_v5  ;;  %v588_v34 = vsel %vm2456_vm7, %v1926_v57, %v587_v60  ;;  %v1957_v59 = vld [vmem:[%s2331_s8 + $0x10] sm:$0xf]  ;;  %v1959_v21 = vld [vmem:[%s2331_s8 + $0x18] sm:$0xf] }
  0x2a   : > { %v341_v0 = vsel %vm2388_vm4, %v336_v55, %v340_v38  ;;  %2143 = vmatprep.mubr.msk.bf16.mxu0 %vm356_vm3, %v1930_v16  ;;  %v1927_v56 = vrot.slane %v544_v52, 9  ;;  %v1932_v3 = vcombine.low %v584_v61, %v588_v34  ;;  %v591_v18 = vrot.slane %v2429_v33, 5  ;;  %v1961_v38 = vld [vmem:[%s2331_s8 + $0x20] sm:$0xf]  ;;  %v1965_v50 = vld [vmem:[%s2331_s8 + $0x30] sm:$0xf] }
  0x2b   : > { %v1908_v2 = vcombine.low %v327_v17, %v341_v0  ;;  %v1928_v19 = vrot.slane %v545_v54, 9  ;;  %v595_v22 = vrot.slane %v2436_v43, 5  ;;  %v835_v23 = vshrl.u32 %v1955_v48, 16 }
  0x2c   : > { %v838_v5 = vshll.u32 %v1955_v48, 16  ;;  %v844_v35 = vshll.u32 %v2489_v62, 16  ;;  %v2514_v60 = vsel %vm2456_vm7, %v1927_v56, %v591_v18  ;;  %v849_v29 = vshrl.u32 %v1957_v59, 16 }
  0x2d   : > { %2128 = vmatmul.mubr.msk.bf16.vlgmr.msra.gmra.mxu1 %vm356_vm3, %v1908_v2  ;;  %v852_v33 = vshll.u32 %v1957_v59, 16  ;;  %v858_v30 = vshll.u32 %v2502_v1, 16  ;;  %v596_v43 = vsel %vm2456_vm7, %v1928_v19, %v595_v22  ;;  %v837_v39 = vrot.slane %v835_v23, 4  ;;  %v2562_v23 = vld [vmem:[%s2331_s8 + $0x3c] sm:$0x1] }
  0x2e   : > { %2132 = vmatpush3.bf16.msra.mxu1 %v2318_v7  ;;  %2133 = vmatprep.mubr.msk.bf16.mxu1 %vm356_vm3, %v1913_v36  ;;  %v840_v63 = vrot.slane %v838_v5, 5  ;;  %v846_v40 = vrot.slane %v844_v35, 5  ;;  %v1933_v7 = vcombine.low %v2514_v60, %v596_v43  ;;  %v851_v45 = vrot.slane %v849_v29, 4  ;;  %v1969_v29 = vld [vmem:[%s2331_s8 + $0x40] sm:$0xf] }
  0x2f   : > { %2217 = vmatprep.subr.msk.bf16.mxu1 %vm369_vm0, %v2304_v4  ;;  %v854_v49 = vrot.slane %v852_v33, 5  ;;  %v860_v14 = vrot.slane %v858_v30, 5  ;;  %2144 = vmatmul.mubr.msk.bf16.vlgmr.msra.gmra.mxu0 %vm356_vm3, %v1931_v8  ;;  %v863_v52 = vshrl.u32 %v1959_v21, 16  ;;  %v866_v53 = vshll.u32 %v1959_v21, 16  ;;  %v1967_v21 = vld [vmem:[%s2331_s8 + $0x38] sm:$0xf] }
  0x30   : > { %v841_v36 = vor.u32 %v840_v63, %v837_v39  ;;  %v872_v44 = vshll.u32 %v2509_v28, 16  ;;  %2162 = vmatpush3.bf16.msra.mxu0 %v2339_v11  ;;  %2147 = vmatprep.mubr.msk.bf16.mxu0 %vm356_vm3, %v1932_v3  ;;  %v877_v54 = vshrl.u32 %v1961_v38, 16  ;;  %v880_v55 = vshll.u32 %v1961_v38, 16  ;;  %v2552_v3 = vld [vmem:[%s2331_s8 + $0x34] sm:$0x1] }
  0x31   : > { %v855_v4 = vor.u32 %v854_v49, %v851_v45  ;;  %v886_v16 = vshll.u32 %v2526_v42, 16  ;;  %v865_v57 = vrot.slane %v863_v52, 4  ;;  %v868_v17 = vrot.slane %v866_v53, 5  ;;  %2220 = vmatprep.subr.msk.bf16.mxu0 %vm369_vm0, %v2326_v9  ;;  %v2577_v43 = vld [vmem:[%s2331_s8 + $0x44] sm:$0x1] }
  0x32   : > { %v842_v24 = vrot.slane %v841_v36, 4  ;;  %v874_v58 = vrot.slane %v872_v44, 5  ;;  %v879_v48 = vrot.slane %v877_v54, 4  ;;  %v882_v0 = vrot.slane %v880_v55, 5  ;;  %v1980_v63 = vld [vmem:[%s2331_s8 + $0x8] sm:$0xe] }
  0x33   : > { %v856_v61 = vrot.slane %v855_v4, 4  ;;  %v888_v11 = vrot.slane %v886_v16, 5  ;;  %v869_v34 = vor.u32 %v868_v17, %v865_v57  ;;  %v891_v56 = vshrl.u32 %v1963_v15, 16  ;;  %v1981_v52 = vld [vmem:[%s2331_s8 + $0x10] sm:$0xe] }
  0x34   : > { %v847_v8 = vsel %vm2388_vm4, %v842_v24, %v846_v40  ;;  %v894_v59 = vshll.u32 %v1963_v15, 16  ;;  %v883_v9 = vor.u32 %v882_v0, %v879_v48  ;;  %v900_v18 = vshll.u32 %v2535_v47, 16  ;;  %v2236_v40 = vld [vmem:[%s2331_s8 + $0x8] ss:$8 sps:$4 sm:$0xff]   ;;  %v2038_v54 = vld [vmem:[%s2870_s1 + $0xe] sm:$0x3] }
  0x35   : > { %2134 = vmatmul.mubr.msk.bf16.vlgmr.msra.gmra.mxu1 %vm356_vm3, %v1914_v25  ;;  %v861_v2 = vsel %vm2388_vm4, %v856_v61, %v860_v14  ;;  %v905_v19 = vshrl.u32 %v1965_v50, 16  ;;  %v870_v51 = vrot.slane %v869_v34, 4  ;;  %v893_v25 = vrot.slane %v891_v56, 4  ;;  %v2063_v17 = vld [vmem:[%s2870_s1 + $0x10] sm:$0x3] }
  0x36   : > { %2152 = vmatpush3.bf16.msra.mxu1 %v2335_v10  ;;  %2137 = vmatprep.mubr.msk.bf16.mxu1 %vm356_vm3, %v1915_v37  ;;  %v1972_v46 = vcombine.low %v847_v8, %v861_v2  ;;  %v896_v22 = vrot.slane %v894_v59, 5  ;;  %v884_v5 = vrot.slane %v883_v9, 4  ;;  %v902_v35 = vrot.slane %v900_v18, 5  ;;  %v2237_v8 = vld [vmem:[%s2331_s8 + $0x18] ss:$8 sps:$4 sm:$0xff]  }
  0x37   : > { %2219 = vmatprep.subr.msk.bf16.mxu1 %vm369_vm0, %v2315_v6  ;;  %v907_v10 = vrot.slane %v905_v19, 4  ;;  %v908_v60 = vshll.u32 %v1965_v50, 16  ;;  %2148 = vmatmul.mubr.msk.bf16.gmra.mxu0 %vm356_vm3, %v1933_v7  ;;  %v875_v26 = vsel %vm2388_vm4, %v870_v51, %v874_v58  ;;  %v914_v37 = vshll.u32 %v2552_v3, 16  ;;  %v1983_v59 = vld [vmem:[%s2331_s8 + $0x20] sm:$0xe] }
  0x38   : > { %v897_v31 = vor.u32 %v896_v22, %v893_v25  ;;  %v919_v33 = vshrl.u32 %v1967_v21, 16  ;;  %v1916_v30 = vcombine.low %v2419_v27, %v2426_v32  ;;  %2163 = vmatprep.mubr.msk.bf16.mxu0 %vm356_vm3, %v1972_v46  ;;  %v889_v6 = vsel %vm2388_vm4, %v884_v5, %v888_v11  ;;  %v1982_v11 = vld [vmem:[%s2331_s8 + $0x18] sm:$0xe]  ;;  %v2238_v2 = vld [vmem:[%s2331_s8 + $0x28] ss:$8 sps:$4 sm:$0xff]  }
  0x39   : > { %v910_v38 = vrot.slane %v908_v60, 5  ;;  %v922_v39 = vshll.u32 %v1967_v21, 16  ;;  %v1973_v7 = vcombine.low %v875_v26, %v889_v6  ;;  %v928_v14 = vshll.u32 %v2562_v23, 16  ;;  %v1984_v19 = vld [vmem:[%s2331_s8 + $0x28] sm:$0xe] }
  0x3a   : > { %v898_v45 = vrot.slane %v897_v31, 4  ;;  %v921_v49 = vrot.slane %v919_v33, 4  ;;  %v916_v36 = vrot.slane %v914_v37, 5  ;;  %v933_v32 = vshrl.u32 %v1969_v29, 16  ;;  %v1985_v25 = vld [vmem:[%s2331_s8 + $0x30] sm:$0xe] }
  0x3b   : > { %v911_v15 = vor.u32 %v910_v38, %v907_v10  ;;  %v924_v27 = vrot.slane %v922_v39, 5  ;;  %v936_v44 = vshll.u32 %v1969_v29, 16  ;;  %v942_v50 = vshll.u32 %v2577_v43, 16  ;;  %v1986_v22 = vld [vmem:[%s2331_s8 + $0x38] sm:$0xe] }
  0x3c   : > { %v903_v53 = vsel %vm2388_vm4, %v898_v45, %v902_v35  ;;  %v1988_v4 = vrot.slane %v1980_v63, 9  ;;  %v935_v24 = vrot.slane %v933_v32, 4  ;;  %v1074_v57 = vrot.slane %v2489_v62, 5  ;;  %v1987_v60 = vld [vmem:[%s2331_s8 + $0x40] sm:$0xe] }
  0x3d   : > { %2138 = vmatmul.mubr.msk.bf16.gmra.mxu1 %vm356_vm3, %v1916_v30  ;;  %v912_v55 = vrot.slane %v911_v15, 4  ;;  %v925_v16 = vor.u32 %v924_v27, %v921_v49  ;;  %v930_v58 = vrot.slane %v928_v14, 5  ;;  %v938_v61 = vrot.slane %v936_v44, 5  ;;  %v2240_v29 = vld [vmem:[%s2331_s8 + $0x10] ss:$8 sps:$4 sm:$0xff]  }
  0x3e   : > { %2153 = vmatprep.mubr.msk.bf16.mxu1 %vm356_vm3, %v2236_v40  ;;  %v1989_v48 = vrot.slane %v1981_v52, 9  ;;  %v1078_v0 = vrot.slane %v2502_v1, 5  ;;  %v944_v56 = vrot.slane %v942_v50, 5  ;;  %v2607_v1 = vsel %vm2456_vm7, %v1988_v4, %v1074_v57  ;;  %v2022_v40 = vld [vmem:[%s2331_s8 + $0x10] sm:$0xf] }
  0x3f   : > { %v917_v34 = vsel %vm2388_vm4, %v912_v55, %v916_v36  ;;  %v926_v62 = vrot.slane %v925_v16, 4  ;;  %2164 = vmatmul.mubr.msk.bf16.vlgmr.msra.gmra.mxu0 %vm356_vm3, %v1973_v7  ;;  %v939_v18 = vor.u32 %v938_v61, %v935_v24  ;;  %v1990_v46 = vrot.slane %v1982_v11, 9  ;;  %v2023_v7 = vld [vmem:[%s2331_s8 + $0x14] sm:$0x1]  ;;  %v2025_v49 = vld [vmem:[%s2331_s8 + $0x1c] sm:$0x1] }
  0x40   : > { %v1974_v9 = vcombine.low %v903_v53, %v917_v34  ;;  %2182 = vmatpush3.bf16.msra.mxu0 %v2347_v13  ;;  %v2611_v21 = vsel %vm2456_vm7, %v1989_v48, %v1078_v0  ;;  %v2614_v51 = vsel %vm369_vm0, %v2038_v54, 0  ;;  %v1082_v35 = vrot.slane %v2509_v28, 5  ;;  %v2047_v32 = vld [vmem:[%s2331_s8 + $0x10] sm:$0xe]  ;;  %v2048_v50 = vld [vmem:[%s2331_s8 + $0x18] sm:$0xe] }
  0x41   : > { %v931_v5 = vsel %vm2388_vm4, %v926_v62, %v930_v58  ;;  %v940_v13 = vrot.slane %v939_v18, 4  ;;  %v1991_v10 = vrot.slane %v1983_v59, 9  ;;  %2222 = vmatprep.subr.msk.bf16.mxu0 %vm369_vm0, %v2063_v17  ;;  %v1086_v26 = vrot.slane %v2526_v42, 5  ;;  %v2239_v4 = vld [vmem:[%s2331_s8 + $0x38] ss:$8 sps:$4 sm:$0xff]  }
  0x42   : > { %2167 = vmatprep.mubr.msk.bf16.mxu0 %vm356_vm3, %v1974_v9  ;;  %v2627_v31 = vsel %vm369_vm0, %v2063_v17, 0  ;;  %v1992_v37 = vrot.slane %v1984_v19, 9  ;;  %v1090_v33 = vrot.slane %v2535_v47, 5  ;;  %v1993_v28 = vrot.slane %v1985_v25, 9  ;;  %v2026_v57 = vld [vmem:[%s2331_s8 + $0x20] sm:$0xf] }
  0x43   : > { %v945_v30 = vsel %vm2388_vm4, %v940_v13, %v944_v56  ;;  %v1094_v6 = vrot.slane %v2552_v3, 5  ;;  %v1994_v38 = vrot.slane %v1986_v22, 9  ;;  %v1098_v42 = vrot.slane %v2562_v23, 5  ;;  %v2024_v23 = vld [vmem:[%s2331_s8 + $0x18] sm:$0xf] }
  0x44   : > { %v1975_v39 = vcombine.low %v931_v5, %v945_v30  ;;  %v1995_v63 = vrot.slane %v1987_v60, 9  ;;  %v1997_v47 = vcombine.low %v2607_v1, %v2611_v21  ;;  %v2643_v3 = vsel %vm2456_vm7, %v1990_v46, %v1082_v35  ;;  %v2027_v0 = vld [vmem:[%s2331_s8 + $0x24] sm:$0x1]  ;;  %v2028_v62 = vld [vmem:[%s2331_s8 + $0x28] sm:$0xf] }
  0x45   : > { %2154 = vmatmul.mubr.msk.bf16.vlgmr.msra.gmra.mxu1 %vm356_vm3, %v2237_v8  ;;  %v1102_v45 = vrot.slane %v2577_v43, 5  ;;  %v1342_v14 = vshrl.u32 %v2022_v40, 16  ;;  %v1345_v15 = vshll.u32 %v2022_v40, 16  ;;  %v1356_v36 = vshrl.u32 %v2024_v23, 16  ;;  %v2241_v59 = vld [vmem:[%s2331_s8 + $0x20] ss:$8 sps:$4 sm:$0xff]  }
  0x46   : > { %2172 = vmatpush3.bf16.msra.mxu1 %v2343_v12  ;;  %2157 = vmatprep.mubr.msk.bf16.mxu1 %vm356_vm3, %v2238_v2  ;;  %v2651_v12 = vsel %vm2456_vm7, %v1991_v10, %v1086_v26  ;;  %v1359_v27 = vshll.u32 %v2024_v23, 16  ;;  %v2657_v43 = vsel %vm2456_vm7, %v1992_v37, %v1090_v33  ;;  %v1351_v53 = vshll.u32 %v2023_v7, 16  ;;  %v2242_v1 = vld [vmem:[%s2331_s8 + $0x30] ss:$8 sps:$4 sm:$0xff]   ;;  %v2049_v60 = vld [vmem:[%s2331_s8 + $0x20] sm:$0xe] }
  0x47   : > { %2221 = vmatprep.subr.msk.bf16.mxu1 %vm369_vm0, %v2038_v54  ;;  %2168 = vmatmul.mubr.msk.bf16.gmra.mxu0 %vm356_vm3, %v1975_v39  ;;  %v1344_v52 = vrot.slane %v1342_v14, 4  ;;  %v1365_v44 = vshll.u32 %v2025_v49, 16  ;;  %v2664_v54 = vsel %vm2456_vm7, %v1993_v28, %v1094_v6  ;;  %v2668_v55 = vsel %vm2456_vm7, %v1994_v38, %v1098_v42  ;;  %v2029_v30 = vld [vmem:[%s2331_s8 + $0x2c] sm:$0x1]  ;;  %v2030_v6 = vld [vmem:[%s2331_s8 + $0x30] sm:$0xf] }
  0x48   : > { %2183 = vmatprep.mubr.msk.bf16.mxu0 %vm356_vm3, %v2240_v29  ;;  %v1347_v16 = vrot.slane %v1345_v15, 5  ;;  %v1358_v24 = vrot.slane %v1356_v36, 4  ;;  %v2673_v17 = vsel %vm2456_vm7, %v1995_v63, %v1102_v45  ;;  %v1361_v58 = vrot.slane %v1359_v27, 5  ;;  %v2050_v29 = vld [vmem:[%s2331_s8 + $0x28] sm:$0xe] }
  0x49   : > { %v2055_v61 = vrot.slane %v2047_v32, 9  ;;  %v1581_v48 = vrot.slane %v2023_v7, 5  ;;  %v2056_v8 = vrot.slane %v2048_v50, 9  ;;  %v1585_v34 = vrot.slane %v2025_v49, 5  ;;  %v2032_v40 = vld [vmem:[%s2331_s8 + $0x38] sm:$0xf] }
  0x4a   : > { %v1348_v11 = vor.u32 %v1347_v16, %v1344_v52  ;;  %v1370_v56 = vshrl.u32 %v2026_v57, 16  ;;  %v1353_v2 = vrot.slane %v1351_v53, 5  ;;  %v1362_v9 = vor.u32 %v1361_v58, %v1358_v24  ;;  %v2243_v23 = vld [vmem:[%s2331_s8 + $0x40] ss:$8 sps:$4 sm:$0xff]   ;;  %v2031_v15 = vld [vmem:[%s2331_s8 + $0x34] sm:$0x1] }
  0x4b   : > { %v1367_v18 = vrot.slane %v1365_v44, 5  ;;  %v1373_v19 = vshll.u32 %v2026_v57, 16  ;;  %v1379_v25 = vshll.u32 %v2027_v0, 16  ;;  %v1384_v22 = vshrl.u32 %v2028_v62, 16  ;;  %v2051_v53 = vld [vmem:[%s2331_s8 + $0x30] sm:$0xe] }
  0x4c   : > { %v1349_v21 = vrot.slane %v1348_v11, 4  ;;  %v1372_v46 = vrot.slane %v1370_v56, 4  ;;  %v1998_v5 = vcombine.low %v2643_v3, %v2651_v12  ;;  %v1999_v13 = vcombine.low %v2657_v43, %v2664_v54  ;;  %v2033_v43 = vld [vmem:[%s2331_s8 + $0x3c] sm:$0x1]  ;;  %v2052_v16 = vld [vmem:[%s2331_s8 + $0x38] sm:$0xe] }
  0x4d   : > { %2158 = vmatmul.mubr.msk.bf16.gmra.mxu1 %vm356_vm3, %v2239_v4  ;;  %v1363_v35 = vrot.slane %v1362_v9, 4  ;;  %v1375_v10 = vrot.slane %v1373_v19, 5  ;;  %v2000_v26 = vcombine.low %v2668_v55, %v2673_v17  ;;  %v1582_v37 = vsel %vm2456_vm7, %v2055_v61, %v1581_v48  ;;  %v2036_v9 = vld [vmem:[%s2331_s8 + $0x48] sm:$0xf] }
  0x4e   : > { %2173 = vmatprep.mubr.msk.bf16.mxu1 %vm356_vm3, %v1997_v47  ;;  %v1586_v33 = vsel %vm2456_vm7, %v2056_v8, %v1585_v34  ;;  %v1387_v28 = vshll.u32 %v2028_v62, 16  ;;  %v1354_v38 = vsel %vm2388_vm4, %v1349_v21, %v1353_v2  ;;  %v1386_v63 = vrot.slane %v1384_v22, 4  ;;  %v2034_v34 = vld [vmem:[%s2331_s8 + $0x40] sm:$0xf] }
  0x4f   : > { %2184 = vmatmul.mubr.msk.bf16.vlgmr.msra.gmra.mxu0 %vm356_vm3, %v2241_v59  ;;  %v1368_v39 = vsel %vm2388_vm4, %v1363_v35, %v1367_v18  ;;  %v1376_v42 = vor.u32 %v1375_v10, %v1372_v46  ;;  %v2057_v47 = vrot.slane %v2049_v60, 9  ;;  %v1589_v3 = vrot.slane %v2027_v0, 5  ;;  %v2037_v60 = vld [vmem:[%s2331_s8 + $0x4c] sm:$0x1] }
  0x50   : > { %2202 = vmatpush3.bf16.msra.mxu0 %v2627_v31  ;;  %2187 = vmatprep.mubr.msk.bf16.mxu0 %vm356_vm3, %v2242_v1  ;;  %v1389_v7 = vrot.slane %v1387_v28, 5  ;;  %v2058_v45 = vrot.slane %v2050_v29, 9  ;;  %v2704_v49 = vrot.slane %v1379_v25, 5  ;;  %v1393_v14 = vshll.u32 %v2029_v30, 16  ;;  %v2035_v25 = vld [vmem:[%s2331_s8 + $0x44] sm:$0x1] }
  0x51   : > { %v1593_v12 = vrot.slane %v2029_v30, 5  ;;  %v1398_v36 = vshrl.u32 %v2030_v6, 16  ;;  %v2039_v27 = vcombine.low %v1354_v38, %v1368_v39  ;;  %v2064_v32 = vcombine.low %v1582_v37, %v1586_v33  ;;  %v2053_v37 = vld [vmem:[%s2331_s8 + $0x40] sm:$0xe]  ;;  %v2054_v38 = vld [vmem:[%s2331_s8 + $0x48] sm:$0xe] }
  0x52   : > { %v1401_v52 = vshll.u32 %v2030_v6, 16  ;;  %v1412_v31 = vshrl.u32 %v2032_v40, 16  ;;  %v2709_v44 = vrot.slane %v1376_v42, 4  ;;  %v1390_v50 = vor.u32 %v1389_v7, %v1386_v63 }
  0x53   : > { %v1400_v4 = vrot.slane %v1398_v36, 4  ;;  %v1415_v54 = vshll.u32 %v2032_v40, 16  ;;  %v1590_v24 = vsel %vm2456_vm7, %v2057_v47, %v1589_v3  ;;  %v1594_v57 = vsel %vm2456_vm7, %v2058_v45, %v1593_v12 }
  0x54   : > { %v1403_v58 = vrot.slane %v1401_v52, 5  ;;  %v1407_v61 = vshll.u32 %v2031_v15, 16  ;;  %v1414_v48 = vrot.slane %v1412_v31, 4  ;;  %v1421_v11 = vshll.u32 %v2033_v43, 16 }
  0x55   : > { %2174 = vmatmul.mubr.msk.bf16.vlgmr.msra.gmra.mxu1 %vm356_vm3, %v1998_v5  ;;  %v1417_v0 = vrot.slane %v1415_v54, 5  ;;  %v2059_v8 = vrot.slane %v2051_v53, 9  ;;  %v1395_v62 = vrot.slane %v1393_v14, 5  ;;  %v1597_v59 = vrot.slane %v2031_v15, 5 }
  0x56   : > { %2192 = vmatpush3.bf16.msra.mxu1 %v2614_v51  ;;  %2177 = vmatprep.mubr.msk.bf16.mxu1 %vm356_vm3, %v1999_v13  ;;  %v1404_v56 = vor.u32 %v1403_v58, %v1400_v4  ;;  %v2060_v2 = vrot.slane %v2052_v16, 9  ;;  %v1382_v51 = vsel %vm2388_vm4, %v2709_v44, %v2704_v49  ;;  %v1391_v18 = vrot.slane %v1390_v50, 4 }
  0x57   : > { %2188 = vmatmul.mubr.msk.bf16.gmra.mxu0 %vm356_vm3, %v2243_v23  ;;  %v1418_v19 = vor.u32 %v1417_v0, %v1414_v48  ;;  %v1601_v1 = vrot.slane %v2033_v43, 5  ;;  %v2065_v21 = vcombine.low %v1590_v24, %v1594_v57  ;;  %v1409_v46 = vrot.slane %v1407_v61, 5 }
  0x58   : > { %2203 = vmatprep.mubr.msk.bf16.mxu0 %vm356_vm3, %v2064_v32  ;;  %v1426_v22 = vshrl.u32 %v2034_v34, 16  ;;  %v1429_v5 = vshll.u32 %v2034_v34, 16  ;;  %v1423_v13 = vrot.slane %v1421_v11, 5  ;;  %v1598_v35 = vsel %vm2456_vm7, %v2059_v8, %v1597_v59 }
  0x59   : > { %v1602_v10 = vsel %vm2456_vm7, %v2060_v2, %v1601_v1  ;;  %v1440_v29 = vshrl.u32 %v2036_v9, 16  ;;  %v1405_v33 = vrot.slane %v1404_v56, 4  ;;  %v1419_v30 = vrot.slane %v1418_v19, 4 }
  0x5a   : > { %v1428_v28 = vrot.slane %v1426_v22, 4  ;;  %v1431_v6 = vrot.slane %v1429_v5, 5  ;;  %v1396_v39 = vsel %vm2388_vm4, %v1391_v18, %v1395_v62  ;;  %v1435_v42 = vshll.u32 %v2035_v25, 16 }
  0x5b   : > { %v1442_v63 = vrot.slane %v1440_v29, 4  ;;  %v1443_v40 = vshll.u32 %v2036_v9, 16  ;;  %v2066_v7 = vcombine.low %v1598_v35, %v1602_v10  ;;  %v1449_v3 = vshll.u32 %v2037_v60, 16 }
  0x5c   : > { %v1432_v47 = vor.u32 %v1431_v6, %v1428_v28  ;;  %v2061_v45 = vrot.slane %v2053_v37, 9  ;;  %v1605_v49 = vrot.slane %v2035_v25, 5  ;;  %v2062_v14 = vrot.slane %v2054_v38, 9 }
  0x5d   : > { %2178 = vmatmul.mubr.msk.bf16.gmra.mxu1 %vm356_vm3, %v2000_v26  ;;  %v1445_v23 = vrot.slane %v1443_v40, 5  ;;  %v1609_v12 = vrot.slane %v2037_v60, 5  ;;  %v1410_v15 = vsel %vm2388_vm4, %v1405_v33, %v1409_v46  ;;  %v1424_v36 = vsel %vm2388_vm4, %v1419_v30, %v1423_v13 }
  0x5e   : > { %2193 = vmatprep.mubr.msk.bf16.mxu1 %vm356_vm3, %v2039_v27  ;;  %v2040_v17 = vcombine.low %v1382_v51, %v1396_v39  ;;  %v1437_v26 = vrot.slane %v1435_v42, 5  ;;  %v1606_v27 = vsel %vm2456_vm7, %v2061_v45, %v1605_v49  ;;  %v2041_v43 = vcombine.low %v1410_v15, %v1424_v36 }
  0x5f   : > { %2204 = vmatmul.mubr.msk.bf16.vlgmr.msra.gmra.mxu0 %vm356_vm3, %v2065_v21  ;;  %v1446_v55 = vor.u32 %v1445_v23, %v1442_v63  ;;  %v1610_v32 = vsel %vm2456_vm7, %v2062_v14, %v1609_v12  ;;  %v1433_v52 = vrot.slane %v1432_v47, 4  ;;  %v1451_v53 = vrot.slane %v1449_v3, 5 }
  0x60   : > { %2207 = vmatprep.mubr.msk.bf16.mxu0 %vm356_vm3, %v2066_v7  ;;  %v2067_v44 = vcombine.low %v1606_v27, %v1610_v32  ;;  %vm1736_vm8 = vcmask 60416   ;;  %vm1745_vm9 = vcmask 64512   ;;  %vm1805_vm10 = vcmask 1040384  }
  0x61   : > { %v1447_v31 = vrot.slane %v1446_v55, 4  ;;  %v1438_v50 = vsel %vm2388_vm4, %v1433_v52, %v1437_v26  ;;  %vm1807_vm11 = vcmask 58368  }
  0x63   : > { %v1452_v4 = vsel %vm2388_vm4, %v1447_v31, %v1451_v53 }
  0x64   : > { %v2042_v54 = vcombine.low %v1438_v50, %v1452_v4 }
  0x65   : > { %2194 = vmatmul.mubr.msk.bf16.vlgmr.msra.gmra.mxu1 %vm356_vm3, %v2040_v17 }
  0x66   : > { %2197 = vmatprep.mubr.msk.bf16.mxu1 %vm356_vm3, %v2041_v43 }
  0x67   : > { %2208 = vmatmul.mubr.msk.bf16.gmra.mxu0 %vm356_vm3, %v2067_v44 }
  0x6d   : > { %2198 = vmatmul.mubr.msk.bf16.gmra.mxu1 %vm356_vm3, %v2042_v54 }
  0xe7   : > { %v2125_v20 = vpop.f32.mrf.mxu0 }
  0xe9   : > { %v407_v16 = vpop.f32.mrf.mxu0 }
  0xeb   : > { %v2126_v24 = vpop.f32.mrf.mxu0 }
  0xed   : > { %v2129_v57 = vpop.f32.mrf.mxu1  ;;  %v410_v58 = vpop.f32.mrf.mxu0 }
  0xef   : > { %v423_v61 = vpop.f32.mrf.mxu1  ;;  %v2145_v48 = vpop.f32.mrf.mxu0 }
  0xf1   : > { %v2130_v0 = vpop.f32.mrf.mxu1  ;;  %v660_v11 = vpop.f32.mrf.mxu0 }
  0xf3   : > { %v2760_v8 = vpop.f32.mrf.mxu1  ;;  %v2146_v34 = vpop.f32.mrf.mxu0 }
  0xf5   : > { %v2135_v62 = vpop.f32.mrf.mxu1  ;;  %v663_v41 = vpop.f32.mrf.mxu0 }
  0xf6   : > { %v516_v47 = vadd.f32 %v2135_v62, %v2125_v20 }
  0xf7   : > { %v507_v56 = vpop.f32.mrf.mxu1  ;;  %v2149_v59 = vpop.f32.mrf.mxu0 }
  0xf8   : > { %v508_v23 = vadd.f32 %v507_v56, %v407_v16  ;;  %v693_v12 = vadd.f32 %v2145_v48, %v516_v47 }
  0xf9   : > { %v2136_v2 = vpop.f32.mrf.mxu1  ;;  %v676_v9 = vpop.f32.mrf.mxu0 }
  0xfa   : > { %v519_v15 = vadd.f32 %v2136_v2, %v2126_v24  ;;  %v691_v17 = vadd.f32 %v660_v11, %v508_v23 }
  0xfb   : > { %v510_v51 = vpop.f32.mrf.mxu1  ;;  %v2150_v18 = vpop.f32.mrf.mxu0 }
  0xfc   : > { %v511_v32 = vadd.f32 %v510_v51, %v410_v58  ;;  %v694_v31 = vadd.f32 %v2146_v34, %v519_v15 }
  0xfd   : > { %v2139_v19 = vpop.f32.mrf.mxu1  ;;  %v2762_v1 = vpop.f32.mrf.mxu0 }
  0xfe   : > { %v532_v43 = vadd.f32 %v2139_v19, %v2129_v57  ;;  %v692_v24 = vadd.f32 %v663_v41, %v511_v32 }
  0xff   : > { %v523_v21 = vpop.f32.mrf.mxu1  ;;  %v2165_v46 = vpop.f32.mrf.mxu0 }
 0x100   : > { %v524_v4 = vadd.f32 %v523_v21, %v423_v61  ;;  %v697_v48 = vadd.f32 %v2149_v59, %v532_v43 }
 0x101   : > { %v2140_v25 = vpop.f32.mrf.mxu1  ;;  %v1009_v22 = vpop.f32.mrf.mxu0 }
 0x102   : > { %v535_v62 = vadd.f32 %v2140_v25, %v2130_v0  ;;  %v695_v34 = vadd.f32 %v676_v9, %v524_v4 }
 0x103   : > { %v526_v5 = vpop.f32.mrf.mxu1  ;;  %v2166_v13 = vpop.f32.mrf.mxu0 }
 0x104   : > { %v698_v23 = vadd.f32 %v2150_v18, %v535_v62  ;;  %v527_v61 = vadd.f32 %v526_v5, %v2760_v8  ;;  %v2787_v8 = vld [vmem:[%s2871_s2] ss:$0 sm:$0xff] }
 0x105   : > { %v2155_v35 = vpop.f32.mrf.mxu1  ;;  %v1012_v10 = vpop.f32.mrf.mxu0 }
 0x106   : > { %v812_v26 = vadd.f32 %v2155_v35, %v693_v12  ;;  %v696_v9 = vadd.f32 %v2762_v1, %v527_v61 }
 0x107   : > { %v779_v60 = vpop.f32.mrf.mxu1  ;;  %v2169_v29 = vpop.f32.mrf.mxu0 }
 0x108   : > { %v810_v53 = vadd.f32 %v779_v60, %v691_v17  ;;  %v1042_v54 = vadd.f32 %v2165_v46, %v812_v26 }
 0x109   : > { %v2156_v37 = vpop.f32.mrf.mxu1  ;;  %v2764_v33 = vpop.f32.mrf.mxu0 }
 0x10a   : > { %v813_v20 = vadd.f32 %v2156_v37, %v694_v31  ;;  %v1040_v56 = vadd.f32 %v1009_v22, %v810_v53 }
 0x10b   : > { %v782_v30 = vpop.f32.mrf.mxu1  ;;  %v2766_v28 = vpop.f32.mrf.mxu0 }
 0x10c   : > { %v811_v58 = vadd.f32 %v782_v30, %v692_v24  ;;  %v1043_v19 = vadd.f32 %v2166_v13, %v813_v20 }
 0x10d   : > { %v2159_v6 = vpop.f32.mrf.mxu1  ;;  %v2768_v38 = vpop.f32.mrf.mxu0 }
 0x10e   : > { %v816_v57 = vadd.f32 %v2159_v6, %v697_v48  ;;  %v1041_v59 = vadd.f32 %v1012_v10, %v811_v58 }
 0x10f   : > { %v795_v39 = vpop.f32.mrf.mxu1  ;;  %v2185_v42 = vpop.f32.mrf.mxu0 }
 0x110   : > { %v814_v46 = vadd.f32 %v795_v39, %v695_v34  ;;  %v1046_v25 = vadd.f32 %v2169_v29, %v816_v57 }
 0x111   : > { %v2160_v63 = vpop.f32.mrf.mxu1  ;;  %v1286_v40 = vpop.f32.mrf.mxu0 }
 0x112   : > { %v817_v22 = vadd.f32 %v2160_v63, %v698_v23  ;;  %v1044_v5 = vadd.f32 %v2764_v33, %v814_v46 }
 0x113   : > { %v2770_v7 = vpop.f32.mrf.mxu1  ;;  %v2186_v3 = vpop.f32.mrf.mxu0 }
 0x114   : > { %v815_v63 = vadd.f32 %v2770_v7, %v696_v9 }
 0x115   : > { %v2175_v45 = vpop.f32.mrf.mxu1  ;;  %v2772_v49 = vpop.f32.mrf.mxu0 }
 0x116   : > { %v1200_v2 = vadd.f32 %v2175_v45, %v1042_v54 }
 0x117   : > { %v1167_v14 = vpop.f32.mrf.mxu1  ;;  %v2774_v36 = vpop.f32.mrf.mxu0 }
 0x118   : > { %v1198_v60 = vadd.f32 %v1167_v14, %v1040_v56  ;;  %v1319_v37 = vadd.f32 %v2185_v42, %v1200_v2  ;;  %v1047_v42 = vadd.f32 %v2766_v28, %v817_v22 }
 0x119   : > { %v2176_v55 = vpop.f32.mrf.mxu1  ;;  %v2776_v27 = vpop.f32.mrf.mxu0 }
 0x11a   : > { %v1201_v41 = vadd.f32 %v2176_v55, %v1043_v19  ;;  %v1317_v30 = vadd.f32 %v1286_v40, %v1198_v60 }
 0x11b   : > { %v1170_v52 = vpop.f32.mrf.mxu1  ;;  %v2778_v44 = vpop.f32.mrf.mxu0 }
 0x11c   : > { %v1199_v13 = vadd.f32 %v1170_v52, %v1041_v59  ;;  %v1320_v39 = vadd.f32 %v2186_v3, %v1201_v41 }
 0x11d   : > { %v2179_v50 = vpop.f32.mrf.mxu1  ;;  %v2780_v16 = vpop.f32.mrf.mxu0 }
 0x11e   : > { %v1204_v14 = vadd.f32 %v2179_v50, %v1046_v25  ;;  %v1318_v32 = vadd.f32 %v2772_v49, %v1199_v13  ;;  %v1045_v49 = vadd.f32 %v2768_v38, %v815_v63 }
 0x11f   : > { %v1183_v11 = vpop.f32.mrf.mxu1  ;;  %v2205_v35 = vpop.f32.mrf.mxu0 }
 0x120   : > { %v1202_v1 = vadd.f32 %v1183_v11, %v1044_v5  ;;  %v1323_v33 = vadd.f32 %v2774_v36, %v1204_v14 }
 0x121   : > { %v2180_v51 = vpop.f32.mrf.mxu1  ;;  %v1674_v47 = vpop.f32.mrf.mxu0 }
 0x122   : > { %v1205_v7 = vadd.f32 %v2180_v51, %v1047_v42  ;;  %v1321_v53 = vadd.f32 %v2776_v27, %v1202_v1 }
 0x123   : > { %v1186_v21 = vpop.f32.mrf.mxu1  ;;  %v2206_v0 = vpop.f32.mrf.mxu0 }
 0x124   : > { %v1203_v24 = vadd.f32 %v1186_v21, %v1045_v49  ;;  %v1324_v38 = vadd.f32 %v2778_v44, %v1205_v7 }
 0x125   : > { %v2195_v45 = vpop.f32.mrf.mxu1  ;;  %v1677_v12 = vpop.f32.mrf.mxu0 }
 0x126   : > { %v1549_v6 = vadd.f32 %v2195_v45, %v1319_v37  ;;  %v1322_v34 = vadd.f32 %v2780_v16, %v1203_v24 }
 0x127   : > { %v1516_v18 = vpop.f32.mrf.mxu1  ;;  %v2209_v26 = vpop.f32.mrf.mxu0 }
 0x128   : > { %v1707_v10 = vadd.f32 %v2205_v35, %v1549_v6  ;;  %v1547_v29 = vadd.f32 %v1516_v18, %v1317_v30 }
 0x129   : > { %v2196_v40 = vpop.f32.mrf.mxu1  ;;  %v1690_v20 = vpop.f32.mrf.mxu0 }
 0x12a   : > { %v2794_v15 = vadd.f32 %v2787_v8, %v1707_v10  ;;  %v1705_v55 = vadd.f32 %v1674_v47, %v1547_v29  ;;  %v1550_v17 = vadd.f32 %v2196_v40, %v1320_v39 }
 0x12b   : > { %v1519_v28 = vpop.f32.mrf.mxu1  ;;  %v2210_v44 = vpop.f32.mrf.mxu0 }
 0x12c   : > { %v1730_v3 = vpack.c.bf16 %v2794_v15, %v2794_v15  ;;  %v2806_v43 = vadd.f32 %v2787_v8, %v1705_v55  ;;  %v1708_v52 = vadd.f32 %v2206_v0, %v1550_v17  ;;  %v1548_v36 = vadd.f32 %v1519_v28, %v1318_v32 }
 0x12d   : > { %v2199_v31 = vpop.f32.mrf.mxu1  ;;  %v1749_v37 = vsel %vm1745_vm9, %v2794_v15, 0.0  ;;  %v1693_v25 = vpop.f32.mrf.mxu0 }
 0x12e   : > { %1739 = vst.msk [vmem:[%s2801_s20 + $0x8] sm:$0xf] %vm1736_vm8, %v1730_v3  ;;  %v1728_v50 = vpack.c.bf16 %v2806_v43, %v2806_v43  ;;  %v2815_v4 = vadd.f32 %v2787_v8, %v1708_v52  ;;  %v1553_v54 = vadd.f32 %v2199_v31, %v1323_v33  ;;  %v1706_v48 = vadd.f32 %v1677_v12, %v1548_v36 }
 0x12f   : > { %v1532_v62 = vpop.f32.mrf.mxu1  ;;  %v1746_v19 = vsel %vm1745_vm9, %v2806_v43, 0.0 }
 0x130   : > { %1737 = vst.msk [vmem:[%s2801_s20] sm:$0xf] %vm1736_vm8, %v1728_v50  ;;  %v1731_v27 = vpack.c.bf16 %v2815_v4, %v2815_v4  ;;  %v1711_v11 = vadd.f32 %v2209_v26, %v1553_v54  ;;  %v1551_v56 = vadd.f32 %v1532_v62, %v1321_v53  ;;  %v1721_v2 = vadd.f32 %v2787_v8, %v1706_v48 }
 0x131   : > { %v2200_v35 = vpop.f32.mrf.mxu1  ;;  %v1751_v22 = vsel %vm1745_vm9, %v2815_v4, 0.0 }
 0x132   : > { %1740 = vst.msk [vmem:[%s2801_s20 + $0xc] sm:$0xf] %vm1736_vm8, %v1731_v27  ;;  %v1726_v58 = vadd.f32 %v2787_v8, %v1711_v11  ;;  %v1709_v57 = vadd.f32 %v1690_v20, %v1551_v56  ;;  %v1554_v51 = vadd.f32 %v2200_v35, %v1324_v38  ;;  %v1729_v60 = vpack.c.bf16 %v1721_v2, %v1721_v2 }
 0x133   : > { %v1747_v47 = vsel %vm1745_vm9, %v1721_v2, 0.0  ;;  %v1535_v23 = vpop.f32.mrf.mxu1 }
 0x134   : > { %v1748_v61 = vadd.f32 %v1747_v47, %v1746_v19  ;;  %v1734_v21 = vpack.c.bf16 %v1726_v58, %v1726_v58  ;;  %v1724_v46 = vadd.f32 %v2787_v8, %v1709_v57  ;;  %1738 = vst.msk [vmem:[%s2801_s20 + $0x4] sm:$0xf] %vm1736_vm8, %v1729_v60  ;;  %v1712_v41 = vadd.f32 %v2210_v44, %v1554_v51 }
 0x135   : > { %v1552_v16 = vadd.f32 %v1535_v23, %v1322_v34  ;;  %v1757_v10 = vsel %vm1745_vm9, %v1726_v58, 0.0 }
 0x136   : > { %v1750_v0 = vadd.f32 %v1749_v37, %v1748_v61  ;;  %1743 = vst.msk [vmem:[%s2801_s20 + $0x18] sm:$0xf] %vm1736_vm8, %v1734_v21  ;;  %v1732_v59 = vpack.c.bf16 %v1724_v46, %v1724_v46  ;;  %v1727_v45 = vadd.f32 %v2787_v8, %v1712_v41  ;;  %v1753_v12 = vsel %vm1745_vm9, %v1724_v46, 0.0 }
 0x137   : > { %v1710_v30 = vadd.f32 %v1693_v25, %v1552_v16 }
 0x138   : > { %1741 = vst.msk [vmem:[%s2801_s20 + $0x10] sm:$0xf] %vm1736_vm8, %v1732_v59  ;;  %v1752_v6 = vadd.f32 %v1751_v22, %v1750_v0  ;;  %v1735_v9 = vpack.c.bf16 %v1727_v45, %v1727_v45  ;;  %v1759_v42 = vsel %vm1745_vm9, %v1727_v45, 0.0 }
 0x139   : > { %v1725_v13 = vadd.f32 %v2787_v8, %v1710_v30 }
 0x13a   : > { %v1754_v14 = vadd.f32 %v1753_v12, %v1752_v6  ;;  %1744 = vst.msk [vmem:[%s2801_s20 + $0x1c] sm:$0xf] %vm1736_vm8, %v1735_v9 }
 0x13b   : > { %v1733_v18 = vpack.c.bf16 %v1725_v13, %v1725_v13  ;;  %v1755_v5 = vsel %vm1745_vm9, %v1725_v13, 0.0 }
 0x13c   : > { %v1756_v39 = vadd.f32 %v1755_v5, %v1754_v14 }
 0x13d   : > { %1742 = vst.msk [vmem:[%s2801_s20 + $0x14] sm:$0xf] %vm1736_vm8, %v1733_v18 }
 0x13e   : > { %v1758_v29 = vadd.f32 %v1757_v10, %v1756_v39 }
 0x140   : > { %v1760_v63 = vadd.f32 %v1759_v42, %v1758_v29 }
 0x142   : > { %v1761_v40 = vrot.slane %v1760_v63, 4 }
 0x144   : > { %v1762_v1 = vadd.f32 %v1761_v40, %v1760_v63 }
 0x146   : > { %v1763_v55 = vrot.slane %v1762_v1, 2 }
 0x148   : > { %v1764_v17 = vadd.f32 %v1763_v55, %v1762_v1 }
 0x14a   : > { %v1765_v8 = vrot.slane %v1764_v17, 1 }
 0x14c   : > { %v1766_v26 = vadd.f32 %v1765_v8, %v1764_v17 }
 0x14e   : > { %v1767_v32 = vmul.f32 0.015625, %v1766_v26 }
 0x150   : > { %v1768_v33 = vsub.f32 %v2806_v43, %v1767_v32  ;;  %v1769_v28 = vsub.f32 %v1721_v2, %v1767_v32  ;;  %v1770_v7 = vsub.f32 %v2794_v15, %v1767_v32  ;;  %v1771_v3 = vsub.f32 %v2815_v4, %v1767_v32 }
 0x151   : > { %v1772_v52 = vsub.f32 %v1724_v46, %v1767_v32  ;;  %v1773_v53 = vsub.f32 %v1725_v13, %v1767_v32  ;;  %v1774_v48 = vsub.f32 %v1726_v58, %v1767_v32  ;;  %v1775_v27 = vsub.f32 %v1727_v45, %v1767_v32 }
 0x152   : > { %v1776_v49 = vmul.f32 %v1768_v33, %v1768_v33  ;;  %v1777_v36 = vmul.f32 %v1769_v28, %v1769_v28  ;;  %v1778_v31 = vmul.f32 %v1770_v7, %v1770_v7  ;;  %v1779_v50 = vmul.f32 %v1771_v3, %v1771_v3 }
 0x153   : > { %v1780_v62 = vmul.f32 %v1772_v52, %v1772_v52  ;;  %v1781_v15 = vmul.f32 %v1773_v53, %v1773_v53  ;;  %v1782_v56 = vmul.f32 %v1774_v48, %v1774_v48  ;;  %v1783_v57 = vmul.f32 %v1775_v27, %v1775_v27 }
 0x154   : > { %v1784_v54 = vsel %vm1745_vm9, %v1776_v49, 0.0  ;;  %v1785_v20 = vsel %vm1745_vm9, %v1777_v36, 0.0  ;;  %v1787_v43 = vsel %vm1745_vm9, %v1778_v31, 0.0  ;;  %v1789_v4 = vsel %vm1745_vm9, %v1779_v50, 0.0 }
 0x155   : > { %v1786_v24 = vadd.f32 %v1785_v20, %v1784_v54  ;;  %v1791_v2 = vsel %vm1745_vm9, %v1780_v62, 0.0  ;;  %v1793_v51 = vsel %vm1745_vm9, %v1781_v15, 0.0  ;;  %v1795_v58 = vsel %vm1745_vm9, %v1782_v56, 0.0 }
 0x156   : > { %v1797_v19 = vsel %vm1745_vm9, %v1783_v57, 0.0 }
 0x157   : > { %v1788_v38 = vadd.f32 %v1787_v43, %v1786_v24 }
 0x159   : > { %v1790_v11 = vadd.f32 %v1789_v4, %v1788_v38 }
 0x15b   : > { %v1792_v35 = vadd.f32 %v1791_v2, %v1790_v11 }
 0x15d   : > { %v1794_v44 = vadd.f32 %v1793_v51, %v1792_v35 }
 0x15f   : > { %v1796_v34 = vadd.f32 %v1795_v58, %v1794_v44 }
 0x161   : > { %v1798_v60 = vadd.f32 %v1797_v19, %v1796_v34 }
 0x163   : > { %v1799_v47 = vrot.slane %v1798_v60, 4 }
 0x165   : > { %v1800_v23 = vadd.f32 %v1799_v47, %v1798_v60 }
 0x167   : > { %v1801_v61 = vrot.slane %v1800_v23, 2 }
 0x169   : > { %v1802_v21 = vadd.f32 %v1801_v61, %v1800_v23 }
 0x16b   : > { %v1803_v46 = vrot.slane %v1802_v21, 1 }
 0x16d   : > { %v1804_v37 = vadd.f32 %v1803_v46, %v1802_v21 }
 0x16f   : > { %v1806_v41 = vsel %vm1805_vm10, %v1766_v26, %v1804_v37 }
 0x170   : > { %1808 = vst.msk [vmem:[%s208_s24] sm:$0x3] %vm1807_vm11, %v1806_v41 }
 0x171 PF: > { %s15_s15 = sadd.s32 1, %s2250_s15  }
 0x172   : > { %p12_p4 = scmp.ge.s32.totalorder %s15_s15, 4  }
 0x174   :  { %14 = sbr.rel (!%p12_p4) target bundleno = 1 (0x1), region = 84 }

// kernel: down_forward.3
= control target key start
LH: loop header
LB: loop body
LE: loop exit
PB: predicated region body
PF: predicated region fallthrough
CT: control target
= control target key end

     0   :  { %s2276_s15 = smov 0   ;;  %s2862_s0 = inlined_call_operand.vmem [shape: bf16[2,10,10,8], index: 0, kind: input, shape index: {}]   ;;  %s2863_s1 = inlined_call_operand.vmem [shape: bf16[9,8,8], index: 1, kind: input, shape index: {}]   ;;  %s2864_s2 = inlined_call_operand.vmem [shape: f32[1,8], index: 2, kind: input, shape index: {}]   ;;  %s2865_s3 = inlined_call_operand.vmem [shape: bf16[2,8,8,8], index: 3, kind: output, shape index: {0}]   ;;  %s2866_s4 = inlined_call_operand.vmem [shape: f32[2,2,8], index: 4, kind: output, shape index: {1}]  }
   0x1 LB: > { %s1894_s16 = sadd.s32 4294967295, %s2249_s15   ;;  %p1898_p0 = scmp.ge.s32.totalorder %s2249_s15, 1  ;;  %s2249_s15 = sphi %s2276_s15, %s15_s15  }
   0x2   : > { %p165_p1 = scmp.lt.s32.totalorder %s2249_s15, 3 }
   0x4   : > { %p166_p2 = pnand %p1898_p0, %p165_p1 }
   0x5   : > { %p195_p3 = scmp.lt.s32.totalorder (!%p166_p2), %s1894_s16, 1 }
   0x6   : > { %169 = sbr.rel (%p166_p2) target bundleno = 369 (0x171), region = 32 }
   0xb   : > { %v1903_v0 = vld [vmem:[%s2863_s1 + $0x4] sm:$0xf]  ;;  %vm369_vm0 = vcmask 1043456   ;;  %v218_v2 = vld [vmem:[%s2863_s1] sm:$0xf]  ;;  %s2872_s16 = smov (!%p195_p3, %s1894_s16), 1 }
   0xc   : > { %2213 = vmatprep.subr.msk.bf16.mxu1 %vm369_vm0, %v1903_v0  ;;  %2212 = vmatprep.subr.msk.bf16.mxu0 %vm369_vm0, %v1903_v0  ;;  %v371_v1 = vsel %vm369_vm0, %v1903_v0, 0  ;;  %v1928_v3 = vld [vmem:[%s2863_s1 + $0x8] sm:$0xf]  ;;  %v2303_v4 = vld [vmem:[%s2863_s1 + $0xc] sm:$0xf]  ;;  %s2222_s27 = smul.u32 80, %s2872_s16 }
   0xd   : > { %2211 = vmatpush3.bf16.msra.mxu1 %v371_v1  ;;  %2121 = vmatpush3.bf16.msra.mxu0 %v371_v1  ;;  %v2308_v5 = vld [vmem:[%s2863_s1 + $0x10] sm:$0xf]  ;;  %vm227_vm1 = vsmask.f32 3328  ;;  %v2314_v6 = vld [vmem:[%s2863_s1 + $0x14] sm:$0xf] }
   0xe   : > { %2214 = vmatprep.subr.msk.bf16.mxu1 %vm369_vm0, %v218_v2  ;;  %2215 = vmatprep.subr.msk.bf16.mxu0 %vm369_vm0, %v1928_v3  ;;  %vm228_vm2 = vsmask.f32 7440  ;;  %v2317_v7 = vsel %vm369_vm0, %v218_v2, 0  ;;  %v2320_v8 = vsel %vm369_vm0, %v1928_v3, 0  ;;  %v2325_v9 = vld [vmem:[%s2863_s1 + $0x18] sm:$0xf]  ;;  %s2330_s8 = scalar_lea.vmem %s2862_s0, %s2222_s27 }
   0xf   : > { %v2334_v10 = vsel %vm369_vm0, %v2303_v4, 0  ;;  %v2338_v11 = vsel %vm369_vm0, %v2308_v5, 0  ;;  %v2342_v12 = vsel %vm369_vm0, %v2314_v6, 0  ;;  %v2346_v13 = vsel %vm369_vm0, %v2325_v9, 0  ;;  %v2349_v14 = vld [vmem:[%s2330_s8] sm:$0xf]  ;;  %vm2387_vm4 = vmor %vm227_vm1, %vm228_vm2 }
  0x10   : > { %v2352_v15 = vld [vmem:[%s2330_s8 + $0x8] sm:$0xf]  ;;  %v2355_v16 = vld [vmem:[%s2330_s8 + $0x4] sm:$0x1]  ;;  %v2358_v17 = vld [vmem:[%s2330_s8 + $0xc] sm:$0x1] }
  0x11   : > { %v231_v18 = vshrl.u32 %v2349_v14, 16  ;;  %v234_v19 = vshll.u32 %v2349_v14, 16  ;;  %v240_v20 = vshll.u32 %v2355_v16, 16  ;;  %v245_v21 = vshrl.u32 %v2352_v15, 16  ;;  %v2369_v26 = vld [vmem:[%s2330_s8 + $0x20] sm:$0xf] }
  0x12   : > { %v248_v22 = vshll.u32 %v2352_v15, 16  ;;  %v254_v23 = vshll.u32 %v2358_v17, 16  ;;  %vm356_vm3 = vcmask 64512   ;;  %v567_v24 = vrot.slane %v2355_v16, 5  ;;  %v2372_v31 = vld [vmem:[%s2330_s8 + $0x28] sm:$0xf] }
  0x13   : > { %v571_v25 = vrot.slane %v2358_v17, 5  ;;  %v233_v27 = vrot.slane %v231_v18, 4  ;;  %v236_v28 = vrot.slane %v234_v19, 5  ;;  %v242_v29 = vrot.slane %v240_v20, 5  ;;  %v2375_v34 = vld [vmem:[%s2330_s8 + $0x24] sm:$0x1] }
  0x14   : > { %v247_v30 = vrot.slane %v245_v21, 4  ;;  %v250_v32 = vrot.slane %v248_v22, 5  ;;  %v256_v33 = vrot.slane %v254_v23, 5  ;;  %v2378_v35 = vld [vmem:[%s2330_s8 + $0x2c] sm:$0x1]  ;;  %v1912_v36 = vcombine.low %v2349_v14, %v2352_v15  ;;  %s2074_s17 = sshll.u32 %s2872_s16, 5 }
  0x15   : > { %v237_v37 = vor.u32 %v236_v28, %v233_v27  ;;  %v287_v38 = vshrl.u32 %v2369_v26, 16  ;;  %v290_v39 = vshll.u32 %v2369_v26, 16  ;;  %v296_v40 = vshll.u32 %v2375_v34, 16  ;;  %v2395_v46 = vld [vmem:[%s2330_s8 + $0x10] sm:$0xf]  ;;  %s2800_s20 = scalar_lea.vmem %s2865_s3, %s2074_s17  ;;  %s1902_s21 = sshll.u32 %s2872_s16, 1 }
  0x16   : > { %v251_v42 = vor.u32 %v250_v32, %v247_v30  ;;  %v301_v43 = vshrl.u32 %v2372_v31, 16  ;;  %v304_v44 = vshll.u32 %v2372_v31, 16  ;;  %v310_v45 = vshll.u32 %v2378_v35, 16  ;;  %v2398_v51 = vld [vmem:[%s2330_s8 + $0x18] sm:$0xf]  ;;  %s208_s24 = scalar_lea.vmem %s2866_s4, %s1902_s21 }
  0x17   : > { %v238_v47 = vrot.slane %v237_v37, 4  ;;  %v289_v48 = vrot.slane %v287_v38, 4  ;;  %v292_v49 = vrot.slane %v290_v39, 5  ;;  %v298_v50 = vrot.slane %v296_v40, 5  ;;  %v2401_v56 = vld [vmem:[%s2330_s8 + $0x14] sm:$0x1] }
  0x18   : > { %vm562_vm5 = vcmask 1042432   ;;  %vm563_vm6 = vcmask 1046532   ;;  %v252_v52 = vrot.slane %v251_v42, 4  ;;  %v303_v53 = vrot.slane %v301_v43, 4  ;;  %v2410_v63 = vld [vmem:[%s2330_s8 + $0x1c] sm:$0x1] }
  0x19   : > { %v306_v54 = vrot.slane %v304_v44, 5  ;;  %v312_v55 = vrot.slane %v310_v45, 5  ;;  %v243_v57 = vsel %vm2387_vm4, %v238_v47, %v242_v29  ;;  %v293_v58 = vor.u32 %v292_v49, %v289_v48  ;;  %v2418_v27 = vld [vmem:[%s2330_s8 + $0x30] sm:$0xf]  ;;  %v2425_v32 = vld [vmem:[%s2330_s8 + $0x38] sm:$0xf]  ;;  %vm2455_vm7 = vmor %vm562_vm5, %vm563_vm6 }
  0x1a   : > { %v583_v59 = vrot.slane %v2375_v34, 5  ;;  %v587_v60 = vrot.slane %v2378_v35, 5  ;;  %v257_v61 = vsel %vm2387_vm4, %v252_v52, %v256_v33  ;;  %v259_v0 = vshrl.u32 %v2395_v46, 16  ;;  %v2428_v33 = vld [vmem:[%s2330_s8 + $0x34] sm:$0x1] }
  0x1b   : > { %v307_v62 = vor.u32 %v306_v54, %v303_v53  ;;  %v262_v1 = vshll.u32 %v2395_v46, 16  ;;  %v1904_v2 = vcombine.low %v243_v57, %v257_v61  ;;  %v294_v3 = vrot.slane %v293_v58, 4  ;;  %v2435_v43 = vld [vmem:[%s2330_s8 + $0x3c] sm:$0x1]  ;;  %v538_v44 = vld [vmem:[%s2330_s8] sm:$0xe] }
  0x1c   : > { %v268_v18 = vshll.u32 %v2401_v56, 16  ;;  %v273_v19 = vshrl.u32 %v2398_v51, 16  ;;  %v261_v21 = vrot.slane %v259_v0, 4  ;;  %v276_v23 = vshll.u32 %v2398_v51, 16  ;;  %v540_v57 = vld [vmem:[%s2330_s8 + $0x10] sm:$0xe] }
  0x1d   : > { %v308_v20 = vrot.slane %v307_v62, 4  ;;  %v264_v22 = vrot.slane %v262_v1, 5  ;;  %2122 = vmatprep.mubr.msk.bf16.mxu0 %vm356_vm3, %v1904_v2  ;;  %v299_v28 = vsel %vm2387_vm4, %v294_v3, %v298_v50  ;;  %v282_v30 = vshll.u32 %v2410_v63, 16  ;;  %v539_v50 = vld [vmem:[%s2330_s8 + $0x8] sm:$0xe] }
  0x1e   : > { %v275_v29 = vrot.slane %v273_v19, 4  ;;  %v1914_v37 = vcombine.low %v2369_v26, %v2372_v31  ;;  %v270_v40 = vrot.slane %v268_v18, 5  ;;  %v278_v42 = vrot.slane %v276_v23, 5  ;;  %v542_v1 = vld [vmem:[%s2330_s8 + $0x20] sm:$0xe] }
  0x1f   : > { %v313_v38 = vsel %vm2387_vm4, %v308_v20, %v312_v55  ;;  %v265_v39 = vor.u32 %v264_v22, %v261_v21  ;;  %v284_v47 = vrot.slane %v282_v30, 5  ;;  %v575_v48 = vrot.slane %v2401_v56, 5  ;;  %v541_v56 = vld [vmem:[%s2330_s8 + $0x18] sm:$0xe]  ;;  %v1962_v15 = vld [vmem:[%s2330_s8 + $0x28] sm:$0xf] }
  0x20   : > { %v1906_v45 = vcombine.low %v299_v28, %v313_v38  ;;  %v315_v49 = vshrl.u32 %v2418_v27, 16  ;;  %v279_v53 = vor.u32 %v278_v42, %v275_v29  ;;  %v318_v54 = vshll.u32 %v2418_v27, 16 }
  0x21   : > { %v266_v52 = vrot.slane %v265_v39, 4  ;;  %v324_v55 = vshll.u32 %v2428_v33, 16  ;;  %v329_v61 = vshrl.u32 %v2425_v32, 16  ;;  %v332_v62 = vshll.u32 %v2425_v32, 16 }
  0x22   : > { %2126 = vmatprep.mubr.msk.bf16.mxu1 %vm356_vm3, %v1906_v45  ;;  %v317_v58 = vrot.slane %v315_v49, 4  ;;  %v338_v0 = vshll.u32 %v2435_v43, 16  ;;  %v280_v3 = vrot.slane %v279_v53, 4  ;;  %v579_v18 = vrot.slane %v2410_v63, 5  ;;  %v543_v63 = vld [vmem:[%s2330_s8 + $0x28] sm:$0xe] }
  0x23   : > { %v271_v2 = vsel %vm2387_vm4, %v266_v52, %v270_v40  ;;  %v320_v19 = vrot.slane %v318_v54, 5  ;;  %v326_v21 = vrot.slane %v324_v55, 5  ;;  %v331_v22 = vrot.slane %v329_v61, 4  ;;  %v544_v52 = vld [vmem:[%s2330_s8 + $0x30] sm:$0xe] }
  0x24   : > { %v334_v23 = vrot.slane %v332_v62, 5  ;;  %v1920_v28 = vrot.slane %v538_v44, 9  ;;  %v285_v29 = vsel %vm2387_vm4, %v280_v3, %v284_v47  ;;  %v340_v38 = vrot.slane %v338_v0, 5  ;;  %v545_v54 = vld [vmem:[%s2330_s8 + $0x38] sm:$0xe] }
  0x25   : > { %v321_v30 = vor.u32 %v320_v19, %v317_v58  ;;  %v1921_v39 = vrot.slane %v539_v50, 9  ;;  %v1905_v40 = vcombine.low %v271_v2, %v285_v29  ;;  %v1922_v49 = vrot.slane %v540_v57, 9  ;;  %v2488_v62 = vld [vmem:[%s2330_s8 + $0xc] sm:$0x1] }
  0x26   : > { %v335_v42 = vor.u32 %v334_v23, %v331_v22  ;;  %v568_v45 = vsel %vm2455_vm7, %v1920_v28, %v567_v24  ;;  %v1923_v47 = vrot.slane %v541_v56, 9  ;;  %v1924_v50 = vrot.slane %v542_v1, 9  ;;  %v2501_v1 = vld [vmem:[%s2330_s8 + $0x14] sm:$0x1]  ;;  %v2508_v28 = vld [vmem:[%s2330_s8 + $0x1c] sm:$0x1] }
  0x27   : > { %v322_v53 = vrot.slane %v321_v30, 4  ;;  %v572_v44 = vsel %vm2455_vm7, %v1921_v39, %v571_v25  ;;  %2123 = vmatmul.mubr.msk.bf16.vlgmr.msra.gmra.mxu0 %vm356_vm3, %v1905_v40  ;;  %v576_v24 = vsel %vm2455_vm7, %v1922_v49, %v575_v48  ;;  %v1925_v57 = vrot.slane %v543_v63, 9  ;;  %v1954_v48 = vld [vmem:[%s2330_s8 + $0x8] sm:$0xf] }
  0x28   : > { %v336_v55 = vrot.slane %v335_v42, 4  ;;  %v1929_v16 = vcombine.low %v568_v45, %v572_v44  ;;  %2141 = vmatpush3.bf16.msra.mxu0 %v2320_v8  ;;  %v1913_v25 = vcombine.low %v2395_v46, %v2398_v51  ;;  %v580_v58 = vsel %vm2455_vm7, %v1923_v47, %v579_v18  ;;  %v2525_v42 = vld [vmem:[%s2330_s8 + $0x24] sm:$0x1]  ;;  %v2534_v47 = vld [vmem:[%s2330_s8 + $0x2c] sm:$0x1] }
  0x29   : > { %v327_v17 = vsel %vm2387_vm4, %v322_v53, %v326_v21  ;;  %v584_v61 = vsel %vm2455_vm7, %v1924_v50, %v583_v59  ;;  %v1930_v8 = vcombine.low %v576_v24, %v580_v58  ;;  %2217 = vmatprep.subr.msk.bf16.mxu0 %vm369_vm0, %v2308_v5  ;;  %v588_v34 = vsel %vm2455_vm7, %v1925_v57, %v587_v60  ;;  %v1956_v59 = vld [vmem:[%s2330_s8 + $0x10] sm:$0xf]  ;;  %v1958_v21 = vld [vmem:[%s2330_s8 + $0x18] sm:$0xf] }
  0x2a   : > { %v341_v0 = vsel %vm2387_vm4, %v336_v55, %v340_v38  ;;  %2142 = vmatprep.mubr.msk.bf16.mxu0 %vm356_vm3, %v1929_v16  ;;  %v1926_v56 = vrot.slane %v544_v52, 9  ;;  %v1931_v3 = vcombine.low %v584_v61, %v588_v34  ;;  %v591_v18 = vrot.slane %v2428_v33, 5  ;;  %v1960_v38 = vld [vmem:[%s2330_s8 + $0x20] sm:$0xf]  ;;  %v1964_v50 = vld [vmem:[%s2330_s8 + $0x30] sm:$0xf] }
  0x2b   : > { %v1907_v2 = vcombine.low %v327_v17, %v341_v0  ;;  %v1927_v19 = vrot.slane %v545_v54, 9  ;;  %v595_v22 = vrot.slane %v2435_v43, 5  ;;  %v835_v23 = vshrl.u32 %v1954_v48, 16 }
  0x2c   : > { %v838_v5 = vshll.u32 %v1954_v48, 16  ;;  %v844_v35 = vshll.u32 %v2488_v62, 16  ;;  %v2513_v60 = vsel %vm2455_vm7, %v1926_v56, %v591_v18  ;;  %v849_v29 = vshrl.u32 %v1956_v59, 16 }
  0x2d   : > { %2127 = vmatmul.mubr.msk.bf16.vlgmr.msra.gmra.mxu1 %vm356_vm3, %v1907_v2  ;;  %v852_v33 = vshll.u32 %v1956_v59, 16  ;;  %v858_v30 = vshll.u32 %v2501_v1, 16  ;;  %v596_v43 = vsel %vm2455_vm7, %v1927_v19, %v595_v22  ;;  %v837_v39 = vrot.slane %v835_v23, 4  ;;  %v2561_v23 = vld [vmem:[%s2330_s8 + $0x3c] sm:$0x1] }
  0x2e   : > { %2131 = vmatpush3.bf16.msra.mxu1 %v2317_v7  ;;  %2132 = vmatprep.mubr.msk.bf16.mxu1 %vm356_vm3, %v1912_v36  ;;  %v840_v63 = vrot.slane %v838_v5, 5  ;;  %v846_v40 = vrot.slane %v844_v35, 5  ;;  %v1932_v7 = vcombine.low %v2513_v60, %v596_v43  ;;  %v851_v45 = vrot.slane %v849_v29, 4  ;;  %v1968_v29 = vld [vmem:[%s2330_s8 + $0x40] sm:$0xf] }
  0x2f   : > { %2216 = vmatprep.subr.msk.bf16.mxu1 %vm369_vm0, %v2303_v4  ;;  %v854_v49 = vrot.slane %v852_v33, 5  ;;  %v860_v14 = vrot.slane %v858_v30, 5  ;;  %2143 = vmatmul.mubr.msk.bf16.vlgmr.msra.gmra.mxu0 %vm356_vm3, %v1930_v8  ;;  %v863_v52 = vshrl.u32 %v1958_v21, 16  ;;  %v866_v53 = vshll.u32 %v1958_v21, 16  ;;  %v1966_v21 = vld [vmem:[%s2330_s8 + $0x38] sm:$0xf] }
  0x30   : > { %v841_v36 = vor.u32 %v840_v63, %v837_v39  ;;  %v872_v44 = vshll.u32 %v2508_v28, 16  ;;  %2161 = vmatpush3.bf16.msra.mxu0 %v2338_v11  ;;  %2146 = vmatprep.mubr.msk.bf16.mxu0 %vm356_vm3, %v1931_v3  ;;  %v877_v54 = vshrl.u32 %v1960_v38, 16  ;;  %v880_v55 = vshll.u32 %v1960_v38, 16  ;;  %v2551_v3 = vld [vmem:[%s2330_s8 + $0x34] sm:$0x1] }
  0x31   : > { %v855_v4 = vor.u32 %v854_v49, %v851_v45  ;;  %v886_v16 = vshll.u32 %v2525_v42, 16  ;;  %v865_v57 = vrot.slane %v863_v52, 4  ;;  %v868_v17 = vrot.slane %v866_v53, 5  ;;  %2219 = vmatprep.subr.msk.bf16.mxu0 %vm369_vm0, %v2325_v9  ;;  %v2576_v43 = vld [vmem:[%s2330_s8 + $0x44] sm:$0x1] }
  0x32   : > { %v842_v24 = vrot.slane %v841_v36, 4  ;;  %v874_v58 = vrot.slane %v872_v44, 5  ;;  %v879_v48 = vrot.slane %v877_v54, 4  ;;  %v882_v0 = vrot.slane %v880_v55, 5  ;;  %v1979_v63 = vld [vmem:[%s2330_s8 + $0x8] sm:$0xe] }
  0x33   : > { %v856_v61 = vrot.slane %v855_v4, 4  ;;  %v888_v11 = vrot.slane %v886_v16, 5  ;;  %v869_v34 = vor.u32 %v868_v17, %v865_v57  ;;  %v891_v56 = vshrl.u32 %v1962_v15, 16  ;;  %v1980_v52 = vld [vmem:[%s2330_s8 + $0x10] sm:$0xe] }
  0x34   : > { %v847_v8 = vsel %vm2387_vm4, %v842_v24, %v846_v40  ;;  %v894_v59 = vshll.u32 %v1962_v15, 16  ;;  %v883_v9 = vor.u32 %v882_v0, %v879_v48  ;;  %v900_v18 = vshll.u32 %v2534_v47, 16  ;;  %v2235_v40 = vld [vmem:[%s2330_s8 + $0x8] ss:$8 sps:$4 sm:$0xff]   ;;  %v2037_v54 = vld [vmem:[%s2863_s1 + $0x1c] sm:$0xf] }
  0x35   : > { %2133 = vmatmul.mubr.msk.bf16.vlgmr.msra.gmra.mxu1 %vm356_vm3, %v1913_v25  ;;  %v861_v2 = vsel %vm2387_vm4, %v856_v61, %v860_v14  ;;  %v905_v19 = vshrl.u32 %v1964_v50, 16  ;;  %v870_v51 = vrot.slane %v869_v34, 4  ;;  %v893_v25 = vrot.slane %v891_v56, 4  ;;  %v2062_v17 = vld [vmem:[%s2863_s1 + $0x20] sm:$0xf] }
  0x36   : > { %2151 = vmatpush3.bf16.msra.mxu1 %v2334_v10  ;;  %2136 = vmatprep.mubr.msk.bf16.mxu1 %vm356_vm3, %v1914_v37  ;;  %v1971_v46 = vcombine.low %v847_v8, %v861_v2  ;;  %v896_v22 = vrot.slane %v894_v59, 5  ;;  %v884_v5 = vrot.slane %v883_v9, 4  ;;  %v902_v35 = vrot.slane %v900_v18, 5  ;;  %v2236_v8 = vld [vmem:[%s2330_s8 + $0x18] ss:$8 sps:$4 sm:$0xff]  }
  0x37   : > { %2218 = vmatprep.subr.msk.bf16.mxu1 %vm369_vm0, %v2314_v6  ;;  %v907_v10 = vrot.slane %v905_v19, 4  ;;  %v908_v60 = vshll.u32 %v1964_v50, 16  ;;  %2147 = vmatmul.mubr.msk.bf16.gmra.mxu0 %vm356_vm3, %v1932_v7  ;;  %v875_v26 = vsel %vm2387_vm4, %v870_v51, %v874_v58  ;;  %v914_v37 = vshll.u32 %v2551_v3, 16  ;;  %v1982_v59 = vld [vmem:[%s2330_s8 + $0x20] sm:$0xe] }
  0x38   : > { %v897_v31 = vor.u32 %v896_v22, %v893_v25  ;;  %v919_v33 = vshrl.u32 %v1966_v21, 16  ;;  %v1915_v30 = vcombine.low %v2418_v27, %v2425_v32  ;;  %2162 = vmatprep.mubr.msk.bf16.mxu0 %vm356_vm3, %v1971_v46  ;;  %v889_v6 = vsel %vm2387_vm4, %v884_v5, %v888_v11  ;;  %v1981_v11 = vld [vmem:[%s2330_s8 + $0x18] sm:$0xe]  ;;  %v2237_v2 = vld [vmem:[%s2330_s8 + $0x28] ss:$8 sps:$4 sm:$0xff]  }
  0x39   : > { %v910_v38 = vrot.slane %v908_v60, 5  ;;  %v922_v39 = vshll.u32 %v1966_v21, 16  ;;  %v1972_v7 = vcombine.low %v875_v26, %v889_v6  ;;  %v928_v14 = vshll.u32 %v2561_v23, 16  ;;  %v1983_v19 = vld [vmem:[%s2330_s8 + $0x28] sm:$0xe] }
  0x3a   : > { %v898_v45 = vrot.slane %v897_v31, 4  ;;  %v921_v49 = vrot.slane %v919_v33, 4  ;;  %v916_v36 = vrot.slane %v914_v37, 5  ;;  %v933_v32 = vshrl.u32 %v1968_v29, 16  ;;  %v1984_v25 = vld [vmem:[%s2330_s8 + $0x30] sm:$0xe] }
  0x3b   : > { %v911_v15 = vor.u32 %v910_v38, %v907_v10  ;;  %v924_v27 = vrot.slane %v922_v39, 5  ;;  %v936_v44 = vshll.u32 %v1968_v29, 16  ;;  %v942_v50 = vshll.u32 %v2576_v43, 16  ;;  %v1985_v22 = vld [vmem:[%s2330_s8 + $0x38] sm:$0xe] }
  0x3c   : > { %v903_v53 = vsel %vm2387_vm4, %v898_v45, %v902_v35  ;;  %v1987_v4 = vrot.slane %v1979_v63, 9  ;;  %v935_v24 = vrot.slane %v933_v32, 4  ;;  %v1074_v57 = vrot.slane %v2488_v62, 5  ;;  %v1986_v60 = vld [vmem:[%s2330_s8 + $0x40] sm:$0xe] }
  0x3d   : > { %2137 = vmatmul.mubr.msk.bf16.gmra.mxu1 %vm356_vm3, %v1915_v30  ;;  %v912_v55 = vrot.slane %v911_v15, 4  ;;  %v925_v16 = vor.u32 %v924_v27, %v921_v49  ;;  %v930_v58 = vrot.slane %v928_v14, 5  ;;  %v938_v61 = vrot.slane %v936_v44, 5  ;;  %v2239_v29 = vld [vmem:[%s2330_s8 + $0x10] ss:$8 sps:$4 sm:$0xff]  }
  0x3e   : > { %2152 = vmatprep.mubr.msk.bf16.mxu1 %vm356_vm3, %v2235_v40  ;;  %v1988_v48 = vrot.slane %v1980_v52, 9  ;;  %v1078_v0 = vrot.slane %v2501_v1, 5  ;;  %v944_v56 = vrot.slane %v942_v50, 5  ;;  %v2606_v1 = vsel %vm2455_vm7, %v1987_v4, %v1074_v57  ;;  %v2021_v40 = vld [vmem:[%s2330_s8 + $0x10] sm:$0xf] }
  0x3f   : > { %v917_v34 = vsel %vm2387_vm4, %v912_v55, %v916_v36  ;;  %v926_v62 = vrot.slane %v925_v16, 4  ;;  %2163 = vmatmul.mubr.msk.bf16.vlgmr.msra.gmra.mxu0 %vm356_vm3, %v1972_v7  ;;  %v939_v18 = vor.u32 %v938_v61, %v935_v24  ;;  %v1989_v46 = vrot.slane %v1981_v11, 9  ;;  %v2022_v7 = vld [vmem:[%s2330_s8 + $0x14] sm:$0x1]  ;;  %v2024_v49 = vld [vmem:[%s2330_s8 + $0x1c] sm:$0x1] }
  0x40   : > { %v1973_v9 = vcombine.low %v903_v53, %v917_v34  ;;  %2181 = vmatpush3.bf16.msra.mxu0 %v2346_v13  ;;  %v2610_v21 = vsel %vm2455_vm7, %v1988_v48, %v1078_v0  ;;  %v2613_v51 = vsel %vm369_vm0, %v2037_v54, 0  ;;  %v1082_v35 = vrot.slane %v2508_v28, 5  ;;  %v2046_v32 = vld [vmem:[%s2330_s8 + $0x10] sm:$0xe]  ;;  %v2047_v50 = vld [vmem:[%s2330_s8 + $0x18] sm:$0xe] }
  0x41   : > { %v931_v5 = vsel %vm2387_vm4, %v926_v62, %v930_v58  ;;  %v940_v13 = vrot.slane %v939_v18, 4  ;;  %v1990_v10 = vrot.slane %v1982_v59, 9  ;;  %2221 = vmatprep.subr.msk.bf16.mxu0 %vm369_vm0, %v2062_v17  ;;  %v1086_v26 = vrot.slane %v2525_v42, 5  ;;  %v2238_v4 = vld [vmem:[%s2330_s8 + $0x38] ss:$8 sps:$4 sm:$0xff]  }
  0x42   : > { %2166 = vmatprep.mubr.msk.bf16.mxu0 %vm356_vm3, %v1973_v9  ;;  %v2626_v31 = vsel %vm369_vm0, %v2062_v17, 0  ;;  %v1991_v37 = vrot.slane %v1983_v19, 9  ;;  %v1090_v33 = vrot.slane %v2534_v47, 5  ;;  %v1992_v28 = vrot.slane %v1984_v25, 9  ;;  %v2025_v57 = vld [vmem:[%s2330_s8 + $0x20] sm:$0xf] }
  0x43   : > { %v945_v30 = vsel %vm2387_vm4, %v940_v13, %v944_v56  ;;  %v1094_v6 = vrot.slane %v2551_v3, 5  ;;  %v1993_v38 = vrot.slane %v1985_v22, 9  ;;  %v1098_v42 = vrot.slane %v2561_v23, 5  ;;  %v2023_v23 = vld [vmem:[%s2330_s8 + $0x18] sm:$0xf] }
  0x44   : > { %v1974_v39 = vcombine.low %v931_v5, %v945_v30  ;;  %v1994_v63 = vrot.slane %v1986_v60, 9  ;;  %v1996_v47 = vcombine.low %v2606_v1, %v2610_v21  ;;  %v2642_v3 = vsel %vm2455_vm7, %v1989_v46, %v1082_v35  ;;  %v2026_v0 = vld [vmem:[%s2330_s8 + $0x24] sm:$0x1]  ;;  %v2027_v62 = vld [vmem:[%s2330_s8 + $0x28] sm:$0xf] }
  0x45   : > { %2153 = vmatmul.mubr.msk.bf16.vlgmr.msra.gmra.mxu1 %vm356_vm3, %v2236_v8  ;;  %v1102_v45 = vrot.slane %v2576_v43, 5  ;;  %v1342_v14 = vshrl.u32 %v2021_v40, 16  ;;  %v1345_v15 = vshll.u32 %v2021_v40, 16  ;;  %v1356_v36 = vshrl.u32 %v2023_v23, 16  ;;  %v2240_v59 = vld [vmem:[%s2330_s8 + $0x20] ss:$8 sps:$4 sm:$0xff]  }
  0x46   : > { %2171 = vmatpush3.bf16.msra.mxu1 %v2342_v12  ;;  %2156 = vmatprep.mubr.msk.bf16.mxu1 %vm356_vm3, %v2237_v2  ;;  %v2650_v12 = vsel %vm2455_vm7, %v1990_v10, %v1086_v26  ;;  %v1359_v27 = vshll.u32 %v2023_v23, 16  ;;  %v2656_v43 = vsel %vm2455_vm7, %v1991_v37, %v1090_v33  ;;  %v1351_v53 = vshll.u32 %v2022_v7, 16  ;;  %v2241_v1 = vld [vmem:[%s2330_s8 + $0x30] ss:$8 sps:$4 sm:$0xff]   ;;  %v2048_v60 = vld [vmem:[%s2330_s8 + $0x20] sm:$0xe] }
  0x47   : > { %2220 = vmatprep.subr.msk.bf16.mxu1 %vm369_vm0, %v2037_v54  ;;  %2167 = vmatmul.mubr.msk.bf16.gmra.mxu0 %vm356_vm3, %v1974_v39  ;;  %v1344_v52 = vrot.slane %v1342_v14, 4  ;;  %v1365_v44 = vshll.u32 %v2024_v49, 16  ;;  %v2663_v54 = vsel %vm2455_vm7, %v1992_v28, %v1094_v6  ;;  %v2667_v55 = vsel %vm2455_vm7, %v1993_v38, %v1098_v42  ;;  %v2028_v30 = vld [vmem:[%s2330_s8 + $0x2c] sm:$0x1]  ;;  %v2029_v6 = vld [vmem:[%s2330_s8 + $0x30] sm:$0xf] }
  0x48   : > { %2182 = vmatprep.mubr.msk.bf16.mxu0 %vm356_vm3, %v2239_v29  ;;  %v1347_v16 = vrot.slane %v1345_v15, 5  ;;  %v1358_v24 = vrot.slane %v1356_v36, 4  ;;  %v2672_v17 = vsel %vm2455_vm7, %v1994_v63, %v1102_v45  ;;  %v1361_v58 = vrot.slane %v1359_v27, 5  ;;  %v2049_v29 = vld [vmem:[%s2330_s8 + $0x28] sm:$0xe] }
  0x49   : > { %v2054_v61 = vrot.slane %v2046_v32, 9  ;;  %v1581_v48 = vrot.slane %v2022_v7, 5  ;;  %v2055_v8 = vrot.slane %v2047_v50, 9  ;;  %v1585_v34 = vrot.slane %v2024_v49, 5  ;;  %v2031_v40 = vld [vmem:[%s2330_s8 + $0x38] sm:$0xf] }
  0x4a   : > { %v1348_v11 = vor.u32 %v1347_v16, %v1344_v52  ;;  %v1370_v56 = vshrl.u32 %v2025_v57, 16  ;;  %v1353_v2 = vrot.slane %v1351_v53, 5  ;;  %v1362_v9 = vor.u32 %v1361_v58, %v1358_v24  ;;  %v2242_v23 = vld [vmem:[%s2330_s8 + $0x40] ss:$8 sps:$4 sm:$0xff]   ;;  %v2030_v15 = vld [vmem:[%s2330_s8 + $0x34] sm:$0x1] }
  0x4b   : > { %v1367_v18 = vrot.slane %v1365_v44, 5  ;;  %v1373_v19 = vshll.u32 %v2025_v57, 16  ;;  %v1379_v25 = vshll.u32 %v2026_v0, 16  ;;  %v1384_v22 = vshrl.u32 %v2027_v62, 16  ;;  %v2050_v53 = vld [vmem:[%s2330_s8 + $0x30] sm:$0xe] }
  0x4c   : > { %v1349_v21 = vrot.slane %v1348_v11, 4  ;;  %v1372_v46 = vrot.slane %v1370_v56, 4  ;;  %v1997_v5 = vcombine.low %v2642_v3, %v2650_v12  ;;  %v1998_v13 = vcombine.low %v2656_v43, %v2663_v54  ;;  %v2032_v43 = vld [vmem:[%s2330_s8 + $0x3c] sm:$0x1]  ;;  %v2051_v16 = vld [vmem:[%s2330_s8 + $0x38] sm:$0xe] }
  0x4d   : > { %2157 = vmatmul.mubr.msk.bf16.gmra.mxu1 %vm356_vm3, %v2238_v4  ;;  %v1363_v35 = vrot.slane %v1362_v9, 4  ;;  %v1375_v10 = vrot.slane %v1373_v19, 5  ;;  %v1999_v26 = vcombine.low %v2667_v55, %v2672_v17  ;;  %v1582_v37 = vsel %vm2455_vm7, %v2054_v61, %v1581_v48  ;;  %v2035_v9 = vld [vmem:[%s2330_s8 + $0x48] sm:$0xf] }
  0x4e   : > { %2172 = vmatprep.mubr.msk.bf16.mxu1 %vm356_vm3, %v1996_v47  ;;  %v1586_v33 = vsel %vm2455_vm7, %v2055_v8, %v1585_v34  ;;  %v1387_v28 = vshll.u32 %v2027_v62, 16  ;;  %v1354_v38 = vsel %vm2387_vm4, %v1349_v21, %v1353_v2  ;;  %v1386_v63 = vrot.slane %v1384_v22, 4  ;;  %v2033_v34 = vld [vmem:[%s2330_s8 + $0x40] sm:$0xf] }
  0x4f   : > { %2183 = vmatmul.mubr.msk.bf16.vlgmr.msra.gmra.mxu0 %vm356_vm3, %v2240_v59  ;;  %v1368_v39 = vsel %vm2387_vm4, %v1363_v35, %v1367_v18  ;;  %v1376_v42 = vor.u32 %v1375_v10, %v1372_v46  ;;  %v2056_v47 = vrot.slane %v2048_v60, 9  ;;  %v1589_v3 = vrot.slane %v2026_v0, 5  ;;  %v2036_v60 = vld [vmem:[%s2330_s8 + $0x4c] sm:$0x1] }
  0x50   : > { %2201 = vmatpush3.bf16.msra.mxu0 %v2626_v31  ;;  %2186 = vmatprep.mubr.msk.bf16.mxu0 %vm356_vm3, %v2241_v1  ;;  %v1389_v7 = vrot.slane %v1387_v28, 5  ;;  %v2057_v45 = vrot.slane %v2049_v29, 9  ;;  %v2703_v49 = vrot.slane %v1379_v25, 5  ;;  %v1393_v14 = vshll.u32 %v2028_v30, 16  ;;  %v2034_v25 = vld [vmem:[%s2330_s8 + $0x44] sm:$0x1] }
  0x51   : > { %v1593_v12 = vrot.slane %v2028_v30, 5  ;;  %v1398_v36 = vshrl.u32 %v2029_v6, 16  ;;  %v2038_v27 = vcombine.low %v1354_v38, %v1368_v39  ;;  %v2063_v32 = vcombine.low %v1582_v37, %v1586_v33  ;;  %v2052_v37 = vld [vmem:[%s2330_s8 + $0x40] sm:$0xe]  ;;  %v2053_v38 = vld [vmem:[%s2330_s8 + $0x48] sm:$0xe] }
  0x52   : > { %v1401_v52 = vshll.u32 %v2029_v6, 16  ;;  %v1412_v31 = vshrl.u32 %v2031_v40, 16  ;;  %v2708_v44 = vrot.slane %v1376_v42, 4  ;;  %v1390_v50 = vor.u32 %v1389_v7, %v1386_v63 }
  0x53   : > { %v1400_v4 = vrot.slane %v1398_v36, 4  ;;  %v1415_v54 = vshll.u32 %v2031_v40, 16  ;;  %v1590_v24 = vsel %vm2455_vm7, %v2056_v47, %v1589_v3  ;;  %v1594_v57 = vsel %vm2455_vm7, %v2057_v45, %v1593_v12 }
  0x54   : > { %v1403_v58 = vrot.slane %v1401_v52, 5  ;;  %v1407_v61 = vshll.u32 %v2030_v15, 16  ;;  %v1414_v48 = vrot.slane %v1412_v31, 4  ;;  %v1421_v11 = vshll.u32 %v2032_v43, 16 }
  0x55   : > { %2173 = vmatmul.mubr.msk.bf16.vlgmr.msra.gmra.mxu1 %vm356_vm3, %v1997_v5  ;;  %v1417_v0 = vrot.slane %v1415_v54, 5  ;;  %v2058_v8 = vrot.slane %v2050_v53, 9  ;;  %v1395_v62 = vrot.slane %v1393_v14, 5  ;;  %v1597_v59 = vrot.slane %v2030_v15, 5 }
  0x56   : > { %2191 = vmatpush3.bf16.msra.mxu1 %v2613_v51  ;;  %2176 = vmatprep.mubr.msk.bf16.mxu1 %vm356_vm3, %v1998_v13  ;;  %v1404_v56 = vor.u32 %v1403_v58, %v1400_v4  ;;  %v2059_v2 = vrot.slane %v2051_v16, 9  ;;  %v1382_v51 = vsel %vm2387_vm4, %v2708_v44, %v2703_v49  ;;  %v1391_v18 = vrot.slane %v1390_v50, 4 }
  0x57   : > { %2187 = vmatmul.mubr.msk.bf16.gmra.mxu0 %vm356_vm3, %v2242_v23  ;;  %v1418_v19 = vor.u32 %v1417_v0, %v1414_v48  ;;  %v1601_v1 = vrot.slane %v2032_v43, 5  ;;  %v2064_v21 = vcombine.low %v1590_v24, %v1594_v57  ;;  %v1409_v46 = vrot.slane %v1407_v61, 5 }
  0x58   : > { %2202 = vmatprep.mubr.msk.bf16.mxu0 %vm356_vm3, %v2063_v32  ;;  %v1426_v22 = vshrl.u32 %v2033_v34, 16  ;;  %v1429_v5 = vshll.u32 %v2033_v34, 16  ;;  %v1423_v13 = vrot.slane %v1421_v11, 5  ;;  %v1598_v35 = vsel %vm2455_vm7, %v2058_v8, %v1597_v59 }
  0x59   : > { %v1602_v10 = vsel %vm2455_vm7, %v2059_v2, %v1601_v1  ;;  %v1440_v29 = vshrl.u32 %v2035_v9, 16  ;;  %v1405_v33 = vrot.slane %v1404_v56, 4  ;;  %v1419_v30 = vrot.slane %v1418_v19, 4 }
  0x5a   : > { %v1428_v28 = vrot.slane %v1426_v22, 4  ;;  %v1431_v6 = vrot.slane %v1429_v5, 5  ;;  %v1396_v39 = vsel %vm2387_vm4, %v1391_v18, %v1395_v62  ;;  %v1435_v42 = vshll.u32 %v2034_v25, 16 }
  0x5b   : > { %v1442_v63 = vrot.slane %v1440_v29, 4  ;;  %v1443_v40 = vshll.u32 %v2035_v9, 16  ;;  %v2065_v7 = vcombine.low %v1598_v35, %v1602_v10  ;;  %v1449_v3 = vshll.u32 %v2036_v60, 16 }
  0x5c   : > { %v1432_v47 = vor.u32 %v1431_v6, %v1428_v28  ;;  %v2060_v45 = vrot.slane %v2052_v37, 9  ;;  %v1605_v49 = vrot.slane %v2034_v25, 5  ;;  %v2061_v14 = vrot.slane %v2053_v38, 9 }
  0x5d   : > { %2177 = vmatmul.mubr.msk.bf16.gmra.mxu1 %vm356_vm3, %v1999_v26  ;;  %v1445_v23 = vrot.slane %v1443_v40, 5  ;;  %v1609_v12 = vrot.slane %v2036_v60, 5  ;;  %v1410_v15 = vsel %vm2387_vm4, %v1405_v33, %v1409_v46  ;;  %v1424_v36 = vsel %vm2387_vm4, %v1419_v30, %v1423_v13 }
  0x5e   : > { %2192 = vmatprep.mubr.msk.bf16.mxu1 %vm356_vm3, %v2038_v27  ;;  %v2039_v17 = vcombine.low %v1382_v51, %v1396_v39  ;;  %v1437_v26 = vrot.slane %v1435_v42, 5  ;;  %v1606_v27 = vsel %vm2455_vm7, %v2060_v45, %v1605_v49  ;;  %v2040_v43 = vcombine.low %v1410_v15, %v1424_v36 }
  0x5f   : > { %2203 = vmatmul.mubr.msk.bf16.vlgmr.msra.gmra.mxu0 %vm356_vm3, %v2064_v21  ;;  %v1446_v55 = vor.u32 %v1445_v23, %v1442_v63  ;;  %v1610_v32 = vsel %vm2455_vm7, %v2061_v14, %v1609_v12  ;;  %v1433_v52 = vrot.slane %v1432_v47, 4  ;;  %v1451_v53 = vrot.slane %v1449_v3, 5 }
  0x60   : > { %2206 = vmatprep.mubr.msk.bf16.mxu0 %vm356_vm3, %v2065_v7  ;;  %v2066_v44 = vcombine.low %v1606_v27, %v1610_v32  ;;  %vm1736_vm8 = vcmask 60416   ;;  %vm1804_vm9 = vcmask 1040384   ;;  %vm1806_vm10 = vcmask 58368  }
  0x61   : > { %v1447_v31 = vrot.slane %v1446_v55, 4  ;;  %v1438_v50 = vsel %vm2387_vm4, %v1433_v52, %v1437_v26 }
  0x63   : > { %v1452_v4 = vsel %vm2387_vm4, %v1447_v31, %v1451_v53 }
  0x64   : > { %v2041_v54 = vcombine.low %v1438_v50, %v1452_v4 }
  0x65   : > { %2193 = vmatmul.mubr.msk.bf16.vlgmr.msra.gmra.mxu1 %vm356_vm3, %v2039_v17 }
  0x66   : > { %2196 = vmatprep.mubr.msk.bf16.mxu1 %vm356_vm3, %v2040_v43 }
  0x67   : > { %2207 = vmatmul.mubr.msk.bf16.gmra.mxu0 %vm356_vm3, %v2066_v44 }
  0x6d   : > { %2197 = vmatmul.mubr.msk.bf16.gmra.mxu1 %vm356_vm3, %v2041_v54 }
  0xe7   : > { %v2124_v20 = vpop.f32.mrf.mxu0 }
  0xe9   : > { %v407_v16 = vpop.f32.mrf.mxu0 }
  0xeb   : > { %v2125_v24 = vpop.f32.mrf.mxu0 }
  0xed   : > { %v2128_v57 = vpop.f32.mrf.mxu1  ;;  %v410_v58 = vpop.f32.mrf.mxu0 }
  0xef   : > { %v423_v61 = vpop.f32.mrf.mxu1  ;;  %v2144_v48 = vpop.f32.mrf.mxu0 }
  0xf1   : > { %v2129_v0 = vpop.f32.mrf.mxu1  ;;  %v660_v11 = vpop.f32.mrf.mxu0 }
  0xf3   : > { %v2759_v8 = vpop.f32.mrf.mxu1  ;;  %v2145_v34 = vpop.f32.mrf.mxu0 }
  0xf5   : > { %v2134_v62 = vpop.f32.mrf.mxu1  ;;  %v663_v41 = vpop.f32.mrf.mxu0 }
  0xf6   : > { %v516_v47 = vadd.f32 %v2134_v62, %v2124_v20 }
  0xf7   : > { %v507_v56 = vpop.f32.mrf.mxu1  ;;  %v2148_v59 = vpop.f32.mrf.mxu0 }
  0xf8   : > { %v508_v23 = vadd.f32 %v507_v56, %v407_v16  ;;  %v693_v12 = vadd.f32 %v2144_v48, %v516_v47 }
  0xf9   : > { %v2135_v2 = vpop.f32.mrf.mxu1  ;;  %v676_v9 = vpop.f32.mrf.mxu0 }
  0xfa   : > { %v519_v15 = vadd.f32 %v2135_v2, %v2125_v24  ;;  %v691_v17 = vadd.f32 %v660_v11, %v508_v23 }
  0xfb   : > { %v510_v51 = vpop.f32.mrf.mxu1  ;;  %v2149_v18 = vpop.f32.mrf.mxu0 }
  0xfc   : > { %v511_v32 = vadd.f32 %v510_v51, %v410_v58  ;;  %v694_v31 = vadd.f32 %v2145_v34, %v519_v15 }
  0xfd   : > { %v2138_v19 = vpop.f32.mrf.mxu1  ;;  %v2761_v1 = vpop.f32.mrf.mxu0 }
  0xfe   : > { %v532_v43 = vadd.f32 %v2138_v19, %v2128_v57  ;;  %v692_v24 = vadd.f32 %v663_v41, %v511_v32 }
  0xff   : > { %v523_v21 = vpop.f32.mrf.mxu1  ;;  %v2164_v46 = vpop.f32.mrf.mxu0 }
 0x100   : > { %v524_v4 = vadd.f32 %v523_v21, %v423_v61  ;;  %v697_v48 = vadd.f32 %v2148_v59, %v532_v43 }
 0x101   : > { %v2139_v25 = vpop.f32.mrf.mxu1  ;;  %v1009_v22 = vpop.f32.mrf.mxu0 }
 0x102   : > { %v535_v62 = vadd.f32 %v2139_v25, %v2129_v0  ;;  %v695_v34 = vadd.f32 %v676_v9, %v524_v4 }
 0x103   : > { %v526_v5 = vpop.f32.mrf.mxu1  ;;  %v2165_v13 = vpop.f32.mrf.mxu0 }
 0x104   : > { %v698_v23 = vadd.f32 %v2149_v18, %v535_v62  ;;  %v527_v61 = vadd.f32 %v526_v5, %v2759_v8  ;;  %v2786_v8 = vld [vmem:[%s2864_s2] ss:$0 sm:$0xff] }
 0x105   : > { %v2154_v35 = vpop.f32.mrf.mxu1  ;;  %v1012_v10 = vpop.f32.mrf.mxu0 }
 0x106   : > { %v812_v26 = vadd.f32 %v2154_v35, %v693_v12  ;;  %v696_v9 = vadd.f32 %v2761_v1, %v527_v61 }
 0x107   : > { %v779_v60 = vpop.f32.mrf.mxu1  ;;  %v2168_v29 = vpop.f32.mrf.mxu0 }
 0x108   : > { %v810_v53 = vadd.f32 %v779_v60, %v691_v17  ;;  %v1042_v54 = vadd.f32 %v2164_v46, %v812_v26 }
 0x109   : > { %v2155_v37 = vpop.f32.mrf.mxu1  ;;  %v2763_v33 = vpop.f32.mrf.mxu0 }
 0x10a   : > { %v813_v20 = vadd.f32 %v2155_v37, %v694_v31  ;;  %v1040_v56 = vadd.f32 %v1009_v22, %v810_v53 }
 0x10b   : > { %v782_v30 = vpop.f32.mrf.mxu1  ;;  %v2765_v28 = vpop.f32.mrf.mxu0 }
 0x10c   : > { %v811_v58 = vadd.f32 %v782_v30, %v692_v24  ;;  %v1043_v19 = vadd.f32 %v2165_v13, %v813_v20 }
 0x10d   : > { %v2158_v6 = vpop.f32.mrf.mxu1  ;;  %v2767_v38 = vpop.f32.mrf.mxu0 }
 0x10e   : > { %v816_v57 = vadd.f32 %v2158_v6, %v697_v48  ;;  %v1041_v59 = vadd.f32 %v1012_v10, %v811_v58 }
 0x10f   : > { %v795_v39 = vpop.f32.mrf.mxu1  ;;  %v2184_v42 = vpop.f32.mrf.mxu0 }
 0x110   : > { %v814_v46 = vadd.f32 %v795_v39, %v695_v34  ;;  %v1046_v25 = vadd.f32 %v2168_v29, %v816_v57 }
 0x111   : > { %v2159_v63 = vpop.f32.mrf.mxu1  ;;  %v1286_v40 = vpop.f32.mrf.mxu0 }
 0x112   : > { %v817_v22 = vadd.f32 %v2159_v63, %v698_v23  ;;  %v1044_v5 = vadd.f32 %v2763_v33, %v814_v46 }
 0x113   : > { %v2769_v7 = vpop.f32.mrf.mxu1  ;;  %v2185_v3 = vpop.f32.mrf.mxu0 }
 0x114   : > { %v815_v63 = vadd.f32 %v2769_v7, %v696_v9 }
 0x115   : > { %v2174_v45 = vpop.f32.mrf.mxu1  ;;  %v2771_v49 = vpop.f32.mrf.mxu0 }
 0x116   : > { %v1200_v2 = vadd.f32 %v2174_v45, %v1042_v54 }
 0x117   : > { %v1167_v14 = vpop.f32.mrf.mxu1  ;;  %v2773_v36 = vpop.f32.mrf.mxu0 }
 0x118   : > { %v1198_v60 = vadd.f32 %v1167_v14, %v1040_v56  ;;  %v1319_v37 = vadd.f32 %v2184_v42, %v1200_v2  ;;  %v1047_v42 = vadd.f32 %v2765_v28, %v817_v22 }
 0x119   : > { %v2175_v55 = vpop.f32.mrf.mxu1  ;;  %v2775_v27 = vpop.f32.mrf.mxu0 }
 0x11a   : > { %v1201_v41 = vadd.f32 %v2175_v55, %v1043_v19  ;;  %v1317_v30 = vadd.f32 %v1286_v40, %v1198_v60 }
 0x11b   : > { %v1170_v52 = vpop.f32.mrf.mxu1  ;;  %v2777_v44 = vpop.f32.mrf.mxu0 }
 0x11c   : > { %v1199_v13 = vadd.f32 %v1170_v52, %v1041_v59  ;;  %v1320_v39 = vadd.f32 %v2185_v3, %v1201_v41 }
 0x11d   : > { %v2178_v50 = vpop.f32.mrf.mxu1  ;;  %v2779_v16 = vpop.f32.mrf.mxu0 }
 0x11e   : > { %v1204_v14 = vadd.f32 %v2178_v50, %v1046_v25  ;;  %v1318_v32 = vadd.f32 %v2771_v49, %v1199_v13  ;;  %v1045_v49 = vadd.f32 %v2767_v38, %v815_v63 }
 0x11f   : > { %v1183_v11 = vpop.f32.mrf.mxu1  ;;  %v2204_v35 = vpop.f32.mrf.mxu0 }
 0x120   : > { %v1202_v1 = vadd.f32 %v1183_v11, %v1044_v5  ;;  %v1323_v33 = vadd.f32 %v2773_v36, %v1204_v14 }
 0x121   : > { %v2179_v51 = vpop.f32.mrf.mxu1  ;;  %v1674_v47 = vpop.f32.mrf.mxu0 }
 0x122   : > { %v1205_v7 = vadd.f32 %v2179_v51, %v1047_v42  ;;  %v1321_v53 = vadd.f32 %v2775_v27, %v1202_v1 }
 0x123   : > { %v1186_v21 = vpop.f32.mrf.mxu1  ;;  %v2205_v0 = vpop.f32.mrf.mxu0 }
 0x124   : > { %v1203_v24 = vadd.f32 %v1186_v21, %v1045_v49  ;;  %v1324_v11 = vadd.f32 %v2777_v44, %v1205_v7 }
 0x125   : > { %v2194_v45 = vpop.f32.mrf.mxu1  ;;  %v1677_v12 = vpop.f32.mrf.mxu0 }
 0x126   : > { %v1549_v6 = vadd.f32 %v2194_v45, %v1319_v37  ;;  %v1322_v19 = vadd.f32 %v2779_v16, %v1203_v24 }
 0x127   : > { %v1516_v18 = vpop.f32.mrf.mxu1  ;;  %v2208_v26 = vpop.f32.mrf.mxu0 }
 0x128   : > { %v1707_v10 = vadd.f32 %v2204_v35, %v1549_v6  ;;  %v1547_v29 = vadd.f32 %v1516_v18, %v1317_v30 }
 0x129   : > { %v2195_v40 = vpop.f32.mrf.mxu1  ;;  %v1690_v20 = vpop.f32.mrf.mxu0 }
 0x12a   : > { %v2793_v15 = vadd.f32 %v2786_v8, %v1707_v10  ;;  %v1705_v55 = vadd.f32 %v1674_v47, %v1547_v29  ;;  %v1550_v17 = vadd.f32 %v2195_v40, %v1320_v39 }
 0x12b   : > { %v1519_v28 = vpop.f32.mrf.mxu1  ;;  %v2209_v34 = vpop.f32.mrf.mxu0 }
 0x12c   : > { %v1730_v3 = vpack.c.bf16 %v2793_v15, %v2793_v15  ;;  %v2805_v43 = vadd.f32 %v2786_v8, %v1705_v55  ;;  %v1708_v52 = vadd.f32 %v2205_v0, %v1550_v17  ;;  %v1548_v36 = vadd.f32 %v1519_v28, %v1318_v32 }
 0x12d   : > { %v2198_v31 = vpop.f32.mrf.mxu1  ;;  %v1748_v37 = vsel %vm356_vm3, %v2793_v15, 0.0  ;;  %v1693_v25 = vpop.f32.mrf.mxu0 }
 0x12e   : > { %1739 = vst.msk [vmem:[%s2800_s20 + $0x8] sm:$0xf] %vm1736_vm8, %v1730_v3  ;;  %v1728_v50 = vpack.c.bf16 %v2805_v43, %v2805_v43  ;;  %v1723_v4 = vadd.f32 %v2786_v8, %v1708_v52  ;;  %v1553_v54 = vadd.f32 %v2198_v31, %v1323_v33  ;;  %v1706_v48 = vadd.f32 %v1677_v12, %v1548_v36 }
 0x12f   : > { %v1532_v62 = vpop.f32.mrf.mxu1  ;;  %v1745_v44 = vsel %vm356_vm3, %v2805_v43, 0.0 }
 0x130   : > { %1737 = vst.msk [vmem:[%s2800_s20] sm:$0xf] %vm1736_vm8, %v1728_v50  ;;  %v1731_v38 = vpack.c.bf16 %v1723_v4, %v1723_v4  ;;  %v1711_v56 = vadd.f32 %v2208_v26, %v1553_v54  ;;  %v1551_v27 = vadd.f32 %v1532_v62, %v1321_v53  ;;  %v1721_v2 = vadd.f32 %v2786_v8, %v1706_v48 }
 0x131   : > { %v2199_v35 = vpop.f32.mrf.mxu1  ;;  %v1750_v22 = vsel %vm356_vm3, %v1723_v4, 0.0 }
 0x132   : > { %1740 = vst.msk [vmem:[%s2800_s20 + $0xc] sm:$0xf] %vm1736_vm8, %v1731_v38  ;;  %v1726_v58 = vadd.f32 %v2786_v8, %v1711_v56  ;;  %v1709_v57 = vadd.f32 %v1690_v20, %v1551_v27  ;;  %v1554_v51 = vadd.f32 %v2199_v35, %v1324_v11  ;;  %v1729_v60 = vpack.c.bf16 %v1721_v2, %v1721_v2 }
 0x133   : > { %v1746_v47 = vsel %vm356_vm3, %v1721_v2, 0.0  ;;  %v1535_v23 = vpop.f32.mrf.mxu1 }
 0x134   : > { %v1747_v61 = vadd.f32 %v1746_v47, %v1745_v44  ;;  %v1734_v21 = vpack.c.bf16 %v1726_v58, %v1726_v58  ;;  %v1724_v46 = vadd.f32 %v2786_v8, %v1709_v57  ;;  %1738 = vst.msk [vmem:[%s2800_s20 + $0x4] sm:$0xf] %vm1736_vm8, %v1729_v60  ;;  %v1712_v41 = vadd.f32 %v2209_v34, %v1554_v51 }
 0x135   : > { %v1552_v16 = vadd.f32 %v1535_v23, %v1322_v19  ;;  %v1756_v10 = vsel %vm356_vm3, %v1726_v58, 0.0 }
 0x136   : > { %v1749_v0 = vadd.f32 %v1748_v37, %v1747_v61  ;;  %1743 = vst.msk [vmem:[%s2800_s20 + $0x18] sm:$0xf] %vm1736_vm8, %v1734_v21  ;;  %v1732_v59 = vpack.c.bf16 %v1724_v46, %v1724_v46  ;;  %v1727_v45 = vadd.f32 %v2786_v8, %v1712_v41  ;;  %v1752_v12 = vsel %vm356_vm3, %v1724_v46, 0.0 }
 0x137   : > { %v1710_v30 = vadd.f32 %v1693_v25, %v1552_v16 }
 0x138   : > { %1741 = vst.msk [vmem:[%s2800_s20 + $0x10] sm:$0xf] %vm1736_vm8, %v1732_v59  ;;  %v1751_v6 = vadd.f32 %v1750_v22, %v1749_v0  ;;  %v1735_v9 = vpack.c.bf16 %v1727_v45, %v1727_v45  ;;  %v1758_v42 = vsel %vm356_vm3, %v1727_v45, 0.0 }
 0x139   : > { %v1725_v13 = vadd.f32 %v2786_v8, %v1710_v30 }
 0x13a   : > { %v1753_v14 = vadd.f32 %v1752_v12, %v1751_v6  ;;  %1744 = vst.msk [vmem:[%s2800_s20 + $0x1c] sm:$0xf] %vm1736_vm8, %v1735_v9 }
 0x13b   : > { %v1733_v18 = vpack.c.bf16 %v1725_v13, %v1725_v13  ;;  %v1754_v5 = vsel %vm356_vm3, %v1725_v13, 0.0 }
 0x13c   : > { %v1755_v39 = vadd.f32 %v1754_v5, %v1753_v14 }
 0x13d   : > { %1742 = vst.msk [vmem:[%s2800_s20 + $0x14] sm:$0xf] %vm1736_vm8, %v1733_v18 }
 0x13e   : > { %v1757_v29 = vadd.f32 %v1756_v10, %v1755_v39 }
 0x140   : > { %v1759_v63 = vadd.f32 %v1758_v42, %v1757_v29 }
 0x142   : > { %v1760_v40 = vrot.slane %v1759_v63, 4 }
 0x144   : > { %v1761_v1 = vadd.f32 %v1760_v40, %v1759_v63 }
 0x146   : > { %v1762_v55 = vrot.slane %v1761_v1, 2 }
 0x148   : > { %v1763_v17 = vadd.f32 %v1762_v55, %v1761_v1 }
 0x14a   : > { %v1764_v8 = vrot.slane %v1763_v17, 1 }
 0x14c   : > { %v1765_v26 = vadd.f32 %v1764_v8, %v1763_v17 }
 0x14e   : > { %v1766_v32 = vmul.f32 0.015625, %v1765_v26 }
 0x150   : > { %v1767_v33 = vsub.f32 %v2805_v43, %v1766_v32  ;;  %v1768_v28 = vsub.f32 %v1721_v2, %v1766_v32  ;;  %v1769_v7 = vsub.f32 %v2793_v15, %v1766_v32  ;;  %v1770_v3 = vsub.f32 %v1723_v4, %v1766_v32 }
 0x151   : > { %v1771_v52 = vsub.f32 %v1724_v46, %v1766_v32  ;;  %v1772_v53 = vsub.f32 %v1725_v13, %v1766_v32  ;;  %v1773_v48 = vsub.f32 %v1726_v58, %v1766_v32  ;;  %v1774_v38 = vsub.f32 %v1727_v45, %v1766_v32 }
 0x152   : > { %v1775_v49 = vmul.f32 %v1767_v33, %v1767_v33  ;;  %v1776_v36 = vmul.f32 %v1768_v28, %v1768_v28  ;;  %v1777_v31 = vmul.f32 %v1769_v7, %v1769_v7  ;;  %v1778_v50 = vmul.f32 %v1770_v3, %v1770_v3 }
 0x153   : > { %v1779_v62 = vmul.f32 %v1771_v52, %v1771_v52  ;;  %v1780_v56 = vmul.f32 %v1772_v53, %v1772_v53  ;;  %v1781_v27 = vmul.f32 %v1773_v48, %v1773_v48  ;;  %v1782_v57 = vmul.f32 %v1774_v38, %v1774_v38 }
 0x154   : > { %v1783_v54 = vsel %vm356_vm3, %v1775_v49, 0.0  ;;  %v1784_v20 = vsel %vm356_vm3, %v1776_v36, 0.0  ;;  %v1786_v11 = vsel %vm356_vm3, %v1777_v31, 0.0  ;;  %v1788_v15 = vsel %vm356_vm3, %v1778_v50, 0.0 }
 0x155   : > { %v1785_v24 = vadd.f32 %v1784_v20, %v1783_v54  ;;  %v1790_v2 = vsel %vm356_vm3, %v1779_v62, 0.0  ;;  %v1792_v51 = vsel %vm356_vm3, %v1780_v56, 0.0  ;;  %v1794_v58 = vsel %vm356_vm3, %v1781_v27, 0.0 }
 0x156   : > { %v1796_v44 = vsel %vm356_vm3, %v1782_v57, 0.0 }
 0x157   : > { %v1787_v43 = vadd.f32 %v1786_v11, %v1785_v24 }
 0x159   : > { %v1789_v4 = vadd.f32 %v1788_v15, %v1787_v43 }
 0x15b   : > { %v1791_v35 = vadd.f32 %v1790_v2, %v1789_v4 }
 0x15d   : > { %v1793_v34 = vadd.f32 %v1792_v51, %v1791_v35 }
 0x15f   : > { %v1795_v19 = vadd.f32 %v1794_v58, %v1793_v34 }
 0x161   : > { %v1797_v60 = vadd.f32 %v1796_v44, %v1795_v19 }
 0x163   : > { %v1798_v47 = vrot.slane %v1797_v60, 4 }
 0x165   : > { %v1799_v23 = vadd.f32 %v1798_v47, %v1797_v60 }
 0x167   : > { %v1800_v61 = vrot.slane %v1799_v23, 2 }
 0x169   : > { %v1801_v21 = vadd.f32 %v1800_v61, %v1799_v23 }
 0x16b   : > { %v1802_v46 = vrot.slane %v1801_v21, 1 }
 0x16d   : > { %v1803_v37 = vadd.f32 %v1802_v46, %v1801_v21 }
 0x16f   : > { %v1805_v41 = vsel %vm1804_vm9, %v1765_v26, %v1803_v37 }
 0x170   : > { %1807 = vst.msk [vmem:[%s208_s24] sm:$0x3] %vm1806_vm10, %v1805_v41 }
 0x171 PF: > { %s15_s15 = sadd.s32 1, %s2249_s15  }
 0x172   : > { %p12_p4 = scmp.ge.s32.totalorder %s15_s15, 4  }
 0x174   :  { %14 = sbr.rel (!%p12_p4) target bundleno = 1 (0x1), region = 84 }

// kernel: down_forward.2
= control target key start
LH: loop header
LB: loop body
LE: loop exit
PB: predicated region body
PF: predicated region fallthrough
CT: control target
= control target key end

     0   :  { %s2277_s15 = smov 0   ;;  %s2869_s0 = inlined_call_operand.vmem [shape: bf16[2,10,10,4], index: 0, kind: input, shape index: {}]   ;;  %s2870_s1 = inlined_call_operand.vmem [shape: bf16[9,4,8], index: 1, kind: input, shape index: {}]   ;;  %s2871_s2 = inlined_call_operand.vmem [shape: f32[1,8], index: 2, kind: input, shape index: {}]   ;;  %s2872_s3 = inlined_call_operand.vmem [shape: bf16[2,8,8,8], index: 3, kind: output, shape index: {0}]   ;;  %s2873_s4 = inlined_call_operand.vmem [shape: f32[2,2,8], index: 4, kind: output, shape index: {1}]  }
   0x1 LB: > { %s1895_s16 = sadd.s32 4294967295, %s2250_s15   ;;  %p1899_p0 = scmp.ge.s32.totalorder %s2250_s15, 1  ;;  %s2250_s15 = sphi %s2277_s15, %s15_s15  }
   0x2   : > { %p165_p1 = scmp.lt.s32.totalorder %s2250_s15, 3 }
   0x4   : > { %p166_p2 = pnand %p1899_p0, %p165_p1 }
   0x5   : > { %p195_p3 = scmp.lt.s32.totalorder (!%p166_p2), %s1895_s16, 1 }
   0x6   : > { %169 = sbr.rel (%p166_p2) target bundleno = 369 (0x171), region = 32 }
   0xb   : > { %v1904_v0 = vld [vmem:[%s2870_s1 + $0x2] sm:$0x3]  ;;  %vm369_vm0 = vcmask 1041408   ;;  %v218_v2 = vld [vmem:[%s2870_s1] sm:$0x3]  ;;  %s2879_s16 = smov (!%p195_p3, %s1895_s16), 1 }
   0xc   : > { %2214 = vmatprep.subr.msk.bf16.mxu1 %vm369_vm0, %v1904_v0  ;;  %2213 = vmatprep.subr.msk.bf16.mxu0 %vm369_vm0, %v1904_v0  ;;  %v371_v1 = vsel %vm369_vm0, %v1904_v0, 0  ;;  %v1929_v3 = vld [vmem:[%s2870_s1 + $0x4] sm:$0x3]  ;;  %v2304_v4 = vld [vmem:[%s2870_s1 + $0x6] sm:$0x3]  ;;  %s2223_s27 = smul.u32 80, %s2879_s16 }
   0xd   : > { %2212 = vmatpush3.bf16.msra.mxu1 %v371_v1  ;;  %2122 = vmatpush3.bf16.msra.mxu0 %v371_v1  ;;  %v2309_v5 = vld [vmem:[%s2870_s1 + $0x8] sm:$0x3]  ;;  %vm227_vm1 = vsmask.f32 3328  ;;  %v2315_v6 = vld [vmem:[%s2870_s1 + $0xa] sm:$0x3] }
   0xe   : > { %2215 = vmatprep.subr.msk.bf16.mxu1 %vm369_vm0, %v218_v2  ;;  %2216 = vmatprep.subr.msk.bf16.mxu0 %vm369_vm0, %v1929_v3  ;;  %vm228_vm2 = vsmask.f32 7440  ;;  %v2318_v7 = vsel %vm369_vm0, %v218_v2, 0  ;;  %v2321_v8 = vsel %vm369_vm0, %v1929_v3, 0  ;;  %v2326_v9 = vld [vmem:[%s2870_s1 + $0xc] sm:$0x3]  ;;  %s2331_s8 = scalar_lea.vmem %s2869_s0, %s2223_s27 }
   0xf   : > { %v2335_v10 = vsel %vm369_vm0, %v2304_v4, 0  ;;  %v2339_v11 = vsel %vm369_vm0, %v2309_v5, 0  ;;  %v2343_v12 = vsel %vm369_vm0, %v2315_v6, 0  ;;  %v2347_v13 = vsel %vm369_vm0, %v2326_v9, 0  ;;  %v2350_v14 = vld [vmem:[%s2331_s8] sm:$0xf]  ;;  %vm2388_vm4 = vmor %vm227_vm1, %vm228_vm2 }
  0x10   : > { %v2353_v15 = vld [vmem:[%s2331_s8 + $0x8] sm:$0xf]  ;;  %v2356_v16 = vld [vmem:[%s2331_s8 + $0x4] sm:$0x1]  ;;  %v2359_v17 = vld [vmem:[%s2331_s8 + $0xc] sm:$0x1] }
  0x11   : > { %v231_v18 = vshrl.u32 %v2350_v14, 16  ;;  %v234_v19 = vshll.u32 %v2350_v14, 16  ;;  %v240_v20 = vshll.u32 %v2356_v16, 16  ;;  %v245_v21 = vshrl.u32 %v2353_v15, 16  ;;  %v2370_v26 = vld [vmem:[%s2331_s8 + $0x20] sm:$0xf] }
  0x12   : > { %v248_v22 = vshll.u32 %v2353_v15, 16  ;;  %v254_v23 = vshll.u32 %v2359_v17, 16  ;;  %vm356_vm3 = vcmask 31744   ;;  %v567_v24 = vrot.slane %v2356_v16, 5  ;;  %v2373_v31 = vld [vmem:[%s2331_s8 + $0x28] sm:$0xf] }
  0x13   : > { %v571_v25 = vrot.slane %v2359_v17, 5  ;;  %v233_v27 = vrot.slane %v231_v18, 4  ;;  %v236_v28 = vrot.slane %v234_v19, 5  ;;  %v242_v29 = vrot.slane %v240_v20, 5  ;;  %v2376_v34 = vld [vmem:[%s2331_s8 + $0x24] sm:$0x1] }
  0x14   : > { %v247_v30 = vrot.slane %v245_v21, 4  ;;  %v250_v32 = vrot.slane %v248_v22, 5  ;;  %v256_v33 = vrot.slane %v254_v23, 5  ;;  %v2379_v35 = vld [vmem:[%s2331_s8 + $0x2c] sm:$0x1]  ;;  %v1913_v36 = vcombine.low %v2350_v14, %v2353_v15  ;;  %s2075_s17 = sshll.u32 %s2879_s16, 5 }
  0x15   : > { %v237_v37 = vor.u32 %v236_v28, %v233_v27  ;;  %v287_v38 = vshrl.u32 %v2370_v26, 16  ;;  %v290_v39 = vshll.u32 %v2370_v26, 16  ;;  %v296_v40 = vshll.u32 %v2376_v34, 16  ;;  %v2396_v46 = vld [vmem:[%s2331_s8 + $0x10] sm:$0xf]  ;;  %s2801_s20 = scalar_lea.vmem %s2872_s3, %s2075_s17  ;;  %s1903_s21 = sshll.u32 %s2879_s16, 1 }
  0x16   : > { %v251_v42 = vor.u32 %v250_v32, %v247_v30  ;;  %v301_v43 = vshrl.u32 %v2373_v31, 16  ;;  %v304_v44 = vshll.u32 %v2373_v31, 16  ;;  %v310_v45 = vshll.u32 %v2379_v35, 16  ;;  %v2399_v51 = vld [vmem:[%s2331_s8 + $0x18] sm:$0xf]  ;;  %s208_s24 = scalar_lea.vmem %s2873_s4, %s1903_s21 }
  0x17   : > { %v238_v47 = vrot.slane %v237_v37, 4  ;;  %v289_v48 = vrot.slane %v287_v38, 4  ;;  %v292_v49 = vrot.slane %v290_v39, 5  ;;  %v298_v50 = vrot.slane %v296_v40, 5  ;;  %v2402_v56 = vld [vmem:[%s2331_s8 + $0x14] sm:$0x1] }
  0x18   : > { %vm562_vm5 = vcmask 1042432   ;;  %vm563_vm6 = vcmask 1046532   ;;  %v252_v52 = vrot.slane %v251_v42, 4  ;;  %v303_v53 = vrot.slane %v301_v43, 4  ;;  %v2411_v63 = vld [vmem:[%s2331_s8 + $0x1c] sm:$0x1] }
  0x19   : > { %v306_v54 = vrot.slane %v304_v44, 5  ;;  %v312_v55 = vrot.slane %v310_v45, 5  ;;  %v243_v57 = vsel %vm2388_vm4, %v238_v47, %v242_v29  ;;  %v293_v58 = vor.u32 %v292_v49, %v289_v48  ;;  %v2419_v27 = vld [vmem:[%s2331_s8 + $0x30] sm:$0xf]  ;;  %v2426_v32 = vld [vmem:[%s2331_s8 + $0x38] sm:$0xf]  ;;  %vm2456_vm7 = vmor %vm562_vm5, %vm563_vm6 }
  0x1a   : > { %v583_v59 = vrot.slane %v2376_v34, 5  ;;  %v587_v60 = vrot.slane %v2379_v35, 5  ;;  %v257_v61 = vsel %vm2388_vm4, %v252_v52, %v256_v33  ;;  %v259_v0 = vshrl.u32 %v2396_v46, 16  ;;  %v2429_v33 = vld [vmem:[%s2331_s8 + $0x34] sm:$0x1] }
  0x1b   : > { %v307_v62 = vor.u32 %v306_v54, %v303_v53  ;;  %v262_v1 = vshll.u32 %v2396_v46, 16  ;;  %v1905_v2 = vcombine.low %v243_v57, %v257_v61  ;;  %v294_v3 = vrot.slane %v293_v58, 4  ;;  %v2436_v43 = vld [vmem:[%s2331_s8 + $0x3c] sm:$0x1]  ;;  %v538_v44 = vld [vmem:[%s2331_s8] sm:$0xe] }
  0x1c   : > { %v268_v18 = vshll.u32 %v2402_v56, 16  ;;  %v273_v19 = vshrl.u32 %v2399_v51, 16  ;;  %v261_v21 = vrot.slane %v259_v0, 4  ;;  %v276_v23 = vshll.u32 %v2399_v51, 16  ;;  %v540_v57 = vld [vmem:[%s2331_s8 + $0x10] sm:$0xe] }
  0x1d   : > { %v308_v20 = vrot.slane %v307_v62, 4  ;;  %v264_v22 = vrot.slane %v262_v1, 5  ;;  %2123 = vmatprep.mubr.msk.bf16.mxu0 %vm356_vm3, %v1905_v2  ;;  %v299_v28 = vsel %vm2388_vm4, %v294_v3, %v298_v50  ;;  %v282_v30 = vshll.u32 %v2411_v63, 16  ;;  %v539_v50 = vld [vmem:[%s2331_s8 + $0x8] sm:$0xe] }
  0x1e   : > { %v275_v29 = vrot.slane %v273_v19, 4  ;;  %v1915_v37 = vcombine.low %v2370_v26, %v2373_v31  ;;  %v270_v40 = vrot.slane %v268_v18, 5  ;;  %v278_v42 = vrot.slane %v276_v23, 5  ;;  %v542_v1 = vld [vmem:[%s2331_s8 + $0x20] sm:$0xe] }
  0x1f   : > { %v313_v38 = vsel %vm2388_vm4, %v308_v20, %v312_v55  ;;  %v265_v39 = vor.u32 %v264_v22, %v261_v21  ;;  %v284_v47 = vrot.slane %v282_v30, 5  ;;  %v575_v48 = vrot.slane %v2402_v56, 5  ;;  %v541_v56 = vld [vmem:[%s2331_s8 + $0x18] sm:$0xe]  ;;  %v1963_v15 = vld [vmem:[%s2331_s8 + $0x28] sm:$0xf] }
  0x20   : > { %v1907_v45 = vcombine.low %v299_v28, %v313_v38  ;;  %v315_v49 = vshrl.u32 %v2419_v27, 16  ;;  %v279_v53 = vor.u32 %v278_v42, %v275_v29  ;;  %v318_v54 = vshll.u32 %v2419_v27, 16 }
  0x21   : > { %v266_v52 = vrot.slane %v265_v39, 4  ;;  %v324_v55 = vshll.u32 %v2429_v33, 16  ;;  %v329_v61 = vshrl.u32 %v2426_v32, 16  ;;  %v332_v62 = vshll.u32 %v2426_v32, 16 }
  0x22   : > { %2127 = vmatprep.mubr.msk.bf16.mxu1 %vm356_vm3, %v1907_v45  ;;  %v317_v58 = vrot.slane %v315_v49, 4  ;;  %v338_v0 = vshll.u32 %v2436_v43, 16  ;;  %v280_v3 = vrot.slane %v279_v53, 4  ;;  %v579_v18 = vrot.slane %v2411_v63, 5  ;;  %v543_v63 = vld [vmem:[%s2331_s8 + $0x28] sm:$0xe] }
  0x23   : > { %v271_v2 = vsel %vm2388_vm4, %v266_v52, %v270_v40  ;;  %v320_v19 = vrot.slane %v318_v54, 5  ;;  %v326_v21 = vrot.slane %v324_v55, 5  ;;  %v331_v22 = vrot.slane %v329_v61, 4  ;;  %v544_v52 = vld [vmem:[%s2331_s8 + $0x30] sm:$0xe] }
  0x24   : > { %v334_v23 = vrot.slane %v332_v62, 5  ;;  %v1921_v28 = vrot.slane %v538_v44, 9  ;;  %v285_v29 = vsel %vm2388_vm4, %v280_v3, %v284_v47  ;;  %v340_v38 = vrot.slane %v338_v0, 5  ;;  %v545_v54 = vld [vmem:[%s2331_s8 + $0x38] sm:$0xe] }
  0x25   : > { %v321_v30 = vor.u32 %v320_v19, %v317_v58  ;;  %v1922_v39 = vrot.slane %v539_v50, 9  ;;  %v1906_v40 = vcombine.low %v271_v2, %v285_v29  ;;  %v1923_v49 = vrot.slane %v540_v57, 9  ;;  %v2489_v62 = vld [vmem:[%s2331_s8 + $0xc] sm:$0x1] }
  0x26   : > { %v335_v42 = vor.u32 %v334_v23, %v331_v22  ;;  %v568_v45 = vsel %vm2456_vm7, %v1921_v28, %v567_v24  ;;  %v1924_v47 = vrot.slane %v541_v56, 9  ;;  %v1925_v50 = vrot.slane %v542_v1, 9  ;;  %v2502_v1 = vld [vmem:[%s2331_s8 + $0x14] sm:$0x1]  ;;  %v2509_v28 = vld [vmem:[%s2331_s8 + $0x1c] sm:$0x1] }
  0x27   : > { %v322_v53 = vrot.slane %v321_v30, 4  ;;  %v572_v44 = vsel %vm2456_vm7, %v1922_v39, %v571_v25  ;;  %2124 = vmatmul.mubr.msk.bf16.vlgmr.msra.gmra.mxu0 %vm356_vm3, %v1906_v40  ;;  %v576_v24 = vsel %vm2456_vm7, %v1923_v49, %v575_v48  ;;  %v1926_v57 = vrot.slane %v543_v63, 9  ;;  %v1955_v48 = vld [vmem:[%s2331_s8 + $0x8] sm:$0xf] }
  0x28   : > { %v336_v55 = vrot.slane %v335_v42, 4  ;;  %v1930_v16 = vcombine.low %v568_v45, %v572_v44  ;;  %2142 = vmatpush3.bf16.msra.mxu0 %v2321_v8  ;;  %v1914_v25 = vcombine.low %v2396_v46, %v2399_v51  ;;  %v580_v58 = vsel %vm2456_vm7, %v1924_v47, %v579_v18  ;;  %v2526_v42 = vld [vmem:[%s2331_s8 + $0x24] sm:$0x1]  ;;  %v2535_v47 = vld [vmem:[%s2331_s8 + $0x2c] sm:$0x1] }
  0x29   : > { %v327_v17 = vsel %vm2388_vm4, %v322_v53, %v326_v21  ;;  %v584_v61 = vsel %vm2456_vm7, %v1925_v50, %v583_v59  ;;  %v1931_v8 = vcombine.low %v576_v24, %v580_v58  ;;  %2218 = vmatprep.subr.msk.bf16.mxu0 %vm369_vm0, %v2309_v5  ;;  %v588_v34 = vsel %vm2456_vm7, %v1926_v57, %v587_v60  ;;  %v1957_v59 = vld [vmem:[%s2331_s8 + $0x10] sm:$0xf]  ;;  %v1959_v21 = vld [vmem:[%s2331_s8 + $0x18] sm:$0xf] }
  0x2a   : > { %v341_v0 = vsel %vm2388_vm4, %v336_v55, %v340_v38  ;;  %2143 = vmatprep.mubr.msk.bf16.mxu0 %vm356_vm3, %v1930_v16  ;;  %v1927_v56 = vrot.slane %v544_v52, 9  ;;  %v1932_v3 = vcombine.low %v584_v61, %v588_v34  ;;  %v591_v18 = vrot.slane %v2429_v33, 5  ;;  %v1961_v38 = vld [vmem:[%s2331_s8 + $0x20] sm:$0xf]  ;;  %v1965_v50 = vld [vmem:[%s2331_s8 + $0x30] sm:$0xf] }
  0x2b   : > { %v1908_v2 = vcombine.low %v327_v17, %v341_v0  ;;  %v1928_v19 = vrot.slane %v545_v54, 9  ;;  %v595_v22 = vrot.slane %v2436_v43, 5  ;;  %v835_v23 = vshrl.u32 %v1955_v48, 16 }
  0x2c   : > { %v838_v5 = vshll.u32 %v1955_v48, 16  ;;  %v844_v35 = vshll.u32 %v2489_v62, 16  ;;  %v2514_v60 = vsel %vm2456_vm7, %v1927_v56, %v591_v18  ;;  %v849_v29 = vshrl.u32 %v1957_v59, 16 }
  0x2d   : > { %2128 = vmatmul.mubr.msk.bf16.vlgmr.msra.gmra.mxu1 %vm356_vm3, %v1908_v2  ;;  %v852_v33 = vshll.u32 %v1957_v59, 16  ;;  %v858_v30 = vshll.u32 %v2502_v1, 16  ;;  %v596_v43 = vsel %vm2456_vm7, %v1928_v19, %v595_v22  ;;  %v837_v39 = vrot.slane %v835_v23, 4  ;;  %v2562_v23 = vld [vmem:[%s2331_s8 + $0x3c] sm:$0x1] }
  0x2e   : > { %2132 = vmatpush3.bf16.msra.mxu1 %v2318_v7  ;;  %2133 = vmatprep.mubr.msk.bf16.mxu1 %vm356_vm3, %v1913_v36  ;;  %v840_v63 = vrot.slane %v838_v5, 5  ;;  %v846_v40 = vrot.slane %v844_v35, 5  ;;  %v1933_v7 = vcombine.low %v2514_v60, %v596_v43  ;;  %v851_v45 = vrot.slane %v849_v29, 4  ;;  %v1969_v29 = vld [vmem:[%s2331_s8 + $0x40] sm:$0xf] }
  0x2f   : > { %2217 = vmatprep.subr.msk.bf16.mxu1 %vm369_vm0, %v2304_v4  ;;  %v854_v49 = vrot.slane %v852_v33, 5  ;;  %v860_v14 = vrot.slane %v858_v30, 5  ;;  %2144 = vmatmul.mubr.msk.bf16.vlgmr.msra.gmra.mxu0 %vm356_vm3, %v1931_v8  ;;  %v863_v52 = vshrl.u32 %v1959_v21, 16  ;;  %v866_v53 = vshll.u32 %v1959_v21, 16  ;;  %v1967_v21 = vld [vmem:[%s2331_s8 + $0x38] sm:$0xf] }
  0x30   : > { %v841_v36 = vor.u32 %v840_v63, %v837_v39  ;;  %v872_v44 = vshll.u32 %v2509_v28, 16  ;;  %2162 = vmatpush3.bf16.msra.mxu0 %v2339_v11  ;;  %2147 = vmatprep.mubr.msk.bf16.mxu0 %vm356_vm3, %v1932_v3  ;;  %v877_v54 = vshrl.u32 %v1961_v38, 16  ;;  %v880_v55 = vshll.u32 %v1961_v38, 16  ;;  %v2552_v3 = vld [vmem:[%s2331_s8 + $0x34] sm:$0x1] }
  0x31   : > { %v855_v4 = vor.u32 %v854_v49, %v851_v45  ;;  %v886_v16 = vshll.u32 %v2526_v42, 16  ;;  %v865_v57 = vrot.slane %v863_v52, 4  ;;  %v868_v17 = vrot.slane %v866_v53, 5  ;;  %2220 = vmatprep.subr.msk.bf16.mxu0 %vm369_vm0, %v2326_v9  ;;  %v2577_v43 = vld [vmem:[%s2331_s8 + $0x44] sm:$0x1] }
  0x32   : > { %v842_v24 = vrot.slane %v841_v36, 4  ;;  %v874_v58 = vrot.slane %v872_v44, 5  ;;  %v879_v48 = vrot.slane %v877_v54, 4  ;;  %v882_v0 = vrot.slane %v880_v55, 5  ;;  %v1980_v63 = vld [vmem:[%s2331_s8 + $0x8] sm:$0xe] }
  0x33   : > { %v856_v61 = vrot.slane %v855_v4, 4  ;;  %v888_v11 = vrot.slane %v886_v16, 5  ;;  %v869_v34 = vor.u32 %v868_v17, %v865_v57  ;;  %v891_v56 = vshrl.u32 %v1963_v15, 16  ;;  %v1981_v52 = vld [vmem:[%s2331_s8 + $0x10] sm:$0xe] }
  0x34   : > { %v847_v8 = vsel %vm2388_vm4, %v842_v24, %v846_v40  ;;  %v894_v59 = vshll.u32 %v1963_v15, 16  ;;  %v883_v9 = vor.u32 %v882_v0, %v879_v48  ;;  %v900_v18 = vshll.u32 %v2535_v47, 16  ;;  %v2236_v40 = vld [vmem:[%s2331_s8 + $0x8] ss:$8 sps:$4 sm:$0xff]   ;;  %v2038_v54 = vld [vmem:[%s2870_s1 + $0xe] sm:$0x3] }
  0x35   : > { %2134 = vmatmul.mubr.msk.bf16.vlgmr.msra.gmra.mxu1 %vm356_vm3, %v1914_v25  ;;  %v861_v2 = vsel %vm2388_vm4, %v856_v61, %v860_v14  ;;  %v905_v19 = vshrl.u32 %v1965_v50, 16  ;;  %v870_v51 = vrot.slane %v869_v34, 4  ;;  %v893_v25 = vrot.slane %v891_v56, 4  ;;  %v2063_v17 = vld [vmem:[%s2870_s1 + $0x10] sm:$0x3] }
  0x36   : > { %2152 = vmatpush3.bf16.msra.mxu1 %v2335_v10  ;;  %2137 = vmatprep.mubr.msk.bf16.mxu1 %vm356_vm3, %v1915_v37  ;;  %v1972_v46 = vcombine.low %v847_v8, %v861_v2  ;;  %v896_v22 = vrot.slane %v894_v59, 5  ;;  %v884_v5 = vrot.slane %v883_v9, 4  ;;  %v902_v35 = vrot.slane %v900_v18, 5  ;;  %v2237_v8 = vld [vmem:[%s2331_s8 + $0x18] ss:$8 sps:$4 sm:$0xff]  }
  0x37   : > { %2219 = vmatprep.subr.msk.bf16.mxu1 %vm369_vm0, %v2315_v6  ;;  %v907_v10 = vrot.slane %v905_v19, 4  ;;  %v908_v60 = vshll.u32 %v1965_v50, 16  ;;  %2148 = vmatmul.mubr.msk.bf16.gmra.mxu0 %vm356_vm3, %v1933_v7  ;;  %v875_v26 = vsel %vm2388_vm4, %v870_v51, %v874_v58  ;;  %v914_v37 = vshll.u32 %v2552_v3, 16  ;;  %v1983_v59 = vld [vmem:[%s2331_s8 + $0x20] sm:$0xe] }
  0x38   : > { %v897_v31 = vor.u32 %v896_v22, %v893_v25  ;;  %v919_v33 = vshrl.u32 %v1967_v21, 16  ;;  %v1916_v30 = vcombine.low %v2419_v27, %v2426_v32  ;;  %2163 = vmatprep.mubr.msk.bf16.mxu0 %vm356_vm3, %v1972_v46  ;;  %v889_v6 = vsel %vm2388_vm4, %v884_v5, %v888_v11  ;;  %v1982_v11 = vld [vmem:[%s2331_s8 + $0x18] sm:$0xe]  ;;  %v2238_v2 = vld [vmem:[%s2331_s8 + $0x28] ss:$8 sps:$4 sm:$0xff]  }
  0x39   : > { %v910_v38 = vrot.slane %v908_v60, 5  ;;  %v922_v39 = vshll.u32 %v1967_v21, 16  ;;  %v1973_v7 = vcombine.low %v875_v26, %v889_v6  ;;  %v928_v14 = vshll.u32 %v2562_v23, 16  ;;  %v1984_v19 = vld [vmem:[%s2331_s8 + $0x28] sm:$0xe] }
  0x3a   : > { %v898_v45 = vrot.slane %v897_v31, 4  ;;  %v921_v49 = vrot.slane %v919_v33, 4  ;;  %v916_v36 = vrot.slane %v914_v37, 5  ;;  %v933_v32 = vshrl.u32 %v1969_v29, 16  ;;  %v1985_v25 = vld [vmem:[%s2331_s8 + $0x30] sm:$0xe] }
  0x3b   : > { %v911_v15 = vor.u32 %v910_v38, %v907_v10  ;;  %v924_v27 = vrot.slane %v922_v39, 5  ;;  %v936_v44 = vshll.u32 %v1969_v29, 16  ;;  %v942_v50 = vshll.u32 %v2577_v43, 16  ;;  %v1986_v22 = vld [vmem:[%s2331_s8 + $0x38] sm:$0xe] }
  0x3c   : > { %v903_v53 = vsel %vm2388_vm4, %v898_v45, %v902_v35  ;;  %v1988_v4 = vrot.slane %v1980_v63, 9  ;;  %v935_v24 = vrot.slane %v933_v32, 4  ;;  %v1074_v57 = vrot.slane %v2489_v62, 5  ;;  %v1987_v60 = vld [vmem:[%s2331_s8 + $0x40] sm:$0xe] }
  0x3d   : > { %2138 = vmatmul.mubr.msk.bf16.gmra.mxu1 %vm356_vm3, %v1916_v30  ;;  %v912_v55 = vrot.slane %v911_v15, 4  ;;  %v925_v16 = vor.u32 %v924_v27, %v921_v49  ;;  %v930_v58 = vrot.slane %v928_v14, 5  ;;  %v938_v61 = vrot.slane %v936_v44, 5  ;;  %v2240_v29 = vld [vmem:[%s2331_s8 + $0x10] ss:$8 sps:$4 sm:$0xff]  }
  0x3e   : > { %2153 = vmatprep.mubr.msk.bf16.mxu1 %vm356_vm3, %v2236_v40  ;;  %v1989_v48 = vrot.slane %v1981_v52, 9  ;;  %v1078_v0 = vrot.slane %v2502_v1, 5  ;;  %v944_v56 = vrot.slane %v942_v50, 5  ;;  %v2607_v1 = vsel %vm2456_vm7, %v1988_v4, %v1074_v57  ;;  %v2022_v40 = vld [vmem:[%s2331_s8 + $0x10] sm:$0xf] }
  0x3f   : > { %v917_v34 = vsel %vm2388_vm4, %v912_v55, %v916_v36  ;;  %v926_v62 = vrot.slane %v925_v16, 4  ;;  %2164 = vmatmul.mubr.msk.bf16.vlgmr.msra.gmra.mxu0 %vm356_vm3, %v1973_v7  ;;  %v939_v18 = vor.u32 %v938_v61, %v935_v24  ;;  %v1990_v46 = vrot.slane %v1982_v11, 9  ;;  %v2023_v7 = vld [vmem:[%s2331_s8 + $0x14] sm:$0x1]  ;;  %v2025_v49 = vld [vmem:[%s2331_s8 + $0x1c] sm:$0x1] }
  0x40   : > { %v1974_v9 = vcombine.low %v903_v53, %v917_v34  ;;  %2182 = vmatpush3.bf16.msra.mxu0 %v2347_v13  ;;  %v2611_v21 = vsel %vm2456_vm7, %v1989_v48, %v1078_v0  ;;  %v2614_v51 = vsel %vm369_vm0, %v2038_v54, 0  ;;  %v1082_v35 = vrot.slane %v2509_v28, 5  ;;  %v2047_v32 = vld [vmem:[%s2331_s8 + $0x10] sm:$0xe]  ;;  %v2048_v50 = vld [vmem:[%s2331_s8 + $0x18] sm:$0xe] }
  0x41   : > { %v931_v5 = vsel %vm2388_vm4, %v926_v62, %v930_v58  ;;  %v940_v13 = vrot.slane %v939_v18, 4  ;;  %v1991_v10 = vrot.slane %v1983_v59, 9  ;;  %2222 = vmatprep.subr.msk.bf16.mxu0 %vm369_vm0, %v2063_v17  ;;  %v1086_v26 = vrot.slane %v2526_v42, 5  ;;  %v2239_v4 = vld [vmem:[%s2331_s8 + $0x38] ss:$8 sps:$4 sm:$0xff]  }
  0x42   : > { %2167 = vmatprep.mubr.msk.bf16.mxu0 %vm356_vm3, %v1974_v9  ;;  %v2627_v31 = vsel %vm369_vm0, %v2063_v17, 0  ;;  %v1992_v37 = vrot.slane %v1984_v19, 9  ;;  %v1090_v33 = vrot.slane %v2535_v47, 5  ;;  %v1993_v28 = vrot.slane %v1985_v25, 9  ;;  %v2026_v57 = vld [vmem:[%s2331_s8 + $0x20] sm:$0xf] }
  0x43   : > { %v945_v30 = vsel %vm2388_vm4, %v940_v13, %v944_v56  ;;  %v1094_v6 = vrot.slane %v2552_v3, 5  ;;  %v1994_v38 = vrot.slane %v1986_v22, 9  ;;  %v1098_v42 = vrot.slane %v2562_v23, 5  ;;  %v2024_v23 = vld [vmem:[%s2331_s8 + $0x18] sm:$0xf] }
  0x44   : > { %v1975_v39 = vcombine.low %v931_v5, %v945_v30  ;;  %v1995_v63 = vrot.slane %v1987_v60, 9  ;;  %v1997_v47 = vcombine.low %v2607_v1, %v2611_v21  ;;  %v2643_v3 = vsel %vm2456_vm7, %v1990_v46, %v1082_v35  ;;  %v2027_v0 = vld [vmem:[%s2331_s8 + $0x24] sm:$0x1]  ;;  %v2028_v62 = vld [vmem:[%s2331_s8 + $0x28] sm:$0xf] }
  0x45   : > { %2154 = vmatmul.mubr.msk.bf16.vlgmr.msra.gmra.mxu1 %vm356_vm3, %v2237_v8  ;;  %v1102_v45 = vrot.slane %v2577_v43, 5  ;;  %v1342_v14 = vshrl.u32 %v2022_v40, 16  ;;  %v1345_v15 = vshll.u32 %v2022_v40, 16  ;;  %v1356_v36 = vshrl.u32 %v2024_v23, 16  ;;  %v2241_v59 = vld [vmem:[%s2331_s8 + $0x20] ss:$8 sps:$4 sm:$0xff]  }
  0x46   : > { %2172 = vmatpush3.bf16.msra.mxu1 %v2343_v12  ;;  %2157 = vmatprep.mubr.msk.bf16.mxu1 %vm356_vm3, %v2238_v2  ;;  %v2651_v12 = vsel %vm2456_vm7, %v1991_v10, %v1086_v26  ;;  %v1359_v27 = vshll.u32 %v2024_v23, 16  ;;  %v2657_v43 = vsel %vm2456_vm7, %v1992_v37, %v1090_v33  ;;  %v1351_v53 = vshll.u32 %v2023_v7, 16  ;;  %v2242_v1 = vld [vmem:[%s2331_s8 + $0x30] ss:$8 sps:$4 sm:$0xff]   ;;  %v2049_v60 = vld [vmem:[%s2331_s8 + $0x20] sm:$0xe] }
  0x47   : > { %2221 = vmatprep.subr.msk.bf16.mxu1 %vm369_vm0, %v2038_v54  ;;  %2168 = vmatmul.mubr.msk.bf16.gmra.mxu0 %vm356_vm3, %v1975_v39  ;;  %v1344_v52 = vrot.slane %v1342_v14, 4  ;;  %v1365_v44 = vshll.u32 %v2025_v49, 16  ;;  %v2664_v54 = vsel %vm2456_vm7, %v1993_v28, %v1094_v6  ;;  %v2668_v55 = vsel %vm2456_vm7, %v1994_v38, %v1098_v42  ;;  %v2029_v30 = vld [vmem:[%s2331_s8 + $0x2c] sm:$0x1]  ;;  %v2030_v6 = vld [vmem:[%s2331_s8 + $0x30] sm:$0xf] }
  0x48   : > { %2183 = vmatprep.mubr.msk.bf16.mxu0 %vm356_vm3, %v2240_v29  ;;  %v1347_v16 = vrot.slane %v1345_v15, 5  ;;  %v1358_v24 = vrot.slane %v1356_v36, 4  ;;  %v2673_v17 = vsel %vm2456_vm7, %v1995_v63, %v1102_v45  ;;  %v1361_v58 = vrot.slane %v1359_v27, 5  ;;  %v2050_v29 = vld [vmem:[%s2331_s8 + $0x28] sm:$0xe] }
  0x49   : > { %v2055_v61 = vrot.slane %v2047_v32, 9  ;;  %v1581_v48 = vrot.slane %v2023_v7, 5  ;;  %v2056_v8 = vrot.slane %v2048_v50, 9  ;;  %v1585_v34 = vrot.slane %v2025_v49, 5  ;;  %v2032_v40 = vld [vmem:[%s2331_s8 + $0x38] sm:$0xf] }
  0x4a   : > { %v1348_v11 = vor.u32 %v1347_v16, %v1344_v52  ;;  %v1370_v56 = vshrl.u32 %v2026_v57, 16  ;;  %v1353_v2 = vrot.slane %v1351_v53, 5  ;;  %v1362_v9 = vor.u32 %v1361_v58, %v1358_v24  ;;  %v2243_v23 = vld [vmem:[%s2331_s8 + $0x40] ss:$8 sps:$4 sm:$0xff]   ;;  %v2031_v15 = vld [vmem:[%s2331_s8 + $0x34] sm:$0x1] }
  0x4b   : > { %v1367_v18 = vrot.slane %v1365_v44, 5  ;;  %v1373_v19 = vshll.u32 %v2026_v57, 16  ;;  %v1379_v25 = vshll.u32 %v2027_v0, 16  ;;  %v1384_v22 = vshrl.u32 %v2028_v62, 16  ;;  %v2051_v53 = vld [vmem:[%s2331_s8 + $0x30] sm:$0xe] }
  0x4c   : > { %v1349_v21 = vrot.slane %v1348_v11, 4  ;;  %v1372_v46 = vrot.slane %v1370_v56, 4  ;;  %v1998_v5 = vcombine.low %v2643_v3, %v2651_v12  ;;  %v1999_v13 = vcombine.low %v2657_v43, %v2664_v54  ;;  %v2033_v43 = vld [vmem:[%s2331_s8 + $0x3c] sm:$0x1]  ;;  %v2052_v16 = vld [vmem:[%s2331_s8 + $0x38] sm:$0xe] }
  0x4d   : > { %2158 = vmatmul.mubr.msk.bf16.gmra.mxu1 %vm356_vm3, %v2239_v4  ;;  %v1363_v35 = vrot.slane %v1362_v9, 4  ;;  %v1375_v10 = vrot.slane %v1373_v19, 5  ;;  %v2000_v26 = vcombine.low %v2668_v55, %v2673_v17  ;;  %v1582_v37 = vsel %vm2456_vm7, %v2055_v61, %v1581_v48  ;;  %v2036_v9 = vld [vmem:[%s2331_s8 + $0x48] sm:$0xf] }
  0x4e   : > { %2173 = vmatprep.mubr.msk.bf16.mxu1 %vm356_vm3, %v1997_v47  ;;  %v1586_v33 = vsel %vm2456_vm7, %v2056_v8, %v1585_v34  ;;  %v1387_v28 = vshll.u32 %v2028_v62, 16  ;;  %v1354_v38 = vsel %vm2388_vm4, %v1349_v21, %v1353_v2  ;;  %v1386_v63 = vrot.slane %v1384_v22, 4  ;;  %v2034_v34 = vld [vmem:[%s2331_s8 + $0x40] sm:$0xf] }
  0x4f   : > { %2184 = vmatmul.mubr.msk.bf16.vlgmr.msra.gmra.mxu0 %vm356_vm3, %v2241_v59  ;;  %v1368_v39 = vsel %vm2388_vm4, %v1363_v35, %v1367_v18  ;;  %v1376_v42 = vor.u32 %v1375_v10, %v1372_v46  ;;  %v2057_v47 = vrot.slane %v2049_v60, 9  ;;  %v1589_v3 = vrot.slane %v2027_v0, 5  ;;  %v2037_v60 = vld [vmem:[%s2331_s8 + $0x4c] sm:$0x1] }
  0x50   : > { %2202 = vmatpush3.bf16.msra.mxu0 %v2627_v31  ;;  %2187 = vmatprep.mubr.msk.bf16.mxu0 %vm356_vm3, %v2242_v1  ;;  %v1389_v7 = vrot.slane %v1387_v28, 5  ;;  %v2058_v45 = vrot.slane %v2050_v29, 9  ;;  %v2704_v49 = vrot.slane %v1379_v25, 5  ;;  %v1393_v14 = vshll.u32 %v2029_v30, 16  ;;  %v2035_v25 = vld [vmem:[%s2331_s8 + $0x44] sm:$0x1] }
  0x51   : > { %v1593_v12 = vrot.slane %v2029_v30, 5  ;;  %v1398_v36 = vshrl.u32 %v2030_v6, 16  ;;  %v2039_v27 = vcombine.low %v1354_v38, %v1368_v39  ;;  %v2064_v32 = vcombine.low %v1582_v37, %v1586_v33  ;;  %v2053_v37 = vld [vmem:[%s2331_s8 + $0x40] sm:$0xe]  ;;  %v2054_v38 = vld [vmem:[%s2331_s8 + $0x48] sm:$0xe] }
  0x52   : > { %v1401_v52 = vshll.u32 %v2030_v6, 16  ;;  %v1412_v31 = vshrl.u32 %v2032_v40, 16  ;;  %v2709_v44 = vrot.slane %v1376_v42, 4  ;;  %v1390_v50 = vor.u32 %v1389_v7, %v1386_v63 }
  0x53   : > { %v1400_v4 = vrot.slane %v1398_v36, 4  ;;  %v1415_v54 = vshll.u32 %v2032_v40, 16  ;;  %v1590_v24 = vsel %vm2456_vm7, %v2057_v47, %v1589_v3  ;;  %v1594_v57 = vsel %vm2456_vm7, %v2058_v45, %v1593_v12 }
  0x54   : > { %v1403_v58 = vrot.slane %v1401_v52, 5  ;;  %v1407_v61 = vshll.u32 %v2031_v15, 16  ;;  %v1414_v48 = vrot.slane %v1412_v31, 4  ;;  %v1421_v11 = vshll.u32 %v2033_v43, 16 }
  0x55   : > { %2174 = vmatmul.mubr.msk.bf16.vlgmr.msra.gmra.mxu1 %vm356_vm3, %v1998_v5  ;;  %v1417_v0 = vrot.slane %v1415_v54, 5  ;;  %v2059_v8 = vrot.slane %v2051_v53, 9  ;;  %v1395_v62 = vrot.slane %v1393_v14, 5  ;;  %v1597_v59 = vrot.slane %v2031_v15, 5 }
  0x56   : > { %2192 = vmatpush3.bf16.msra.mxu1 %v2614_v51  ;;  %2177 = vmatprep.mubr.msk.bf16.mxu1 %vm356_vm3, %v1999_v13  ;;  %v1404_v56 = vor.u32 %v1403_v58, %v1400_v4  ;;  %v2060_v2 = vrot.slane %v2052_v16, 9  ;;  %v1382_v51 = vsel %vm2388_vm4, %v2709_v44, %v2704_v49  ;;  %v1391_v18 = vrot.slane %v1390_v50, 4 }
  0x57   : > { %2188 = vmatmul.mubr.msk.bf16.gmra.mxu0 %vm356_vm3, %v2243_v23  ;;  %v1418_v19 = vor.u32 %v1417_v0, %v1414_v48  ;;  %v1601_v1 = vrot.slane %v2033_v43, 5  ;;  %v2065_v21 = vcombine.low %v1590_v24, %v1594_v57  ;;  %v1409_v46 = vrot.slane %v1407_v61, 5 }
  0x58   : > { %2203 = vmatprep.mubr.msk.bf16.mxu0 %vm356_vm3, %v2064_v32  ;;  %v1426_v22 = vshrl.u32 %v2034_v34, 16  ;;  %v1429_v5 = vshll.u32 %v2034_v34, 16  ;;  %v1423_v13 = vrot.slane %v1421_v11, 5  ;;  %v1598_v35 = vsel %vm2456_vm7, %v2059_v8, %v1597_v59 }
  0x59   : > { %v1602_v10 = vsel %vm2456_vm7, %v2060_v2, %v1601_v1  ;;  %v1440_v29 = vshrl.u32 %v2036_v9, 16  ;;  %v1405_v33 = vrot.slane %v1404_v56, 4  ;;  %v1419_v30 = vrot.slane %v1418_v19, 4 }
  0x5a   : > { %v1428_v28 = vrot.slane %v1426_v22, 4  ;;  %v1431_v6 = vrot.slane %v1429_v5, 5  ;;  %v1396_v39 = vsel %vm2388_vm4, %v1391_v18, %v1395_v62  ;;  %v1435_v42 = vshll.u32 %v2035_v25, 16 }
  0x5b   : > { %v1442_v63 = vrot.slane %v1440_v29, 4  ;;  %v1443_v40 = vshll.u32 %v2036_v9, 16  ;;  %v2066_v7 = vcombine.low %v1598_v35, %v1602_v10  ;;  %v1449_v3 = vshll.u32 %v2037_v60, 16 }
  0x5c   : > { %v1432_v47 = vor.u32 %v1431_v6, %v1428_v28  ;;  %v2061_v45 = vrot.slane %v2053_v37, 9  ;;  %v1605_v49 = vrot.slane %v2035_v25, 5  ;;  %v2062_v14 = vrot.slane %v2054_v38, 9 }
  0x5d   : > { %2178 = vmatmul.mubr.msk.bf16.gmra.mxu1 %vm356_vm3, %v2000_v26  ;;  %v1445_v23 = vrot.slane %v1443_v40, 5  ;;  %v1609_v12 = vrot.slane %v2037_v60, 5  ;;  %v1410_v15 = vsel %vm2388_vm4, %v1405_v33, %v1409_v46  ;;  %v1424_v36 = vsel %vm2388_vm4, %v1419_v30, %v1423_v13 }
  0x5e   : > { %2193 = vmatprep.mubr.msk.bf16.mxu1 %vm356_vm3, %v2039_v27  ;;  %v2040_v17 = vcombine.low %v1382_v51, %v1396_v39  ;;  %v1437_v26 = vrot.slane %v1435_v42, 5  ;;  %v1606_v27 = vsel %vm2456_vm7, %v2061_v45, %v1605_v49  ;;  %v2041_v43 = vcombine.low %v1410_v15, %v1424_v36 }
  0x5f   : > { %2204 = vmatmul.mubr.msk.bf16.vlgmr.msra.gmra.mxu0 %vm356_vm3, %v2065_v21  ;;  %v1446_v55 = vor.u32 %v1445_v23, %v1442_v63  ;;  %v1610_v32 = vsel %vm2456_vm7, %v2062_v14, %v1609_v12  ;;  %v1433_v52 = vrot.slane %v1432_v47, 4  ;;  %v1451_v53 = vrot.slane %v1449_v3, 5 }
  0x60   : > { %2207 = vmatprep.mubr.msk.bf16.mxu0 %vm356_vm3, %v2066_v7  ;;  %v2067_v44 = vcombine.low %v1606_v27, %v1610_v32  ;;  %vm1736_vm8 = vcmask 60416   ;;  %vm1745_vm9 = vcmask 64512   ;;  %vm1805_vm10 = vcmask 1040384  }
  0x61   : > { %v1447_v31 = vrot.slane %v1446_v55, 4  ;;  %v1438_v50 = vsel %vm2388_vm4, %v1433_v52, %v1437_v26  ;;  %vm1807_vm11 = vcmask 58368  }
  0x63   : > { %v1452_v4 = vsel %vm2388_vm4, %v1447_v31, %v1451_v53 }
  0x64   : > { %v2042_v54 = vcombine.low %v1438_v50, %v1452_v4 }
  0x65   : > { %2194 = vmatmul.mubr.msk.bf16.vlgmr.msra.gmra.mxu1 %vm356_vm3, %v2040_v17 }
  0x66   : > { %2197 = vmatprep.mubr.msk.bf16.mxu1 %vm356_vm3, %v2041_v43 }
  0x67   : > { %2208 = vmatmul.mubr.msk.bf16.gmra.mxu0 %vm356_vm3, %v2067_v44 }
  0x6d   : > { %2198 = vmatmul.mubr.msk.bf16.gmra.mxu1 %vm356_vm3, %v2042_v54 }
  0xe7   : > { %v2125_v20 = vpop.f32.mrf.mxu0 }
  0xe9   : > { %v407_v16 = vpop.f32.mrf.mxu0 }
  0xeb   : > { %v2126_v24 = vpop.f32.mrf.mxu0 }
  0xed   : > { %v2129_v57 = vpop.f32.mrf.mxu1  ;;  %v410_v58 = vpop.f32.mrf.mxu0 }
  0xef   : > { %v423_v61 = vpop.f32.mrf.mxu1  ;;  %v2145_v48 = vpop.f32.mrf.mxu0 }
  0xf1   : > { %v2130_v0 = vpop.f32.mrf.mxu1  ;;  %v660_v11 = vpop.f32.mrf.mxu0 }
  0xf3   : > { %v2760_v8 = vpop.f32.mrf.mxu1  ;;  %v2146_v34 = vpop.f32.mrf.mxu0 }
  0xf5   : > { %v2135_v62 = vpop.f32.mrf.mxu1  ;;  %v663_v41 = vpop.f32.mrf.mxu0 }
  0xf6   : > { %v516_v47 = vadd.f32 %v2135_v62, %v2125_v20 }
  0xf7   : > { %v507_v56 = vpop.f32.mrf.mxu1  ;;  %v2149_v59 = vpop.f32.mrf.mxu0 }
  0xf8   : > { %v508_v23 = vadd.f32 %v507_v56, %v407_v16  ;;  %v693_v12 = vadd.f32 %v2145_v48, %v516_v47 }
  0xf9   : > { %v2136_v2 = vpop.f32.mrf.mxu1  ;;  %v676_v9 = vpop.f32.mrf.mxu0 }
  0xfa   : > { %v519_v15 = vadd.f32 %v2136_v2, %v2126_v24  ;;  %v691_v17 = vadd.f32 %v660_v11, %v508_v23 }
  0xfb   : > { %v510_v51 = vpop.f32.mrf.mxu1  ;;  %v2150_v18 = vpop.f32.mrf.mxu0 }
  0xfc   : > { %v511_v32 = vadd.f32 %v510_v51, %v410_v58  ;;  %v694_v31 = vadd.f32 %v2146_v34, %v519_v15 }
  0xfd   : > { %v2139_v19 = vpop.f32.mrf.mxu1  ;;  %v2762_v1 = vpop.f32.mrf.mxu0 }
  0xfe   : > { %v532_v43 = vadd.f32 %v2139_v19, %v2129_v57  ;;  %v692_v24 = vadd.f32 %v663_v41, %v511_v32 }
  0xff   : > { %v523_v21 = vpop.f32.mrf.mxu1  ;;  %v2165_v46 = vpop.f32.mrf.mxu0 }
 0x100   : > { %v524_v4 = vadd.f32 %v523_v21, %v423_v61  ;;  %v697_v48 = vadd.f32 %v2149_v59, %v532_v43 }
 0x101   : > { %v2140_v25 = vpop.f32.mrf.mxu1  ;;  %v1009_v22 = vpop.f32.mrf.mxu0 }
 0x102   : > { %v535_v62 = vadd.f32 %v2140_v25, %v2130_v0  ;;  %v695_v34 = vadd.f32 %v676_v9, %v524_v4 }
 0x103   : > { %v526_v5 = vpop.f32.mrf.mxu1  ;;  %v2166_v13 = vpop.f32.mrf.mxu0 }
 0x104   : > { %v698_v23 = vadd.f32 %v2150_v18, %v535_v62  ;;  %v527_v61 = vadd.f32 %v526_v5, %v2760_v8  ;;  %v2787_v8 = vld [vmem:[%s2871_s2] ss:$0 sm:$0xff] }
 0x105   : > { %v2155_v35 = vpop.f32.mrf.mxu1  ;;  %v1012_v10 = vpop.f32.mrf.mxu0 }
 0x106   : > { %v812_v26 = vadd.f32 %v2155_v35, %v693_v12  ;;  %v696_v9 = vadd.f32 %v2762_v1, %v527_v61 }
 0x107   : > { %v779_v60 = vpop.f32.mrf.mxu1  ;;  %v2169_v29 = vpop.f32.mrf.mxu0 }
 0x108   : > { %v810_v53 = vadd.f32 %v779_v60, %v691_v17  ;;  %v1042_v54 = vadd.f32 %v2165_v46, %v812_v26 }
 0x109   : > { %v2156_v37 = vpop.f32.mrf.mxu1  ;;  %v2764_v33 = vpop.f32.mrf.mxu0 }
 0x10a   : > { %v813_v20 = vadd.f32 %v2156_v37, %v694_v31  ;;  %v1040_v56 = vadd.f32 %v1009_v22, %v810_v53 }
 0x10b   : > { %v782_v30 = vpop.f32.mrf.mxu1  ;;  %v2766_v28 = vpop.f32.mrf.mxu0 }
 0x10c   : > { %v811_v58 = vadd.f32 %v782_v30, %v692_v24  ;;  %v1043_v19 = vadd.f32 %v2166_v13, %v813_v20 }
 0x10d   : > { %v2159_v6 = vpop.f32.mrf.mxu1  ;;  %v2768_v38 = vpop.f32.mrf.mxu0 }
 0x10e   : > { %v816_v57 = vadd.f32 %v2159_v6, %v697_v48  ;;  %v1041_v59 = vadd.f32 %v1012_v10, %v811_v58 }
 0x10f   : > { %v795_v39 = vpop.f32.mrf.mxu1  ;;  %v2185_v42 = vpop.f32.mrf.mxu0 }
 0x110   : > { %v814_v46 = vadd.f32 %v795_v39, %v695_v34  ;;  %v1046_v25 = vadd.f32 %v2169_v29, %v816_v57 }
 0x111   : > { %v2160_v63 = vpop.f32.mrf.mxu1  ;;  %v1286_v40 = vpop.f32.mrf.mxu0 }
 0x112   : > { %v817_v22 = vadd.f32 %v2160_v63, %v698_v23  ;;  %v1044_v5 = vadd.f32 %v2764_v33, %v814_v46 }
 0x113   : > { %v2770_v7 = vpop.f32.mrf.mxu1  ;;  %v2186_v3 = vpop.f32.mrf.mxu0 }
 0x114   : > { %v815_v63 = vadd.f32 %v2770_v7, %v696_v9 }
 0x115   : > { %v2175_v45 = vpop.f32.mrf.mxu1  ;;  %v2772_v49 = vpop.f32.mrf.mxu0 }
 0x116   : > { %v1200_v2 = vadd.f32 %v2175_v45, %v1042_v54 }
 0x117   : > { %v1167_v14 = vpop.f32.mrf.mxu1  ;;  %v2774_v36 = vpop.f32.mrf.mxu0 }
 0x118   : > { %v1198_v60 = vadd.f32 %v1167_v14, %v1040_v56  ;;  %v1319_v37 = vadd.f32 %v2185_v42, %v1200_v2  ;;  %v1047_v42 = vadd.f32 %v2766_v28, %v817_v22 }
 0x119   : > { %v2176_v55 = vpop.f32.mrf.mxu1  ;;  %v2776_v27 = vpop.f32.mrf.mxu0 }
 0x11a   : > { %v1201_v41 = vadd.f32 %v2176_v55, %v1043_v19  ;;  %v1317_v30 = vadd.f32 %v1286_v40, %v1198_v60 }
 0x11b   : > { %v1170_v52 = vpop.f32.mrf.mxu1  ;;  %v2778_v44 = vpop.f32.mrf.mxu0 }
 0x11c   : > { %v1199_v13 = vadd.f32 %v1170_v52, %v1041_v59  ;;  %v1320_v39 = vadd.f32 %v2186_v3, %v1201_v41 }
 0x11d   : > { %v2179_v50 = vpop.f32.mrf.mxu1  ;;  %v2780_v16 = vpop.f32.mrf.mxu0 }
 0x11e   : > { %v1204_v14 = vadd.f32 %v2179_v50, %v1046_v25  ;;  %v1318_v32 = vadd.f32 %v2772_v49, %v1199_v13  ;;  %v1045_v49 = vadd.f32 %v2768_v38, %v815_v63 }
 0x11f   : > { %v1183_v11 = vpop.f32.mrf.mxu1  ;;  %v2205_v35 = vpop.f32.mrf.mxu0 }
 0x120   : > { %v1202_v1 = vadd.f32 %v1183_v11, %v1044_v5  ;;  %v1323_v33 = vadd.f32 %v2774_v36, %v1204_v14 }
 0x121   : > { %v2180_v51 = vpop.f32.mrf.mxu1  ;;  %v1674_v47 = vpop.f32.mrf.mxu0 }
 0x122   : > { %v1205_v7 = vadd.f32 %v2180_v51, %v1047_v42  ;;  %v1321_v53 = vadd.f32 %v2776_v27, %v1202_v1 }
 0x123   : > { %v1186_v21 = vpop.f32.mrf.mxu1  ;;  %v2206_v0 = vpop.f32.mrf.mxu0 }
 0x124   : > { %v1203_v24 = vadd.f32 %v1186_v21, %v1045_v49  ;;  %v1324_v38 = vadd.f32 %v2778_v44, %v1205_v7 }
 0x125   : > { %v2195_v45 = vpop.f32.mrf.mxu1  ;;  %v1677_v12 = vpop.f32.mrf.mxu0 }
 0x126   : > { %v1549_v6 = vadd.f32 %v2195_v45, %v1319_v37  ;;  %v1322_v34 = vadd.f32 %v2780_v16, %v1203_v24 }
 0x127   : > { %v1516_v18 = vpop.f32.mrf.mxu1  ;;  %v2209_v26 = vpop.f32.mrf.mxu0 }
 0x128   : > { %v1707_v10 = vadd.f32 %v2205_v35, %v1549_v6  ;;  %v1547_v29 = vadd.f32 %v1516_v18, %v1317_v30 }
 0x129   : > { %v2196_v40 = vpop.f32.mrf.mxu1  ;;  %v1690_v20 = vpop.f32.mrf.mxu0 }
 0x12a   : > { %v2794_v15 = vadd.f32 %v2787_v8, %v1707_v10  ;;  %v1705_v55 = vadd.f32 %v1674_v47, %v1547_v29  ;;  %v1550_v17 = vadd.f32 %v2196_v40, %v1320_v39 }
 0x12b   : > { %v1519_v28 = vpop.f32.mrf.mxu1  ;;  %v2210_v44 = vpop.f32.mrf.mxu0 }
 0x12c   : > { %v1730_v3 = vpack.c.bf16 %v2794_v15, %v2794_v15  ;;  %v2806_v43 = vadd.f32 %v2787_v8, %v1705_v55  ;;  %v1708_v52 = vadd.f32 %v2206_v0, %v1550_v17  ;;  %v1548_v36 = vadd.f32 %v1519_v28, %v1318_v32 }
 0x12d   : > { %v2199_v31 = vpop.f32.mrf.mxu1  ;;  %v1749_v37 = vsel %vm1745_vm9, %v2794_v15, 0.0  ;;  %v1693_v25 = vpop.f32.mrf.mxu0 }
 0x12e   : > { %1739 = vst.msk [vmem:[%s2801_s20 + $0x8] sm:$0xf] %vm1736_vm8, %v1730_v3  ;;  %v1728_v50 = vpack.c.bf16 %v2806_v43, %v2806_v43  ;;  %v2815_v4 = vadd.f32 %v2787_v8, %v1708_v52  ;;  %v1553_v54 = vadd.f32 %v2199_v31, %v1323_v33  ;;  %v1706_v48 = vadd.f32 %v1677_v12, %v1548_v36 }
 0x12f   : > { %v1532_v62 = vpop.f32.mrf.mxu1  ;;  %v1746_v19 = vsel %vm1745_vm9, %v2806_v43, 0.0 }
 0x130   : > { %1737 = vst.msk [vmem:[%s2801_s20] sm:$0xf] %vm1736_vm8, %v1728_v50  ;;  %v1731_v27 = vpack.c.bf16 %v2815_v4, %v2815_v4  ;;  %v1711_v11 = vadd.f32 %v2209_v26, %v1553_v54  ;;  %v1551_v56 = vadd.f32 %v1532_v62, %v1321_v53  ;;  %v1721_v2 = vadd.f32 %v2787_v8, %v1706_v48 }
 0x131   : > { %v2200_v35 = vpop.f32.mrf.mxu1  ;;  %v1751_v22 = vsel %vm1745_vm9, %v2815_v4, 0.0 }
 0x132   : > { %1740 = vst.msk [vmem:[%s2801_s20 + $0xc] sm:$0xf] %vm1736_vm8, %v1731_v27  ;;  %v1726_v58 = vadd.f32 %v2787_v8, %v1711_v11  ;;  %v1709_v57 = vadd.f32 %v1690_v20, %v1551_v56  ;;  %v1554_v51 = vadd.f32 %v2200_v35, %v1324_v38  ;;  %v1729_v60 = vpack.c.bf16 %v1721_v2, %v1721_v2 }
 0x133   : > { %v1747_v47 = vsel %vm1745_vm9, %v1721_v2, 0.0  ;;  %v1535_v23 = vpop.f32.mrf.mxu1 }
 0x134   : > { %v1748_v61 = vadd.f32 %v1747_v47, %v1746_v19  ;;  %v1734_v21 = vpack.c.bf16 %v1726_v58, %v1726_v58  ;;  %v1724_v46 = vadd.f32 %v2787_v8, %v1709_v57  ;;  %1738 = vst.msk [vmem:[%s2801_s20 + $0x4] sm:$0xf] %vm1736_vm8, %v1729_v60  ;;  %v1712_v41 = vadd.f32 %v2210_v44, %v1554_v51 }
 0x135   : > { %v1552_v16 = vadd.f32 %v1535_v23, %v1322_v34  ;;  %v1757_v10 = vsel %vm1745_vm9, %v1726_v58, 0.0 }
 0x136   : > { %v1750_v0 = vadd.f32 %v1749_v37, %v1748_v61  ;;  %1743 = vst.msk [vmem:[%s2801_s20 + $0x18] sm:$0xf] %vm1736_vm8, %v1734_v21  ;;  %v1732_v59 = vpack.c.bf16 %v1724_v46, %v1724_v46  ;;  %v1727_v45 = vadd.f32 %v2787_v8, %v1712_v41  ;;  %v1753_v12 = vsel %vm1745_vm9, %v1724_v46, 0.0 }
 0x137   : > { %v1710_v30 = vadd.f32 %v1693_v25, %v1552_v16 }
 0x138   : > { %1741 = vst.msk [vmem:[%s2801_s20 + $0x10] sm:$0xf] %vm1736_vm8, %v1732_v59  ;;  %v1752_v6 = vadd.f32 %v1751_v22, %v1750_v0  ;;  %v1735_v9 = vpack.c.bf16 %v1727_v45, %v1727_v45  ;;  %v1759_v42 = vsel %vm1745_vm9, %v1727_v45, 0.0 }
 0x139   : > { %v1725_v13 = vadd.f32 %v2787_v8, %v1710_v30 }
 0x13a   : > { %v1754_v14 = vadd.f32 %v1753_v12, %v1752_v6  ;;  %1744 = vst.msk [vmem:[%s2801_s20 + $0x1c] sm:$0xf] %vm1736_vm8, %v1735_v9 }
 0x13b   : > { %v1733_v18 = vpack.c.bf16 %v1725_v13, %v1725_v13  ;;  %v1755_v5 = vsel %vm1745_vm9, %v1725_v13, 0.0 }
 0x13c   : > { %v1756_v39 = vadd.f32 %v1755_v5, %v1754_v14 }
 0x13d   : > { %1742 = vst.msk [vmem:[%s2801_s20 + $0x14] sm:$0xf] %vm1736_vm8, %v1733_v18 }
 0x13e   : > { %v1758_v29 = vadd.f32 %v1757_v10, %v1756_v39 }
 0x140   : > { %v1760_v63 = vadd.f32 %v1759_v42, %v1758_v29 }
 0x142   : > { %v1761_v40 = vrot.slane %v1760_v63, 4 }
 0x144   : > { %v1762_v1 = vadd.f32 %v1761_v40, %v1760_v63 }
 0x146   : > { %v1763_v55 = vrot.slane %v1762_v1, 2 }
 0x148   : > { %v1764_v17 = vadd.f32 %v1763_v55, %v1762_v1 }
 0x14a   : > { %v1765_v8 = vrot.slane %v1764_v17, 1 }
 0x14c   : > { %v1766_v26 = vadd.f32 %v1765_v8, %v1764_v17 }
 0x14e   : > { %v1767_v32 = vmul.f32 0.015625, %v1766_v26 }
 0x150   : > { %v1768_v33 = vsub.f32 %v2806_v43, %v1767_v32  ;;  %v1769_v28 = vsub.f32 %v1721_v2, %v1767_v32  ;;  %v1770_v7 = vsub.f32 %v2794_v15, %v1767_v32  ;;  %v1771_v3 = vsub.f32 %v2815_v4, %v1767_v32 }
 0x151   : > { %v1772_v52 = vsub.f32 %v1724_v46, %v1767_v32  ;;  %v1773_v53 = vsub.f32 %v1725_v13, %v1767_v32  ;;  %v1774_v48 = vsub.f32 %v1726_v58, %v1767_v32  ;;  %v1775_v27 = vsub.f32 %v1727_v45, %v1767_v32 }
 0x152   : > { %v1776_v49 = vmul.f32 %v1768_v33, %v1768_v33  ;;  %v1777_v36 = vmul.f32 %v1769_v28, %v1769_v28  ;;  %v1778_v31 = vmul.f32 %v1770_v7, %v1770_v7  ;;  %v1779_v50 = vmul.f32 %v1771_v3, %v1771_v3 }
 0x153   : > { %v1780_v62 = vmul.f32 %v1772_v52, %v1772_v52  ;;  %v1781_v15 = vmul.f32 %v1773_v53, %v1773_v53  ;;  %v1782_v56 = vmul.f32 %v1774_v48, %v1774_v48  ;;  %v1783_v57 = vmul.f32 %v1775_v27, %v1775_v27 }
 0x154   : > { %v1784_v54 = vsel %vm1745_vm9, %v1776_v49, 0.0  ;;  %v1785_v20 = vsel %vm1745_vm9, %v1777_v36, 0.0  ;;  %v1787_v43 = vsel %vm1745_vm9, %v1778_v31, 0.0  ;;  %v1789_v4 = vsel %vm1745_vm9, %v1779_v50, 0.0 }
 0x155   : > { %v1786_v24 = vadd.f32 %v1785_v20, %v1784_v54  ;;  %v1791_v2 = vsel %vm1745_vm9, %v1780_v62, 0.0  ;;  %v1793_v51 = vsel %vm1745_vm9, %v1781_v15, 0.0  ;;  %v1795_v58 = vsel %vm1745_vm9, %v1782_v56, 0.0 }
 0x156   : > { %v1797_v19 = vsel %vm1745_vm9, %v1783_v57, 0.0 }
 0x157   : > { %v1788_v38 = vadd.f32 %v1787_v43, %v1786_v24 }
 0x159   : > { %v1790_v11 = vadd.f32 %v1789_v4, %v1788_v38 }
 0x15b   : > { %v1792_v35 = vadd.f32 %v1791_v2, %v1790_v11 }
 0x15d   : > { %v1794_v44 = vadd.f32 %v1793_v51, %v1792_v35 }
 0x15f   : > { %v1796_v34 = vadd.f32 %v1795_v58, %v1794_v44 }
 0x161   : > { %v1798_v60 = vadd.f32 %v1797_v19, %v1796_v34 }
 0x163   : > { %v1799_v47 = vrot.slane %v1798_v60, 4 }
 0x165   : > { %v1800_v23 = vadd.f32 %v1799_v47, %v1798_v60 }
 0x167   : > { %v1801_v61 = vrot.slane %v1800_v23, 2 }
 0x169   : > { %v1802_v21 = vadd.f32 %v1801_v61, %v1800_v23 }
 0x16b   : > { %v1803_v46 = vrot.slane %v1802_v21, 1 }
 0x16d   : > { %v1804_v37 = vadd.f32 %v1803_v46, %v1802_v21 }
 0x16f   : > { %v1806_v41 = vsel %vm1805_vm10, %v1766_v26, %v1804_v37 }
 0x170   : > { %1808 = vst.msk [vmem:[%s208_s24] sm:$0x3] %vm1807_vm11, %v1806_v41 }
 0x171 PF: > { %s15_s15 = sadd.s32 1, %s2250_s15  }
 0x172   : > { %p12_p4 = scmp.ge.s32.totalorder %s15_s15, 4  }
 0x174   :  { %14 = sbr.rel (!%p12_p4) target bundleno = 1 (0x1), region = 84 }

// kernel: down_forward.3
= control target key start
LH: loop header
LB: loop body
LE: loop exit
PB: predicated region body
PF: predicated region fallthrough
CT: control target
= control target key end

     0   :  { %s2276_s15 = smov 0   ;;  %s2862_s0 = inlined_call_operand.vmem [shape: bf16[2,10,10,8], index: 0, kind: input, shape index: {}]   ;;  %s2863_s1 = inlined_call_operand.vmem [shape: bf16[9,8,8], index: 1, kind: input, shape index: {}]   ;;  %s2864_s2 = inlined_call_operand.vmem [shape: f32[1,8], index: 2, kind: input, shape index: {}]   ;;  %s2865_s3 = inlined_call_operand.vmem [shape: bf16[2,8,8,8], index: 3, kind: output, shape index: {0}]   ;;  %s2866_s4 = inlined_call_operand.vmem [shape: f32[2,2,8], index: 4, kind: output, shape index: {1}]  }
   0x1 LB: > { %s1894_s16 = sadd.s32 4294967295, %s2249_s15   ;;  %p1898_p0 = scmp.ge.s32.totalorder %s2249_s15, 1  ;;  %s2249_s15 = sphi %s2276_s15, %s15_s15  }
   0x2   : > { %p165_p1 = scmp.lt.s32.totalorder %s2249_s15, 3 }
   0x4   : > { %p166_p2 = pnand %p1898_p0, %p165_p1 }
   0x5   : > { %p195_p3 = scmp.lt.s32.totalorder (!%p166_p2), %s1894_s16, 1 }
   0x6   : > { %169 = sbr.rel (%p166_p2) target bundleno = 369 (0x171), region = 32 }
   0xb   : > { %v1903_v0 = vld [vmem:[%s2863_s1 + $0x4] sm:$0xf]  ;;  %vm369_vm0 = vcmask 1043456   ;;  %v218_v2 = vld [vmem:[%s2863_s1] sm:$0xf]  ;;  %s2872_s16 = smov (!%p195_p3, %s1894_s16), 1 }
   0xc   : > { %2213 = vmatprep.subr.msk.bf16.mxu1 %vm369_vm0, %v1903_v0  ;;  %2212 = vmatprep.subr.msk.bf16.mxu0 %vm369_vm0, %v1903_v0  ;;  %v371_v1 = vsel %vm369_vm0, %v1903_v0, 0  ;;  %v1928_v3 = vld [vmem:[%s2863_s1 + $0x8] sm:$0xf]  ;;  %v2303_v4 = vld [vmem:[%s2863_s1 + $0xc] sm:$0xf]  ;;  %s2222_s27 = smul.u32 80, %s2872_s16 }
   0xd   : > { %2211 = vmatpush3.bf16.msra.mxu1 %v371_v1  ;;  %2121 = vmatpush3.bf16.msra.mxu0 %v371_v1  ;;  %v2308_v5 = vld [vmem:[%s2863_s1 + $0x10] sm:$0xf]  ;;  %vm227_vm1 = vsmask.f32 3328  ;;  %v2314_v6 = vld [vmem:[%s2863_s1 + $0x14] sm:$0xf] }
   0xe   : > { %2214 = vmatprep.subr.msk.bf16.mxu1 %vm369_vm0, %v218_v2  ;;  %2215 = vmatprep.subr.msk.bf16.mxu0 %vm369_vm0, %v1928_v3  ;;  %vm228_vm2 = vsmask.f32 7440  ;;  %v2317_v7 = vsel %vm369_vm0, %v218_v2, 0  ;;  %v2320_v8 = vsel %vm369_vm0, %v1928_v3, 0  ;;  %v2325_v9 = vld [vmem:[%s2863_s1 + $0x18] sm:$0xf]  ;;  %s2330_s8 = scalar_lea.vmem %s2862_s0, %s2222_s27 }
   0xf   : > { %v2334_v10 = vsel %vm369_vm0, %v2303_v4, 0  ;;  %v2338_v11 = vsel %vm369_vm0, %v2308_v5, 0  ;;  %v2342_v12 = vsel %vm369_vm0, %v2314_v6, 0  ;;  %v2346_v13 = vsel %vm369_vm0, %v2325_v9, 0  ;;  %v2349_v14 = vld [vmem:[%s2330_s8] sm:$0xf]  ;;  %vm2387_vm4 = vmor %vm227_vm1, %vm228_vm2 }
  0x10   : > { %v2352_v15 = vld [vmem:[%s2330_s8 + $0x8] sm:$0xf]  ;;  %v2355_v16 = vld [vmem:[%s2330_s8 + $0x4] sm:$0x1]  ;;  %v2358_v17 = vld [vmem:[%s2330_s8 + $0xc] sm:$0x1] }
  0x11   : > { %v231_v18 = vshrl.u32 %v2349_v14, 16  ;;  %v234_v19 = vshll.u32 %v2349_v14, 16  ;;  %v240_v20 = vshll.u32 %v2355_v16, 16  ;;  %v245_v21 = vshrl.u32 %v2352_v15, 16  ;;  %v2369_v26 = vld [vmem:[%s2330_s8 + $0x20] sm:$0xf] }
  0x12   : > { %v248_v22 = vshll.u32 %v2352_v15, 16  ;;  %v254_v23 = vshll.u32 %v2358_v17, 16  ;;  %vm356_vm3 = vcmask 64512   ;;  %v567_v24 = vrot.slane %v2355_v16, 5  ;;  %v2372_v31 = vld [vmem:[%s2330_s8 + $0x28] sm:$0xf] }
  0x13   : > { %v571_v25 = vrot.slane %v2358_v17, 5  ;;  %v233_v27 = vrot.slane %v231_v18, 4  ;;  %v236_v28 = vrot.slane %v234_v19, 5  ;;  %v242_v29 = vrot.slane %v240_v20, 5  ;;  %v2375_v34 = vld [vmem:[%s2330_s8 + $0x24] sm:$0x1] }
  0x14   : > { %v247_v30 = vrot.slane %v245_v21, 4  ;;  %v250_v32 = vrot.slane %v248_v22, 5  ;;  %v256_v33 = vrot.slane %v254_v23, 5  ;;  %v2378_v35 = vld [vmem:[%s2330_s8 + $0x2c] sm:$0x1]  ;;  %v1912_v36 = vcombine.low %v2349_v14, %v2352_v15  ;;  %s2074_s17 = sshll.u32 %s2872_s16, 5 }
  0x15   : > { %v237_v37 = vor.u32 %v236_v28, %v233_v27  ;;  %v287_v38 = vshrl.u32 %v2369_v26, 16  ;;  %v290_v39 = vshll.u32 %v2369_v26, 16  ;;  %v296_v40 = vshll.u32 %v2375_v34, 16  ;;  %v2395_v46 = vld [vmem:[%s2330_s8 + $0x10] sm:$0xf]  ;;  %s2800_s20 = scalar_lea.vmem %s2865_s3, %s2074_s17  ;;  %s1902_s21 = sshll.u32 %s2872_s16, 1 }
  0x16   : > { %v251_v42 = vor.u32 %v250_v32, %v247_v30  ;;  %v301_v43 = vshrl.u32 %v2372_v31, 16  ;;  %v304_v44 = vshll.u32 %v2372_v31, 16  ;;  %v310_v45 = vshll.u32 %v2378_v35, 16  ;;  %v2398_v51 = vld [vmem:[%s2330_s8 + $0x18] sm:$0xf]  ;;  %s208_s24 = scalar_lea.vmem %s2866_s4, %s1902_s21 }
  0x17   : > { %v238_v47 = vrot.slane %v237_v37, 4  ;;  %v289_v48 = vrot.slane %v287_v38, 4  ;;  %v292_v49 = vrot.slane %v290_v39, 5  ;;  %v298_v50 = vrot.slane %v296_v40, 5  ;;  %v2401_v56 = vld [vmem:[%s2330_s8 + $0x14] sm:$0x1] }
  0x18   : > { %vm562_vm5 = vcmask 1042432   ;;  %vm563_vm6 = vcmask 1046532   ;;  %v252_v52 = vrot.slane %v251_v42, 4  ;;  %v303_v53 = vrot.slane %v301_v43, 4  ;;  %v2410_v63 = vld [vmem:[%s2330_s8 + $0x1c] sm:$0x1] }
  0x19   : > { %v306_v54 = vrot.slane %v304_v44, 5  ;;  %v312_v55 = vrot.slane %v310_v45, 5  ;;  %v243_v57 = vsel %vm2387_vm4, %v238_v47, %v242_v29  ;;  %v293_v58 = vor.u32 %v292_v49, %v289_v48  ;;  %v2418_v27 = vld [vmem:[%s2330_s8 + $0x30] sm:$0xf]  ;;  %v2425_v32 = vld [vmem:[%s2330_s8 + $0x38] sm:$0xf]  ;;  %vm2455_vm7 = vmor %vm562_vm5, %vm563_vm6 }
  0x1a   : > { %v583_v59 = vrot.slane %v2375_v34, 5  ;;  %v587_v60 = vrot.slane %v2378_v35, 5  ;;  %v257_v61 = vsel %vm2387_vm4, %v252_v52, %v256_v33  ;;  %v259_v0 = vshrl.u32 %v2395_v46, 16  ;;  %v2428_v33 = vld [vmem:[%s2330_s8 + $0x34] sm:$0x1] }
  0x1b   : > { %v307_v62 = vor.u32 %v306_v54, %v303_v53  ;;  %v262_v1 = vshll.u32 %v2395_v46, 16  ;;  %v1904_v2 = vcombine.low %v243_v57, %v257_v61  ;;  %v294_v3 = vrot.slane %v293_v58, 4  ;;  %v2435_v43 = vld [vmem:[%s2330_s8 + $0x3c] sm:$0x1]  ;;  %v538_v44 = vld [vmem:[%s2330_s8] sm:$0xe] }
  0x1c   : > { %v268_v18 = vshll.u32 %v2401_v56, 16  ;;  %v273_v19 = vshrl.u32 %v2398_v51, 16  ;;  %v261_v21 = vrot.slane %v259_v0, 4  ;;  %v276_v23 = vshll.u32 %v2398_v51, 16  ;;  %v540_v57 = vld [vmem:[%s2330_s8 + $0x10] sm:$0xe] }
  0x1d   : > { %v308_v20 = vrot.slane %v307_v62, 4  ;;  %v264_v22 = vrot.slane %v262_v1, 5  ;;  %2122 = vmatprep.mubr.msk.bf16.mxu0 %vm356_vm3, %v1904_v2  ;;  %v299_v28 = vsel %vm2387_vm4, %v294_v3, %v298_v50  ;;  %v282_v30 = vshll.u32 %v2410_v63, 16  ;;  %v539_v50 = vld [vmem:[%s2330_s8 + $0x8] sm:$0xe] }
  0x1e   : > { %v275_v29 = vrot.slane %v273_v19, 4  ;;  %v1914_v37 = vcombine.low %v2369_v26, %v2372_v31  ;;  %v270_v40 = vrot.slane %v268_v18, 5  ;;  %v278_v42 = vrot.slane %v276_v23, 5  ;;  %v542_v1 = vld [vmem:[%s2330_s8 + $0x20] sm:$0xe] }
  0x1f   : > { %v313_v38 = vsel %vm2387_vm4, %v308_v20, %v312_v55  ;;  %v265_v39 = vor.u32 %v264_v22, %v261_v21  ;;  %v284_v47 = vrot.slane %v282_v30, 5  ;;  %v575_v48 = vrot.slane %v2401_v56, 5  ;;  %v541_v56 = vld [vmem:[%s2330_s8 + $0x18] sm:$0xe]  ;;  %v1962_v15 = vld [vmem:[%s2330_s8 + $0x28] sm:$0xf] }
  0x20   : > { %v1906_v45 = vcombine.low %v299_v28, %v313_v38  ;;  %v315_v49 = vshrl.u32 %v2418_v27, 16  ;;  %v279_v53 = vor.u32 %v278_v42, %v275_v29  ;;  %v318_v54 = vshll.u32 %v2418_v27, 16 }
  0x21   : > { %v266_v52 = vrot.slane %v265_v39, 4  ;;  %v324_v55 = vshll.u32 %v2428_v33, 16  ;;  %v329_v61 = vshrl.u32 %v2425_v32, 16  ;;  %v332_v62 = vshll.u32 %v2425_v32, 16 }
  0x22   : > { %2126 = vmatprep.mubr.msk.bf16.mxu1 %vm356_vm3, %v1906_v45  ;;  %v317_v58 = vrot.slane %v315_v49, 4  ;;  %v338_v0 = vshll.u32 %v2435_v43, 16  ;;  %v280_v3 = vrot.slane %v279_v53, 4  ;;  %v579_v18 = vrot.slane %v2410_v63, 5  ;;  %v543_v63 = vld [vmem:[%s2330_s8 + $0x28] sm:$0xe] }
  0x23   : > { %v271_v2 = vsel %vm2387_vm4, %v266_v52, %v270_v40  ;;  %v320_v19 = vrot.slane %v318_v54, 5  ;;  %v326_v21 = vrot.slane %v324_v55, 5  ;;  %v331_v22 = vrot.slane %v329_v61, 4  ;;  %v544_v52 = vld [vmem:[%s2330_s8 + $0x30] sm:$0xe] }
  0x24   : > { %v334_v23 = vrot.slane %v332_v62, 5  ;;  %v1920_v28 = vrot.slane %v538_v44, 9  ;;  %v285_v29 = vsel %vm2387_vm4, %v280_v3, %v284_v47  ;;  %v340_v38 = vrot.slane %v338_v0, 5  ;;  %v545_v54 = vld [vmem:[%s2330_s8 + $0x38] sm:$0xe] }
  0x25   : > { %v321_v30 = vor.u32 %v320_v19, %v317_v58  ;;  %v1921_v39 = vrot.slane %v539_v50, 9  ;;  %v1905_v40 = vcombine.low %v271_v2, %v285_v29  ;;  %v1922_v49 = vrot.slane %v540_v57, 9  ;;  %v2488_v62 = vld [vmem:[%s2330_s8 + $0xc] sm:$0x1] }
  0x26   : > { %v335_v42 = vor.u32 %v334_v23, %v331_v22  ;;  %v568_v45 = vsel %vm2455_vm7, %v1920_v28, %v567_v24  ;;  %v1923_v47 = vrot.slane %v541_v56, 9  ;;  %v1924_v50 = vrot.slane %v542_v1, 9  ;;  %v2501_v1 = vld [vmem:[%s2330_s8 + $0x14] sm:$0x1]  ;;  %v2508_v28 = vld [vmem:[%s2330_s8 + $0x1c] sm:$0x1] }
  0x27   : > { %v322_v53 = vrot.slane %v321_v30, 4  ;;  %v572_v44 = vsel %vm2455_vm7, %v1921_v39, %v571_v25  ;;  %2123 = vmatmul.mubr.msk.bf16.vlgmr.msra.gmra.mxu0 %vm356_vm3, %v1905_v40  ;;  %v576_v24 = vsel %vm2455_vm7, %v1922_v49, %v575_v48  ;;  %v1925_v57 = vrot.slane %v543_v63, 9  ;;  %v1954_v48 = vld [vmem:[%s2330_s8 + $0x8] sm:$0xf] }
  0x28   : > { %v336_v55 = vrot.slane %v335_v42, 4  ;;  %v1929_v16 = vcombine.low %v568_v45, %v572_v44  ;;  %2141 = vmatpush3.bf16.msra.mxu0 %v2320_v8  ;;  %v1913_v25 = vcombine.low %v2395_v46, %v2398_v51  ;;  %v580_v58 = vsel %vm2455_vm7, %v1923_v47, %v579_v18  ;;  %v2525_v42 = vld [vmem:[%s2330_s8 + $0x24] sm:$0x1]  ;;  %v2534_v47 = vld [vmem:[%s2330_s8 + $0x2c] sm:$0x1] }
  0x29   : > { %v327_v17 = vsel %vm2387_vm4, %v322_v53, %v326_v21  ;;  %v584_v61 = vsel %vm2455_vm7, %v1924_v50, %v583_v59  ;;  %v1930_v8 = vcombine.low %v576_v24, %v580_v58  ;;  %2217 = vmatprep.subr.msk.bf16.mxu0 %vm369_vm0, %v2308_v5  ;;  %v588_v34 = vsel %vm2455_vm7, %v1925_v57, %v587_v60  ;;  %v1956_v59 = vld [vmem:[%s2330_s8 + $0x10] sm:$0xf]  ;;  %v1958_v21 = vld [vmem:[%s2330_s8 + $0x18] sm:$0xf] }
  0x2a   : > { %v341_v0 = vsel %vm2387_vm4, %v336_v55, %v340_v38  ;;  %2142 = vmatprep.mubr.msk.bf16.mxu0 %vm356_vm3, %v1929_v16  ;;  %v1926_v56 = vrot.slane %v544_v52, 9  ;;  %v1931_v3 = vcombine.low %v584_v61, %v588_v34  ;;  %v591_v18 = vrot.slane %v2428_v33, 5  ;;  %v1960_v38 = vld [vmem:[%s2330_s8 + $0x20] sm:$0xf]  ;;  %v1964_v50 = vld [vmem:[%s2330_s8 + $0x30] sm:$0xf] }
  0x2b   : > { %v1907_v2 = vcombine.low %v327_v17, %v341_v0  ;;  %v1927_v19 = vrot.slane %v545_v54, 9  ;;  %v595_v22 = vrot.slane %v2435_v43, 5  ;;  %v835_v23 = vshrl.u32 %v1954_v48, 16 }
  0x2c   : > { %v838_v5 = vshll.u32 %v1954_v48, 16  ;;  %v844_v35 = vshll.u32 %v2488_v62, 16  ;;  %v2513_v60 = vsel %vm2455_vm7, %v1926_v56, %v591_v18  ;;  %v849_v29 = vshrl.u32 %v1956_v59, 16 }
  0x2d   : > { %2127 = vmatmul.mubr.msk.bf16.vlgmr.msra.gmra.mxu1 %vm356_vm3, %v1907_v2  ;;  %v852_v33 = vshll.u32 %v1956_v59, 16  ;;  %v858_v30 = vshll.u32 %v2501_v1, 16  ;;  %v596_v43 = vsel %vm2455_vm7, %v1927_v19, %v595_v22  ;;  %v837_v39 = vrot.slane %v835_v23, 4  ;;  %v2561_v23 = vld [vmem:[%s2330_s8 + $0x3c] sm:$0x1] }
  0x2e   : > { %2131 = vmatpush3.bf16.msra.mxu1 %v2317_v7  ;;  %2132 = vmatprep.mubr.msk.bf16.mxu1 %vm356_vm3, %v1912_v36  ;;  %v840_v63 = vrot.slane %v838_v5, 5  ;;  %v846_v40 = vrot.slane %v844_v35, 5  ;;  %v1932_v7 = vcombine.low %v2513_v60, %v596_v43  ;;  %v851_v45 = vrot.slane %v849_v29, 4  ;;  %v1968_v29 = vld [vmem:[%s2330_s8 + $0x40] sm:$0xf] }
  0x2f   : > { %2216 = vmatprep.subr.msk.bf16.mxu1 %vm369_vm0, %v2303_v4  ;;  %v854_v49 = vrot.slane %v852_v33, 5  ;;  %v860_v14 = vrot.slane %v858_v30, 5  ;;  %2143 = vmatmul.mubr.msk.bf16.vlgmr.msra.gmra.mxu0 %vm356_vm3, %v1930_v8  ;;  %v863_v52 = vshrl.u32 %v1958_v21, 16  ;;  %v866_v53 = vshll.u32 %v1958_v21, 16  ;;  %v1966_v21 = vld [vmem:[%s2330_s8 + $0x38] sm:$0xf] }
  0x30   : > { %v841_v36 = vor.u32 %v840_v63, %v837_v39  ;;  %v872_v44 = vshll.u32 %v2508_v28, 16  ;;  %2161 = vmatpush3.bf16.msra.mxu0 %v2338_v11  ;;  %2146 = vmatprep.mubr.msk.bf16.mxu0 %vm356_vm3, %v1931_v3  ;;  %v877_v54 = vshrl.u32 %v1960_v38, 16  ;;  %v880_v55 = vshll.u32 %v1960_v38, 16  ;;  %v2551_v3 = vld [vmem:[%s2330_s8 + $0x34] sm:$0x1] }
  0x31   : > { %v855_v4 = vor.u32 %v854_v49, %v851_v45  ;;  %v886_v16 = vshll.u32 %v2525_v42, 16  ;;  %v865_v57 = vrot.slane %v863_v52, 4  ;;  %v868_v17 = vrot.slane %v866_v53, 5  ;;  %2219 = vmatprep.subr.msk.bf16.mxu0 %vm369_vm0, %v2325_v9  ;;  %v2576_v43 = vld [vmem:[%s2330_s8 + $0x44] sm:$0x1] }
  0x32   : > { %v842_v24 = vrot.slane %v841_v36, 4  ;;  %v874_v58 = vrot.slane %v872_v44, 5  ;;  %v879_v48 = vrot.slane %v877_v54, 4  ;;  %v882_v0 = vrot.slane %v880_v55, 5  ;;  %v1979_v63 = vld [vmem:[%s2330_s8 + $0x8] sm:$0xe] }
  0x33   : > { %v856_v61 = vrot.slane %v855_v4, 4  ;;  %v888_v11 = vrot.slane %v886_v16, 5  ;;  %v869_v34 = vor.u32 %v868_v17, %v865_v57  ;;  %v891_v56 = vshrl.u32 %v1962_v15, 16  ;;  %v1980_v52 = vld [vmem:[%s2330_s8 + $0x10] sm:$0xe] }
  0x34   : > { %v847_v8 = vsel %vm2387_vm4, %v842_v24, %v846_v40  ;;  %v894_v59 = vshll.u32 %v1962_v15, 16  ;;  %v883_v9 = vor.u32 %v882_v0, %v879_v48  ;;  %v900_v18 = vshll.u32 %v2534_v47, 16  ;;  %v2235_v40 = vld [vmem:[%s2330_s8 + $0x8] ss:$8 sps:$4 sm:$0xff]   ;;  %v2037_v54 = vld [vmem:[%s2863_s1 + $0x1c] sm:$0xf] }
  0x35   : > { %2133 = vmatmul.mubr.msk.bf16.vlgmr.msra.gmra.mxu1 %vm356_vm3, %v1913_v25  ;;  %v861_v2 = vsel %vm2387_vm4, %v856_v61, %v860_v14  ;;  %v905_v19 = vshrl.u32 %v1964_v50, 16  ;;  %v870_v51 = vrot.slane %v869_v34, 4  ;;  %v893_v25 = vrot.slane %v891_v56, 4  ;;  %v2062_v17 = vld [vmem:[%s2863_s1 + $0x20] sm:$0xf] }
  0x36   : > { %2151 = vmatpush3.bf16.msra.mxu1 %v2334_v10  ;;  %2136 = vmatprep.mubr.msk.bf16.mxu1 %vm356_vm3, %v1914_v37  ;;  %v1971_v46 = vcombine.low %v847_v8, %v861_v2  ;;  %v896_v22 = vrot.slane %v894_v59, 5  ;;  %v884_v5 = vrot.slane %v883_v9, 4  ;;  %v902_v35 = vrot.slane %v900_v18, 5  ;;  %v2236_v8 = vld [vmem:[%s2330_s8 + $0x18] ss:$8 sps:$4 sm:$0xff]  }
  0x37   : > { %2218 = vmatprep.subr.msk.bf16.mxu1 %vm369_vm0, %v2314_v6  ;;  %v907_v10 = vrot.slane %v905_v19, 4  ;;  %v908_v60 = vshll.u32 %v1964_v50, 16  ;;  %2147 = vmatmul.mubr.msk.bf16.gmra.mxu0 %vm356_vm3, %v1932_v7  ;;  %v875_v26 = vsel %vm2387_vm4, %v870_v51, %v874_v58  ;;  %v914_v37 = vshll.u32 %v2551_v3, 16  ;;  %v1982_v59 = vld [vmem:[%s2330_s8 + $0x20] sm:$0xe] }
  0x38   : > { %v897_v31 = vor.u32 %v896_v22, %v893_v25  ;;  %v919_v33 = vshrl.u32 %v1966_v21, 16  ;;  %v1915_v30 = vcombine.low %v2418_v27, %v2425_v32  ;;  %2162 = vmatprep.mubr.msk.bf16.mxu0 %vm356_vm3, %v1971_v46  ;;  %v889_v6 = vsel %vm2387_vm4, %v884_v5, %v888_v11  ;;  %v1981_v11 = vld [vmem:[%s2330_s8 + $0x18] sm:$0xe]  ;;  %v2237_v2 = vld [vmem:[%s2330_s8 + $0x28] ss:$8 sps:$4 sm:$0xff]  }
  0x39   : > { %v910_v38 = vrot.slane %v908_v60, 5  ;;  %v922_v39 = vshll.u32 %v1966_v21, 16  ;;  %v1972_v7 = vcombine.low %v875_v26, %v889_v6  ;;  %v928_v14 = vshll.u32 %v2561_v23, 16  ;;  %v1983_v19 = vld [vmem:[%s2330_s8 + $0x28] sm:$0xe] }
  0x3a   : > { %v898_v45 = vrot.slane %v897_v31, 4  ;;  %v921_v49 = vrot.slane %v919_v33, 4  ;;  %v916_v36 = vrot.slane %v914_v37, 5  ;;  %v933_v32 = vshrl.u32 %v1968_v29, 16  ;;  %v1984_v25 = vld [vmem:[%s2330_s8 + $0x30] sm:$0xe] }
  0x3b   : > { %v911_v15 = vor.u32 %v910_v38, %v907_v10  ;;  %v924_v27 = vrot.slane %v922_v39, 5  ;;  %v936_v44 = vshll.u32 %v1968_v29, 16  ;;  %v942_v50 = vshll.u32 %v2576_v43, 16  ;;  %v1985_v22 = vld [vmem:[%s2330_s8 + $0x38] sm:$0xe] }
  0x3c   : > { %v903_v53 = vsel %vm2387_vm4, %v898_v45, %v902_v35  ;;  %v1987_v4 = vrot.slane %v1979_v63, 9  ;;  %v935_v24 = vrot.slane %v933_v32, 4  ;;  %v1074_v57 = vrot.slane %v2488_v62, 5  ;;  %v1986_v60 = vld [vmem:[%s2330_s8 + $0x40] sm:$0xe] }
  0x3d   : > { %2137 = vmatmul.mubr.msk.bf16.gmra.mxu1 %vm356_vm3, %v1915_v30  ;;  %v912_v55 = vrot.slane %v911_v15, 4  ;;  %v925_v16 = vor.u32 %v924_v27, %v921_v49  ;;  %v930_v58 = vrot.slane %v928_v14, 5  ;;  %v938_v61 = vrot.slane %v936_v44, 5  ;;  %v2239_v29 = vld [vmem:[%s2330_s8 + $0x10] ss:$8 sps:$4 sm:$0xff]  }
  0x3e   : > { %2152 = vmatprep.mubr.msk.bf16.mxu1 %vm356_vm3, %v2235_v40  ;;  %v1988_v48 = vrot.slane %v1980_v52, 9  ;;  %v1078_v0 = vrot.slane %v2501_v1, 5  ;;  %v944_v56 = vrot.slane %v942_v50, 5  ;;  %v2606_v1 = vsel %vm2455_vm7, %v1987_v4, %v1074_v57  ;;  %v2021_v40 = vld [vmem:[%s2330_s8 + $0x10] sm:$0xf] }
  0x3f   : > { %v917_v34 = vsel %vm2387_vm4, %v912_v55, %v916_v36  ;;  %v926_v62 = vrot.slane %v925_v16, 4  ;;  %2163 = vmatmul.mubr.msk.bf16.vlgmr.msra.gmra.mxu0 %vm356_vm3, %v1972_v7  ;;  %v939_v18 = vor.u32 %v938_v61, %v935_v24  ;;  %v1989_v46 = vrot.slane %v1981_v11, 9  ;;  %v2022_v7 = vld [vmem:[%s2330_s8 + $0x14] sm:$0x1]  ;;  %v2024_v49 = vld [vmem:[%s2330_s8 + $0x1c] sm:$0x1] }
  0x40   : > { %v1973_v9 = vcombine.low %v903_v53, %v917_v34  ;;  %2181 = vmatpush3.bf16.msra.mxu0 %v2346_v13  ;;  %v2610_v21 = vsel %vm2455_vm7, %v1988_v48, %v1078_v0  ;;  %v2613_v51 = vsel %vm369_vm0, %v2037_v54, 0  ;;  %v1082_v35 = vrot.slane %v2508_v28, 5  ;;  %v2046_v32 = vld [vmem:[%s2330_s8 + $0x10] sm:$0xe]  ;;  %v2047_v50 = vld [vmem:[%s2330_s8 + $0x18] sm:$0xe] }
  0x41   : > { %v931_v5 = vsel %vm2387_vm4, %v926_v62, %v930_v58  ;;  %v940_v13 = vrot.slane %v939_v18, 4  ;;  %v1990_v10 = vrot.slane %v1982_v59, 9  ;;  %2221 = vmatprep.subr.msk.bf16.mxu0 %vm369_vm0, %v2062_v17  ;;  %v1086_v26 = vrot.slane %v2525_v42, 5  ;;  %v2238_v4 = vld [vmem:[%s2330_s8 + $0x38] ss:$8 sps:$4 sm:$0xff]  }
  0x42   : > { %2166 = vmatprep.mubr.msk.bf16.mxu0 %vm356_vm3, %v1973_v9  ;;  %v2626_v31 = vsel %vm369_vm0, %v2062_v17, 0  ;;  %v1991_v37 = vrot.slane %v1983_v19, 9  ;;  %v1090_v33 = vrot.slane %v2534_v47, 5  ;;  %v1992_v28 = vrot.slane %v1984_v25, 9  ;;  %v2025_v57 = vld [vmem:[%s2330_s8 + $0x20] sm:$0xf] }
  0x43   : > { %v945_v30 = vsel %vm2387_vm4, %v940_v13, %v944_v56  ;;  %v1094_v6 = vrot.slane %v2551_v3, 5  ;;  %v1993_v38 = vrot.slane %v1985_v22, 9  ;;  %v1098_v42 = vrot.slane %v2561_v23, 5  ;;  %v2023_v23 = vld [vmem:[%s2330_s8 + $0x18] sm:$0xf] }
  0x44   : > { %v1974_v39 = vcombine.low %v931_v5, %v945_v30  ;;  %v1994_v63 = vrot.slane %v1986_v60, 9  ;;  %v1996_v47 = vcombine.low %v2606_v1, %v2610_v21  ;;  %v2642_v3 = vsel %vm2455_vm7, %v1989_v46, %v1082_v35  ;;  %v2026_v0 = vld [vmem:[%s2330_s8 + $0x24] sm:$0x1]  ;;  %v2027_v62 = vld [vmem:[%s2330_s8 + $0x28] sm:$0xf] }
  0x45   : > { %2153 = vmatmul.mubr.msk.bf16.vlgmr.msra.gmra.mxu1 %vm356_vm3, %v2236_v8  ;;  %v1102_v45 = vrot.slane %v2576_v43, 5  ;;  %v1342_v14 = vshrl.u32 %v2021_v40, 16  ;;  %v1345_v15 = vshll.u32 %v2021_v40, 16  ;;  %v1356_v36 = vshrl.u32 %v2023_v23, 16  ;;  %v2240_v59 = vld [vmem:[%s2330_s8 + $0x20] ss:$8 sps:$4 sm:$0xff]  }
  0x46   : > { %2171 = vmatpush3.bf16.msra.mxu1 %v2342_v12  ;;  %2156 = vmatprep.mubr.msk.bf16.mxu1 %vm356_vm3, %v2237_v2  ;;  %v2650_v12 = vsel %vm2455_vm7, %v1990_v10, %v1086_v26  ;;  %v1359_v27 = vshll.u32 %v2023_v23, 16  ;;  %v2656_v43 = vsel %vm2455_vm7, %v1991_v37, %v1090_v33  ;;  %v1351_v53 = vshll.u32 %v2022_v7, 16  ;;  %v2241_v1 = vld [vmem:[%s2330_s8 + $0x30] ss:$8 sps:$4 sm:$0xff]   ;;  %v2048_v60 = vld [vmem:[%s2330_s8 + $0x20] sm:$0xe] }
  0x47   : > { %2220 = vmatprep.subr.msk.bf16.mxu1 %vm369_vm0, %v2037_v54  ;;  %2167 = vmatmul.mubr.msk.bf16.gmra.mxu0 %vm356_vm3, %v1974_v39  ;;  %v1344_v52 = vrot.slane %v1342_v14, 4  ;;  %v1365_v44 = vshll.u32 %v2024_v49, 16  ;;  %v2663_v54 = vsel %vm2455_vm7, %v1992_v28, %v1094_v6  ;;  %v2667_v55 = vsel %vm2455_vm7, %v1993_v38, %v1098_v42  ;;  %v2028_v30 = vld [vmem:[%s2330_s8 + $0x2c] sm:$0x1]  ;;  %v2029_v6 = vld [vmem:[%s2330_s8 + $0x30] sm:$0xf] }
  0x48   : > { %2182 = vmatprep.mubr.msk.bf16.mxu0 %vm356_vm3, %v2239_v29  ;;  %v1347_v16 = vrot.slane %v1345_v15, 5  ;;  %v1358_v24 = vrot.slane %v1356_v36, 4  ;;  %v2672_v17 = vsel %vm2455_vm7, %v1994_v63, %v1102_v45  ;;  %v1361_v58 = vrot.slane %v1359_v27, 5  ;;  %v2049_v29 = vld [vmem:[%s2330_s8 + $0x28] sm:$0xe] }
  0x49   : > { %v2054_v61 = vrot.slane %v2046_v32, 9  ;;  %v1581_v48 = vrot.slane %v2022_v7, 5  ;;  %v2055_v8 = vrot.slane %v2047_v50, 9  ;;  %v1585_v34 = vrot.slane %v2024_v49, 5  ;;  %v2031_v40 = vld [vmem:[%s2330_s8 + $0x38] sm:$0xf] }
  0x4a   : > { %v1348_v11 = vor.u32 %v1347_v16, %v1344_v52  ;;  %v1370_v56 = vshrl.u32 %v2025_v57, 16  ;;  %v1353_v2 = vrot.slane %v1351_v53, 5  ;;  %v1362_v9 = vor.u32 %v1361_v58, %v1358_v24  ;;  %v2242_v23 = vld [vmem:[%s2330_s8 + $0x40] ss:$8 sps:$4 sm:$0xff]   ;;  %v2030_v15 = vld [vmem:[%s2330_s8 + $0x34] sm:$0x1] }
  0x4b   : > { %v1367_v18 = vrot.slane %v1365_v44, 5  ;;  %v1373_v19 = vshll.u32 %v2025_v57, 16  ;;  %v1379_v25 = vshll.u32 %v2026_v0, 16  ;;  %v1384_v22 = vshrl.u32 %v2027_v62, 16  ;;  %v2050_v53 = vld [vmem:[%s2330_s8 + $0x30] sm:$0xe] }
  0x4c   : > { %v1349_v21 = vrot.slane %v1348_v11, 4  ;;  %v1372_v46 = vrot.slane %v1370_v56, 4  ;;  %v1997_v5 = vcombine.low %v2642_v3, %v2650_v12  ;;  %v1998_v13 = vcombine.low %v2656_v43, %v2663_v54  ;;  %v2032_v43 = vld [vmem:[%s2330_s8 + $0x3c] sm:$0x1]  ;;  %v2051_v16 = vld [vmem:[%s2330_s8 + $0x38] sm:$0xe] }
  0x4d   : > { %2157 = vmatmul.mubr.msk.bf16.gmra.mxu1 %vm356_vm3, %v2238_v4  ;;  %v1363_v35 = vrot.slane %v1362_v9, 4  ;;  %v1375_v10 = vrot.slane %v1373_v19, 5  ;;  %v1999_v26 = vcombine.low %v2667_v55, %v2672_v17  ;;  %v1582_v37 = vsel %vm2455_vm7, %v2054_v61, %v1581_v48  ;;  %v2035_v9 = vld [vmem:[%s2330_s8 + $0x48] sm:$0xf] }
  0x4e   : > { %2172 = vmatprep.mubr.msk.bf16.mxu1 %vm356_vm3, %v1996_v47  ;;  %v1586_v33 = vsel %vm2455_vm7, %v2055_v8, %v1585_v34  ;;  %v1387_v28 = vshll.u32 %v2027_v62, 16  ;;  %v1354_v38 = vsel %vm2387_vm4, %v1349_v21, %v1353_v2  ;;  %v1386_v63 = vrot.slane %v1384_v22, 4  ;;  %v2033_v34 = vld [vmem:[%s2330_s8 + $0x40] sm:$0xf] }
  0x4f   : > { %2183 = vmatmul.mubr.msk.bf16.vlgmr.msra.gmra.mxu0 %vm356_vm3, %v2240_v59  ;;  %v1368_v39 = vsel %vm2387_vm4, %v1363_v35, %v1367_v18  ;;  %v1376_v42 = vor.u32 %v1375_v10, %v1372_v46  ;;  %v2056_v47 = vrot.slane %v2048_v60, 9  ;;  %v1589_v3 = vrot.slane %v2026_v0, 5  ;;  %v2036_v60 = vld [vmem:[%s2330_s8 + $0x4c] sm:$0x1] }
  0x50   : > { %2201 = vmatpush3.bf16.msra.mxu0 %v2626_v31  ;;  %2186 = vmatprep.mubr.msk.bf16.mxu0 %vm356_vm3, %v2241_v1  ;;  %v1389_v7 = vrot.slane %v1387_v28, 5  ;;  %v2057_v45 = vrot.slane %v2049_v29, 9  ;;  %v2703_v49 = vrot.slane %v1379_v25, 5  ;;  %v1393_v14 = vshll.u32 %v2028_v30, 16  ;;  %v2034_v25 = vld [vmem:[%s2330_s8 + $0x44] sm:$0x1] }
  0x51   : > { %v1593_v12 = vrot.slane %v2028_v30, 5  ;;  %v1398_v36 = vshrl.u32 %v2029_v6, 16  ;;  %v2038_v27 = vcombine.low %v1354_v38, %v1368_v39  ;;  %v2063_v32 = vcombine.low %v1582_v37, %v1586_v33  ;;  %v2052_v37 = vld [vmem:[%s2330_s8 + $0x40] sm:$0xe]  ;;  %v2053_v38 = vld [vmem:[%s2330_s8 + $0x48] sm:$0xe] }
  0x52   : > { %v1401_v52 = vshll.u32 %v2029_v6, 16  ;;  %v1412_v31 = vshrl.u32 %v2031_v40, 16  ;;  %v2708_v44 = vrot.slane %v1376_v42, 4  ;;  %v1390_v50 = vor.u32 %v1389_v7, %v1386_v63 }
  0x53   : > { %v1400_v4 = vrot.slane %v1398_v36, 4  ;;  %v1415_v54 = vshll.u32 %v2031_v40, 16  ;;  %v1590_v24 = vsel %vm2455_vm7, %v2056_v47, %v1589_v3  ;;  %v1594_v57 = vsel %vm2455_vm7, %v2057_v45, %v1593_v12 }
  0x54   : > { %v1403_v58 = vrot.slane %v1401_v52, 5  ;;  %v1407_v61 = vshll.u32 %v2030_v15, 16  ;;  %v1414_v48 = vrot.slane %v1412_v31, 4  ;;  %v1421_v11 = vshll.u32 %v2032_v43, 16 }
  0x55   : > { %2173 = vmatmul.mubr.msk.bf16.vlgmr.msra.gmra.mxu1 %vm356_vm3, %v1997_v5  ;;  %v1417_v0 = vrot.slane %v1415_v54, 5  ;;  %v2058_v8 = vrot.slane %v2050_v53, 9  ;;  %v1395_v62 = vrot.slane %v1393_v14, 5  ;;  %v1597_v59 = vrot.slane %v2030_v15, 5 }
  0x56   : > { %2191 = vmatpush3.bf16.msra.mxu1 %v2613_v51  ;;  %2176 = vmatprep.mubr.msk.bf16.mxu1 %vm356_vm3, %v1998_v13  ;;  %v1404_v56 = vor.u32 %v1403_v58, %v1400_v4  ;;  %v2059_v2 = vrot.slane %v2051_v16, 9  ;;  %v1382_v51 = vsel %vm2387_vm4, %v2708_v44, %v2703_v49  ;;  %v1391_v18 = vrot.slane %v1390_v50, 4 }
  0x57   : > { %2187 = vmatmul.mubr.msk.bf16.gmra.mxu0 %vm356_vm3, %v2242_v23  ;;  %v1418_v19 = vor.u32 %v1417_v0, %v1414_v48  ;;  %v1601_v1 = vrot.slane %v2032_v43, 5  ;;  %v2064_v21 = vcombine.low %v1590_v24, %v1594_v57  ;;  %v1409_v46 = vrot.slane %v1407_v61, 5 }
  0x58   : > { %2202 = vmatprep.mubr.msk.bf16.mxu0 %vm356_vm3, %v2063_v32  ;;  %v1426_v22 = vshrl.u32 %v2033_v34, 16  ;;  %v1429_v5 = vshll.u32 %v2033_v34, 16  ;;  %v1423_v13 = vrot.slane %v1421_v11, 5  ;;  %v1598_v35 = vsel %vm2455_vm7, %v2058_v8, %v1597_v59 }
  0x59   : > { %v1602_v10 = vsel %vm2455_vm7, %v2059_v2, %v1601_v1  ;;  %v1440_v29 = vshrl.u32 %v2035_v9, 16  ;;  %v1405_v33 = vrot.slane %v1404_v56, 4  ;;  %v1419_v30 = vrot.slane %v1418_v19, 4 }
  0x5a   : > { %v1428_v28 = vrot.slane %v1426_v22, 4  ;;  %v1431_v6 = vrot.slane %v1429_v5, 5  ;;  %v1396_v39 = vsel %vm2387_vm4, %v1391_v18, %v1395_v62  ;;  %v1435_v42 = vshll.u32 %v2034_v25, 16 }
  0x5b   : > { %v1442_v63 = vrot.slane %v1440_v29, 4  ;;  %v1443_v40 = vshll.u32 %v2035_v9, 16  ;;  %v2065_v7 = vcombine.low %v1598_v35, %v1602_v10  ;;  %v1449_v3 = vshll.u32 %v2036_v60, 16 }
  0x5c   : > { %v1432_v47 = vor.u32 %v1431_v6, %v1428_v28  ;;  %v2060_v45 = vrot.slane %v2052_v37, 9  ;;  %v1605_v49 = vrot.slane %v2034_v25, 5  ;;  %v2061_v14 = vrot.slane %v2053_v38, 9 }
  0x5d   : > { %2177 = vmatmul.mubr.msk.bf16.gmra.mxu1 %vm356_vm3, %v1999_v26  ;;  %v1445_v23 = vrot.slane %v1443_v40, 5  ;;  %v1609_v12 = vrot.slane %v2036_v60, 5  ;;  %v1410_v15 = vsel %vm2387_vm4, %v1405_v33, %v1409_v46  ;;  %v1424_v36 = vsel %vm2387_vm4, %v1419_v30, %v1423_v13 }
  0x5e   : > { %2192 = vmatprep.mubr.msk.bf16.mxu1 %vm356_vm3, %v2038_v27  ;;  %v2039_v17 = vcombine.low %v1382_v51, %v1396_v39  ;;  %v1437_v26 = vrot.slane %v1435_v42, 5  ;;  %v1606_v27 = vsel %vm2455_vm7, %v2060_v45, %v1605_v49  ;;  %v2040_v43 = vcombine.low %v1410_v15, %v1424_v36 }
  0x5f   : > { %2203 = vmatmul.mubr.msk.bf16.vlgmr.msra.gmra.mxu0 %vm356_vm3, %v2064_v21  ;;  %v1446_v55 = vor.u32 %v1445_v23, %v1442_v63  ;;  %v1610_v32 = vsel %vm2455_vm7, %v2061_v14, %v1609_v12  ;;  %v1433_v52 = vrot.slane %v1432_v47, 4  ;;  %v1451_v53 = vrot.slane %v1449_v3, 5 }
  0x60   : > { %2206 = vmatprep.mubr.msk.bf16.mxu0 %vm356_vm3, %v2065_v7  ;;  %v2066_v44 = vcombine.low %v1606_v27, %v1610_v32  ;;  %vm1736_vm8 = vcmask 60416   ;;  %vm1804_vm9 = vcmask 1040384   ;;  %vm1806_vm10 = vcmask 58368  }
  0x61   : > { %v1447_v31 = vrot.slane %v1446_v55, 4  ;;  %v1438_v50 = vsel %vm2387_vm4, %v1433_v52, %v1437_v26 }
  0x63   : > { %v1452_v4 = vsel %vm2387_vm4, %v1447_v31, %v1451_v53 }
  0x64   : > { %v2041_v54 = vcombine.low %v1438_v50, %v1452_v4 }
  0x65   : > { %2193 = vmatmul.mubr.msk.bf16.vlgmr.msra.gmra.mxu1 %vm356_vm3, %v2039_v17 }
  0x66   : > { %2196 = vmatprep.mubr.msk.bf16.mxu1 %vm356_vm3, %v2040_v43 }
  0x67   : > { %2207 = vmatmul.mubr.msk.bf16.gmra.mxu0 %vm356_vm3, %v2066_v44 }
  0x6d   : > { %2197 = vmatmul.mubr.msk.bf16.gmra.mxu1 %vm356_vm3, %v2041_v54 }
  0xe7   : > { %v2124_v20 = vpop.f32.mrf.mxu0 }
  0xe9   : > { %v407_v16 = vpop.f32.mrf.mxu0 }
  0xeb   : > { %v2125_v24 = vpop.f32.mrf.mxu0 }
  0xed   : > { %v2128_v57 = vpop.f32.mrf.mxu1  ;;  %v410_v58 = vpop.f32.mrf.mxu0 }
  0xef   : > { %v423_v61 = vpop.f32.mrf.mxu1  ;;  %v2144_v48 = vpop.f32.mrf.mxu0 }
  0xf1   : > { %v2129_v0 = vpop.f32.mrf.mxu1  ;;  %v660_v11 = vpop.f32.mrf.mxu0 }
  0xf3   : > { %v2759_v8 = vpop.f32.mrf.mxu1  ;;  %v2145_v34 = vpop.f32.mrf.mxu0 }
  0xf5   : > { %v2134_v62 = vpop.f32.mrf.mxu1  ;;  %v663_v41 = vpop.f32.mrf.mxu0 }
  0xf6   : > { %v516_v47 = vadd.f32 %v2134_v62, %v2124_v20 }
  0xf7   : > { %v507_v56 = vpop.f32.mrf.mxu1  ;;  %v2148_v59 = vpop.f32.mrf.mxu0 }
  0xf8   : > { %v508_v23 = vadd.f32 %v507_v56, %v407_v16  ;;  %v693_v12 = vadd.f32 %v2144_v48, %v516_v47 }
  0xf9   : > { %v2135_v2 = vpop.f32.mrf.mxu1  ;;  %v676_v9 = vpop.f32.mrf.mxu0 }
  0xfa   : > { %v519_v15 = vadd.f32 %v2135_v2, %v2125_v24  ;;  %v691_v17 = vadd.f32 %v660_v11, %v508_v23 }
  0xfb   : > { %v510_v51 = vpop.f32.mrf.mxu1  ;;  %v2149_v18 = vpop.f32.mrf.mxu0 }
  0xfc   : > { %v511_v32 = vadd.f32 %v510_v51, %v410_v58  ;;  %v694_v31 = vadd.f32 %v2145_v34, %v519_v15 }
  0xfd   : > { %v2138_v19 = vpop.f32.mrf.mxu1  ;;  %v2761_v1 = vpop.f32.mrf.mxu0 }
  0xfe   : > { %v532_v43 = vadd.f32 %v2138_v19, %v2128_v57  ;;  %v692_v24 = vadd.f32 %v663_v41, %v511_v32 }
  0xff   : > { %v523_v21 = vpop.f32.mrf.mxu1  ;;  %v2164_v46 = vpop.f32.mrf.mxu0 }
 0x100   : > { %v524_v4 = vadd.f32 %v523_v21, %v423_v61  ;;  %v697_v48 = vadd.f32 %v2148_v59, %v532_v43 }
 0x101   : > { %v2139_v25 = vpop.f32.mrf.mxu1  ;;  %v1009_v22 = vpop.f32.mrf.mxu0 }
 0x102   : > { %v535_v62 = vadd.f32 %v2139_v25, %v2129_v0  ;;  %v695_v34 = vadd.f32 %v676_v9, %v524_v4 }
 0x103   : > { %v526_v5 = vpop.f32.mrf.mxu1  ;;  %v2165_v13 = vpop.f32.mrf.mxu0 }
 0x104   : > { %v698_v23 = vadd.f32 %v2149_v18, %v535_v62  ;;  %v527_v61 = vadd.f32 %v526_v5, %v2759_v8  ;;  %v2786_v8 = vld [vmem:[%s2864_s2] ss:$0 sm:$0xff] }
 0x105   : > { %v2154_v35 = vpop.f32.mrf.mxu1  ;;  %v1012_v10 = vpop.f32.mrf.mxu0 }
 0x106   : > { %v812_v26 = vadd.f32 %v2154_v35, %v693_v12  ;;  %v696_v9 = vadd.f32 %v2761_v1, %v527_v61 }
 0x107   : > { %v779_v60 = vpop.f32.mrf.mxu1  ;;  %v2168_v29 = vpop.f32.mrf.mxu0 }
 0x108   : > { %v810_v53 = vadd.f32 %v779_v60, %v691_v17  ;;  %v1042_v54 = vadd.f32 %v2164_v46, %v812_v26 }
 0x109   : > { %v2155_v37 = vpop.f32.mrf.mxu1  ;;  %v2763_v33 = vpop.f32.mrf.mxu0 }
 0x10a   : > { %v813_v20 = vadd.f32 %v2155_v37, %v694_v31  ;;  %v1040_v56 = vadd.f32 %v1009_v22, %v810_v53 }
 0x10b   : > { %v782_v30 = vpop.f32.mrf.mxu1  ;;  %v2765_v28 = vpop.f32.mrf.mxu0 }
 0x10c   : > { %v811_v58 = vadd.f32 %v782_v30, %v692_v24  ;;  %v1043_v19 = vadd.f32 %v2165_v13, %v813_v20 }
 0x10d   : > { %v2158_v6 = vpop.f32.mrf.mxu1  ;;  %v2767_v38 = vpop.f32.mrf.mxu0 }
 0x10e   : > { %v816_v57 = vadd.f32 %v2158_v6, %v697_v48  ;;  %v1041_v59 = vadd.f32 %v1012_v10, %v811_v58 }
 0x10f   : > { %v795_v39 = vpop.f32.mrf.mxu1  ;;  %v2184_v42 = vpop.f32.mrf.mxu0 }
 0x110   : > { %v814_v46 = vadd.f32 %v795_v39, %v695_v34  ;;  %v1046_v25 = vadd.f32 %v2168_v29, %v816_v57 }
 0x111   : > { %v2159_v63 = vpop.f32.mrf.mxu1  ;;  %v1286_v40 = vpop.f32.mrf.mxu0 }
 0x112   : > { %v817_v22 = vadd.f32 %v2159_v63, %v698_v23  ;;  %v1044_v5 = vadd.f32 %v2763_v33, %v814_v46 }
 0x113   : > { %v2769_v7 = vpop.f32.mrf.mxu1  ;;  %v2185_v3 = vpop.f32.mrf.mxu0 }
 0x114   : > { %v815_v63 = vadd.f32 %v2769_v7, %v696_v9 }
 0x115   : > { %v2174_v45 = vpop.f32.mrf.mxu1  ;;  %v2771_v49 = vpop.f32.mrf.mxu0 }
 0x116   : > { %v1200_v2 = vadd.f32 %v2174_v45, %v1042_v54 }
 0x117   : > { %v1167_v14 = vpop.f32.mrf.mxu1  ;;  %v2773_v36 = vpop.f32.mrf.mxu0 }
 0x118   : > { %v1198_v60 = vadd.f32 %v1167_v14, %v1040_v56  ;;  %v1319_v37 = vadd.f32 %v2184_v42, %v1200_v2  ;;  %v1047_v42 = vadd.f32 %v2765_v28, %v817_v22 }
 0x119   : > { %v2175_v55 = vpop.f32.mrf.mxu1  ;;  %v2775_v27 = vpop.f32.mrf.mxu0 }
 0x11a   : > { %v1201_v41 = vadd.f32 %v2175_v55, %v1043_v19  ;;  %v1317_v30 = vadd.f32 %v1286_v40, %v1198_v60 }
 0x11b   : > { %v1170_v52 = vpop.f32.mrf.mxu1  ;;  %v2777_v44 = vpop.f32.mrf.mxu0 }
 0x11c   : > { %v1199_v13 = vadd.f32 %v1170_v52, %v1041_v59  ;;  %v1320_v39 = vadd.f32 %v2185_v3, %v1201_v41 }
 0x11d   : > { %v2178_v50 = vpop.f32.mrf.mxu1  ;;  %v2779_v16 = vpop.f32.mrf.mxu0 }
 0x11e   : > { %v1204_v14 = vadd.f32 %v2178_v50, %v1046_v25  ;;  %v1318_v32 = vadd.f32 %v2771_v49, %v1199_v13  ;;  %v1045_v49 = vadd.f32 %v2767_v38, %v815_v63 }
 0x11f   : > { %v1183_v11 = vpop.f32.mrf.mxu1  ;;  %v2204_v35 = vpop.f32.mrf.mxu0 }
 0x120   : > { %v1202_v1 = vadd.f32 %v1183_v11, %v1044_v5  ;;  %v1323_v33 = vadd.f32 %v2773_v36, %v1204_v14 }
 0x121   : > { %v2179_v51 = vpop.f32.mrf.mxu1  ;;  %v1674_v47 = vpop.f32.mrf.mxu0 }
 0x122   : > { %v1205_v7 = vadd.f32 %v2179_v51, %v1047_v42  ;;  %v1321_v53 = vadd.f32 %v2775_v27, %v1202_v1 }
 0x123   : > { %v1186_v21 = vpop.f32.mrf.mxu1  ;;  %v2205_v0 = vpop.f32.mrf.mxu0 }
 0x124   : > { %v1203_v24 = vadd.f32 %v1186_v21, %v1045_v49  ;;  %v1324_v11 = vadd.f32 %v2777_v44, %v1205_v7 }
 0x125   : > { %v2194_v45 = vpop.f32.mrf.mxu1  ;;  %v1677_v12 = vpop.f32.mrf.mxu0 }
 0x126   : > { %v1549_v6 = vadd.f32 %v2194_v45, %v1319_v37  ;;  %v1322_v19 = vadd.f32 %v2779_v16, %v1203_v24 }
 0x127   : > { %v1516_v18 = vpop.f32.mrf.mxu1  ;;  %v2208_v26 = vpop.f32.mrf.mxu0 }
 0x128   : > { %v1707_v10 = vadd.f32 %v2204_v35, %v1549_v6  ;;  %v1547_v29 = vadd.f32 %v1516_v18, %v1317_v30 }
 0x129   : > { %v2195_v40 = vpop.f32.mrf.mxu1  ;;  %v1690_v20 = vpop.f32.mrf.mxu0 }
 0x12a   : > { %v2793_v15 = vadd.f32 %v2786_v8, %v1707_v10  ;;  %v1705_v55 = vadd.f32 %v1674_v47, %v1547_v29  ;;  %v1550_v17 = vadd.f32 %v2195_v40, %v1320_v39 }
 0x12b   : > { %v1519_v28 = vpop.f32.mrf.mxu1  ;;  %v2209_v34 = vpop.f32.mrf.mxu0 }
 0x12c   : > { %v1730_v3 = vpack.c.bf16 %v2793_v15, %v2793_v15  ;;  %v2805_v43 = vadd.f32 %v2786_v8, %v1705_v55  ;;  %v1708_v52 = vadd.f32 %v2205_v0, %v1550_v17  ;;  %v1548_v36 = vadd.f32 %v1519_v28, %v1318_v32 }
 0x12d   : > { %v2198_v31 = vpop.f32.mrf.mxu1  ;;  %v1748_v37 = vsel %vm356_vm3, %v2793_v15, 0.0  ;;  %v1693_v25 = vpop.f32.mrf.mxu0 }
 0x12e   : > { %1739 = vst.msk [vmem:[%s2800_s20 + $0x8] sm:$0xf] %vm1736_vm8, %v1730_v3  ;;  %v1728_v50 = vpack.c.bf16 %v2805_v43, %v2805_v43  ;;  %v1723_v4 = vadd.f32 %v2786_v8, %v1708_v52  ;;  %v1553_v54 = vadd.f32 %v2198_v31, %v1323_v33  ;;  %v1706_v48 = vadd.f32 %v1677_v12, %v1548_v36 }
 0x12f   : > { %v1532_v62 = vpop.f32.mrf.mxu1  ;;  %v1745_v44 = vsel %vm356_vm3, %v2805_v43, 0.0 }
 0x130   : > { %1737 = vst.msk [vmem:[%s2800_s20] sm:$0xf] %vm1736_vm8, %v1728_v50  ;;  %v1731_v38 = vpack.c.bf16 %v1723_v4, %v1723_v4  ;;  %v1711_v56 = vadd.f32 %v2208_v26, %v1553_v54  ;;  %v1551_v27 = vadd.f32 %v1532_v62, %v1321_v53  ;;  %v1721_v2 = vadd.f32 %v2786_v8, %v1706_v48 }
 0x131   : > { %v2199_v35 = vpop.f32.mrf.mxu1  ;;  %v1750_v22 = vsel %vm356_vm3, %v1723_v4, 0.0 }
 0x132   : > { %1740 = vst.msk [vmem:[%s2800_s20 + $0xc] sm:$0xf] %vm1736_vm8, %v1731_v38  ;;  %v1726_v58 = vadd.f32 %v2786_v8, %v1711_v56  ;;  %v1709_v57 = vadd.f32 %v1690_v20, %v1551_v27  ;;  %v1554_v51 = vadd.f32 %v2199_v35, %v1324_v11  ;;  %v1729_v60 = vpack.c.bf16 %v1721_v2, %v1721_v2 }
 0x133   : > { %v1746_v47 = vsel %vm356_vm3, %v1721_v2, 0.0  ;;  %v1535_v23 = vpop.f32.mrf.mxu1 }
 0x134   : > { %v1747_v61 = vadd.f32 %v1746_v47, %v1745_v44  ;;  %v1734_v21 = vpack.c.bf16 %v1726_v58, %v1726_v58  ;;  %v1724_v46 = vadd.f32 %v2786_v8, %v1709_v57  ;;  %1738 = vst.msk [vmem:[%s2800_s20 + $0x4] sm:$0xf] %vm1736_vm8, %v1729_v60  ;;  %v1712_v41 = vadd.f32 %v2209_v34, %v1554_v51 }
 0x135   : > { %v1552_v16 = vadd.f32 %v1535_v23, %v1322_v19  ;;  %v1756_v10 = vsel %vm356_vm3, %v1726_v58, 0.0 }
 0x136   : > { %v1749_v0 = vadd.f32 %v1748_v37, %v1747_v61  ;;  %1743 = vst.msk [vmem:[%s2800_s20 + $0x18] sm:$0xf] %vm1736_vm8, %v1734_v21  ;;  %v1732_v59 = vpack.c.bf16 %v1724_v46, %v1724_v46  ;;  %v1727_v45 = vadd.f32 %v2786_v8, %v1712_v41  ;;  %v1752_v12 = vsel %vm356_vm3, %v1724_v46, 0.0 }
 0x137   : > { %v1710_v30 = vadd.f32 %v1693_v25, %v1552_v16 }
 0x138   : > { %1741 = vst.msk [vmem:[%s2800_s20 + $0x10] sm:$0xf] %vm1736_vm8, %v1732_v59  ;;  %v1751_v6 = vadd.f32 %v1750_v22, %v1749_v0  ;;  %v1735_v9 = vpack.c.bf16 %v1727_v45, %v1727_v45  ;;  %v1758_v42 = vsel %vm356_vm3, %v1727_v45, 0.0 }
 0x139   : > { %v1725_v13 = vadd.f32 %v2786_v8, %v1710_v30 }
 0x13a   : > { %v1753_v14 = vadd.f32 %v1752_v12, %v1751_v6  ;;  %1744 = vst.msk [vmem:[%s2800_s20 + $0x1c] sm:$0xf] %vm1736_vm8, %v1735_v9 }
 0x13b   : > { %v1733_v18 = vpack.c.bf16 %v1725_v13, %v1725_v13  ;;  %v1754_v5 = vsel %vm356_vm3, %v1725_v13, 0.0 }
 0x13c   : > { %v1755_v39 = vadd.f32 %v1754_v5, %v1753_v14 }
 0x13d   : > { %1742 = vst.msk [vmem:[%s2800_s20 + $0x14] sm:$0xf] %vm1736_vm8, %v1733_v18 }
 0x13e   : > { %v1757_v29 = vadd.f32 %v1756_v10, %v1755_v39 }
 0x140   : > { %v1759_v63 = vadd.f32 %v1758_v42, %v1757_v29 }
 0x142   : > { %v1760_v40 = vrot.slane %v1759_v63, 4 }
 0x144   : > { %v1761_v1 = vadd.f32 %v1760_v40, %v1759_v63 }
 0x146   : > { %v1762_v55 = vrot.slane %v1761_v1, 2 }
 0x148   : > { %v1763_v17 = vadd.f32 %v1762_v55, %v1761_v1 }
 0x14a   : > { %v1764_v8 = vrot.slane %v1763_v17, 1 }
 0x14c   : > { %v1765_v26 = vadd.f32 %v1764_v8, %v1763_v17 }
 0x14e   : > { %v1766_v32 = vmul.f32 0.015625, %v1765_v26 }
 0x150   : > { %v1767_v33 = vsub.f32 %v2805_v43, %v1766_v32  ;;  %v1768_v28 = vsub.f32 %v1721_v2, %v1766_v32  ;;  %v1769_v7 = vsub.f32 %v2793_v15, %v1766_v32  ;;  %v1770_v3 = vsub.f32 %v1723_v4, %v1766_v32 }
 0x151   : > { %v1771_v52 = vsub.f32 %v1724_v46, %v1766_v32  ;;  %v1772_v53 = vsub.f32 %v1725_v13, %v1766_v32  ;;  %v1773_v48 = vsub.f32 %v1726_v58, %v1766_v32  ;;  %v1774_v38 = vsub.f32 %v1727_v45, %v1766_v32 }
 0x152   : > { %v1775_v49 = vmul.f32 %v1767_v33, %v1767_v33  ;;  %v1776_v36 = vmul.f32 %v1768_v28, %v1768_v28  ;;  %v1777_v31 = vmul.f32 %v1769_v7, %v1769_v7  ;;  %v1778_v50 = vmul.f32 %v1770_v3, %v1770_v3 }
 0x153   : > { %v1779_v62 = vmul.f32 %v1771_v52, %v1771_v52  ;;  %v1780_v56 = vmul.f32 %v1772_v53, %v1772_v53  ;;  %v1781_v27 = vmul.f32 %v1773_v48, %v1773_v48  ;;  %v1782_v57 = vmul.f32 %v1774_v38, %v1774_v38 }
 0x154   : > { %v1783_v54 = vsel %vm356_vm3, %v1775_v49, 0.0  ;;  %v1784_v20 = vsel %vm356_vm3, %v1776_v36, 0.0  ;;  %v1786_v11 = vsel %vm356_vm3, %v1777_v31, 0.0  ;;  %v1788_v15 = vsel %vm356_vm3, %v1778_v50, 0.0 }
 0x155   : > { %v1785_v24 = vadd.f32 %v1784_v20, %v1783_v54  ;;  %v1790_v2 = vsel %vm356_vm3, %v1779_v62, 0.0  ;;  %v1792_v51 = vsel %vm356_vm3, %v1780_v56, 0.0  ;;  %v1794_v58 = vsel %vm356_vm3, %v1781_v27, 0.0 }
 0x156   : > { %v1796_v44 = vsel %vm356_vm3, %v1782_v57, 0.0 }
 0x157   : > { %v1787_v43 = vadd.f32 %v1786_v11, %v1785_v24 }
 0x159   : > { %v1789_v4 = vadd.f32 %v1788_v15, %v1787_v43 }
 0x15b   : > { %v1791_v35 = vadd.f32 %v1790_v2, %v1789_v4 }
 0x15d   : > { %v1793_v34 = vadd.f32 %v1792_v51, %v1791_v35 }
 0x15f   : > { %v1795_v19 = vadd.f32 %v1794_v58, %v1793_v34 }
 0x161   : > { %v1797_v60 = vadd.f32 %v1796_v44, %v1795_v19 }
 0x163   : > { %v1798_v47 = vrot.slane %v1797_v60, 4 }
 0x165   : > { %v1799_v23 = vadd.f32 %v1798_v47, %v1797_v60 }
 0x167   : > { %v1800_v61 = vrot.slane %v1799_v23, 2 }
 0x169   : > { %v1801_v21 = vadd.f32 %v1800_v61, %v1799_v23 }
 0x16b   : > { %v1802_v46 = vrot.slane %v1801_v21, 1 }
 0x16d   : > { %v1803_v37 = vadd.f32 %v1802_v46, %v1801_v21 }
 0x16f   : > { %v1805_v41 = vsel %vm1804_vm9, %v1765_v26, %v1803_v37 }
 0x170   : > { %1807 = vst.msk [vmem:[%s208_s24] sm:$0x3] %vm1806_vm10, %v1805_v41 }
 0x171 PF: > { %s15_s15 = sadd.s32 1, %s2249_s15  }
 0x172   : > { %p12_p4 = scmp.ge.s32.totalorder %s15_s15, 4  }
 0x174   :  { %14 = sbr.rel (!%p12_p4) target bundleno = 1 (0x1), region = 84 }

</bundles_post_ra>
